<compile_context>
chip_gen: v5e
topology: v5e:2x2
jax: 0.10.0
libtpu: 0.0.40
codegen_flags: <defaults>
</compile_context>

<pallas_src>
import functools

import jax
import jax.numpy as jnp
from jax.experimental import pallas as pl
from jax.experimental.pallas import tpu as pltpu

EPS = 1e-5
LANE = 128
VMEM_LIMIT = 32 * 1024 * 1024   # safe on v5e/v6e (128 MiB) and v7x (64 MiB physical)


# ------------------------------ small helpers ------------------------------ #

def _round_up(v, m):
    return (v + m - 1) // m * m


def _pick_rows_tile(m, target=256):
    """Largest multiple-of-8 divisor of m that is <= target (falls back to m).

    target is kept small here so the toy test exercises the multi-step
    accumulation path; for production sizes use 512-1024 rows per tile.
    """
    tm = min(m, target)
    while tm > 8 and (m % tm or tm % 8):
        tm //= 2
    return tm if (m % tm == 0 and tm % 8 == 0) else m


def _pick_row_block(h, w):
    """Image rows per conv grid step: keep th*w (flattened rows) <= 2048."""
    th = h
    while th % 2 == 0 and th * w > 2048:
        th //= 2
    return th


# ----------------------------- Pallas kernels ------------------------------ #

def _bn_stats_kernel(x_ref, sums_ref):
    """Per-channel sum (row 0) / sum-of-squares (row 1), accumulated over grid."""
    @pl.when(pl.program_id(0) == 0)
    def _init():
        sums_ref[...] = jnp.zeros_like(sums_ref)

    x = x_ref[...]
    s = jnp.sum(x, axis=0, keepdims=True)
    ss = jnp.sum(x * x, axis=0, keepdims=True)
    sums_ref[...] += jnp.concatenate([s, ss], axis=0)


def _masked_affine_relu(x, scale, shift, row0, h, w):
    """relu(x*scale + shift) with spatial zero-padding positions forced to 0.

    x: (th+2, w+2, C) raw tile including the 1-pixel halo taken from the
    spatially zero-padded image. Positions whose padded-image row (row0 + r)
    lies outside [1, h] or whose column lies outside [1, w] are padding and
    must remain exactly 0 *after* BN + ReLU (conv pads in the post-BN domain).
    """
    a = jnp.maximum(x * scale + shift, 0.0)
    ri = jax.lax.broadcasted_iota(jnp.int32, a.shape, 0) + row0
    ci = jax.lax.broadcasted_iota(jnp.int32, a.shape, 1)
    ok = (ri >= 1) & (ri <= h) & (ci >= 1) & (ci <= w)
    return jnp.where(ok, a, 0.0)


def _conv3x3_taps(a, w_ref):
    """3x3 conv as 9 accumulated shifted matmuls (bf16 MXU operands, f32 acc).

    a:     (th+2, w+2, cin) f32, already BN+ReLU'd, zero at spatial padding.
    w_ref: (9, cin, cout) bf16 ref; tap index dy*3+dx matches the row-major
           reshape of the HWIO weight (keep these in sync!).
    """
    th = a.shape[0] - 2
    w = a.shape[1] - 2
    cin = a.shape[2]
    cout = w_ref.shape[2]
    acc = jnp.zeros((th * w, cout), jnp.float32)
    for dy in range(3):
        for dx in range(3):
            xs = a[dy:dy + th, dx:dx + w, :].reshape(th * w, cin)
            acc = acc + jnp.dot(xs.astype(jnp.bfloat16), w_ref[dy * 3 + dx],
                                preferred_element_type=jnp.float32)
    return acc


def _conv1_kernel(x_ref, s1_ref, b1_ref, w_ref, y_ref, stats_ref, *, nb):
    """y = conv1(relu(bn1(x))) for one row-block; accumulates bn2 sum/sumsq."""
    g = pl.program_id(0)

    @pl.when(g == 0)
    def _init():
        stats_ref[...] = jnp.zeros_like(stats_ref)

    th = x_ref.shape[1] - 2
    w = x_ref.shape[2] - 2
    row0 = (g % nb) * th
    a = _masked_affine_relu(x_ref[0], s1_ref[...], b1_ref[...], row0, nb * th, w)
    acc = _conv3x3_taps(a, w_ref)
    y_ref[...] = acc.reshape(1, th, w, acc.shape[-1])
    s = jnp.sum(acc, axis=0, keepdims=True)
    ss = jnp.sum(acc * acc, axis=0, keepdims=True)
    stats_ref[...] += jnp.concatenate([s, ss], axis=0)


def _conv2_kernel(y_ref, s2_ref, b2_ref, w_ref, res_ref, s1_ref, b1_ref, out_ref,
                  *, nb, first):
    """out = conv2(relu(bn2(y))) + residual for one row-block."""
    g = pl.program_id(0)
    th = y_ref.shape[1] - 2
    w = y_ref.shape[2] - 2
    row0 = (g % nb) * th
    a = _masked_affine_relu(y_ref[0], s2_ref[...], b2_ref[...], row0, nb * th, w)
    acc = _conv3x3_taps(a, w_ref)
    res = res_ref[0].reshape(th * w, res_ref.shape[-1])
    if first:
        # residual = relu(bn1(x)); applied here so it never hits HBM separately
        res = jnp.maximum(res * s1_ref[...] + b1_ref[...], 0.0)
    out_ref[...] = (acc + res).reshape(1, th, w, acc.shape[-1])


# --------------------------- pallas_call wrappers --------------------------- #

def _bn_stats(x2d):
    m, cp = x2d.shape
    tm = _pick_rows_tile(m)
    return pl.pallas_call(
        _bn_stats_kernel,
        out_shape=jax.ShapeDtypeStruct((2, cp), jnp.float32),
        grid=(m // tm,),
        in_specs=[pl.BlockSpec((tm, cp), lambda i: (i, 0))],
        out_specs=pl.BlockSpec((2, cp), lambda i: (0, 0)),
        compiler_params=pltpu.CompilerParams(
            dimension_semantics=("arbitrary",),       # output tile is an accumulator
            vmem_limit_bytes=VMEM_LIMIT),
        cost_estimate=pl.CostEstimate(flops=3 * m * cp, transcendentals=0,
                                      bytes_accessed=4 * (m * cp + 2 * cp)),
    )(x2d)


def _conv1_call(xb, scale1, shift1, w1, *, nb):
    g, thp2, wp2, cp = xb.shape
    th, w = thp2 - 2, wp2 - 2
    cout = w1.shape[2]
    flops = 2 * g * th * w * 9 * cp * cout
    bytes_acc = 4 * (xb.size + g * th * w * cout + 2 * cout) + 2 * w1.size
    return pl.pallas_call(
        functools.partial(_conv1_kernel, nb=nb),
        out_shape=(jax.ShapeDtypeStruct((g, th, w, cout), jnp.float32),
                   jax.ShapeDtypeStruct((2, cout), jnp.float32)),
        grid=(g,),
        in_specs=[pl.BlockSpec((1, thp2, wp2, cp), lambda i: (i, 0, 0, 0)),
                  pl.BlockSpec((1, cp), lambda i: (0, 0)),
                  pl.BlockSpec((1, cp), lambda i: (0, 0)),
                  pl.BlockSpec((9, cp, cout), lambda i: (0, 0, 0))],
        out_specs=(pl.BlockSpec((1, th, w, cout), lambda i: (i, 0, 0, 0)),
                   pl.BlockSpec((2, cout), lambda i: (0, 0))),
        compiler_params=pltpu.CompilerParams(
            dimension_semantics=("arbitrary",),       # bn2-stats output accumulates
            vmem_limit_bytes=VMEM_LIMIT),
        cost_estimate=pl.CostEstimate(flops=flops, transcendentals=0,
                                      bytes_accessed=bytes_acc),
    )(xb, scale1, shift1, w1)


def _conv2_call(yb, scale2, shift2, w2, resb, scale1, shift1, *, nb, first):
    g, thp2, wp2, cp = yb.shape
    th, w = thp2 - 2, wp2 - 2
    cout = w2.shape[2]
    flops = 2 * g * th * w * 9 * cp * cout
    bytes_acc = 4 * (yb.size + resb.size + g * th * w * cout) + 2 * w2.size
    return pl.pallas_call(
        functools.partial(_conv2_kernel, nb=nb, first=first),
        out_shape=jax.ShapeDtypeStruct((g, th, w, cout), jnp.float32),
        grid=(g,),
        in_specs=[pl.BlockSpec((1, thp2, wp2, cp), lambda i: (i, 0, 0, 0)),
                  pl.BlockSpec((1, cp), lambda i: (0, 0)),
                  pl.BlockSpec((1, cp), lambda i: (0, 0)),
                  pl.BlockSpec((9, cp, cout), lambda i: (0, 0, 0)),
                  pl.BlockSpec((1, th, w, cout), lambda i: (i, 0, 0, 0)),
                  pl.BlockSpec((1, cp), lambda i: (0, 0)),
                  pl.BlockSpec((1, cp), lambda i: (0, 0))],
        out_specs=pl.BlockSpec((1, th, w, cout), lambda i: (i, 0, 0, 0)),
        compiler_params=pltpu.CompilerParams(
            dimension_semantics=("parallel",),        # each output block written once
            vmem_limit_bytes=VMEM_LIMIT),
        cost_estimate=pl.CostEstimate(flops=flops, transcendentals=0,
                                      bytes_accessed=bytes_acc),
    )(yb, scale2, shift2, w2, resb, scale1, shift1)


# ------------------------------- JAX glue ---------------------------------- #

def _finalize_bn(sums, count, gamma, beta):
    mean = sums[0] / count
    var = jnp.maximum(sums[1] / count - mean * mean, 0.0)
    scale = gamma * jax.lax.rsqrt(var + EPS)
    shift = beta - mean * scale
    return scale.reshape(1, -1), shift.reshape(1, -1)


def _halo_blocks(x_img, th):
    """(N, H, W, C) -> (N*NB, th+2, W+2, C) row-blocks with 1-pixel zero halo."""
    n, h, w, c = x_img.shape
    nb = h // th
    xp = jnp.pad(x_img, ((0, 0), (1, 1), (1, 1), (0, 0)))
    if nb == 1:
        return xp
    blocks = [xp[:, b * th:b * th + th + 2] for b in range(nb)]
    return jnp.stack(blocks, axis=1).reshape(n * nb, th + 2, w + 2, c)


def init_params(key, inplanes, planes):
    """Deterministic synthetic parameters: bf16 HWIO conv weights + f32 BN affine."""
    k1, k2 = jax.random.split(key)
    w1 = jax.random.normal(k1, (3, 3, inplanes, planes), jnp.float32)
    w1 = (w1 * (2.0 / (9 * inplanes)) ** 0.5).astype(jnp.bfloat16)
    w2 = jax.random.normal(k2, (3, 3, planes, planes), jnp.float32)
    w2 = (w2 * (2.0 / (9 * planes)) ** 0.5).astype(jnp.bfloat16)
    return dict(
        w1=w1, w2=w2,
        gamma1=jnp.linspace(0.8, 1.2, inplanes, dtype=jnp.float32),
        beta1=jnp.linspace(-0.1, 0.1, inplanes, dtype=jnp.float32),
        gamma2=jnp.linspace(0.9, 1.1, planes, dtype=jnp.float32),
        beta2=jnp.linspace(-0.05, 0.05, planes, dtype=jnp.float32),
    )


def preact_block_forward(x_nchw, params, *, stride=1, first=False):
    """PreActBlock forward (shortcut=None, stride=1). NCHW in / NCHW out."""
    if stride != 1:
        # TODO(synk): stride != 1 needs the external `shortcut` module; unsupported.
        raise NotImplementedError("only stride=1 / shortcut=None is supported")

    x = jnp.transpose(x_nchw, (0, 2, 3, 1)).astype(jnp.float32)   # NCHW -> NHWC
    n, h, w, c = x.shape
    planes = params["w1"].shape[-1]
    if planes != c:
        raise NotImplementedError("shortcut=None requires planes == inplanes")

    cp = _round_up(c, LANE)                       # lane-dense channel padding
    xp = jnp.pad(x, ((0, 0), (0, 0), (0, 0), (0, cp - c)))
    g1 = jnp.pad(params["gamma1"], (0, cp - c))   # zero pads => padded channels stay 0
    b1 = jnp.pad(params["beta1"], (0, cp - c))
    g2 = jnp.pad(params["gamma2"], (0, cp - planes))
    b2 = jnp.pad(params["beta2"], (0, cp - planes))
    w1 = jnp.pad(params["w1"], ((0, 0), (0, 0), (0, cp - c), (0, cp - planes)))
    w2 = jnp.pad(params["w2"], ((0, 0), (0, 0), (0, cp - planes), (0, cp - planes)))
    w1 = w1.reshape(9, cp, cp)                    # tap-major: index dy*3+dx
    w2 = w2.reshape(9, cp, cp)

    m = n * h * w

    # ---- bn1: tiled sum/sumsq reduction in Pallas, tiny (1,C) finalize in JAX ----
    sums1 = _bn_stats(xp.reshape(m, cp))
    scale1, shift1 = _finalize_bn(sums1, m, g1, b1)

    # ---- conv1 fused with bn1-apply+ReLU; also emits bn2 sum/sumsq ----
    th = _pick_row_block(h, w)
    nb = h // th
    xb = _halo_blocks(xp, th)                     # (N*NB, th+2, W+2, CP)
    y1, sums2 = _conv1_call(xb, scale1, shift1, w1, nb=nb)
    scale2, shift2 = _finalize_bn(sums2, m, g2, b2)

    # ---- conv2 fused with bn2-apply+ReLU and residual add ----
    y1b = _halo_blocks(y1.reshape(n, h, w, cp), th)
    resb = xp.reshape(n, nb, th, w, cp).reshape(n * nb, th, w, cp)
    out = _conv2_call(y1b, scale2, shift2, w2, resb, scale1, shift1,
                      nb=nb, first=first)
    out = out.reshape(n, h, w, cp)[..., :planes]
    return jnp.transpose(out, (0, 3, 1, 2))       # NHWC -> NCHW


# --------------------------- pure-JAX reference ----------------------------- #

def reference_forward(x_nchw, params, *, stride=1, first=False):
    """Reference with the same bf16 matmul-operand rounding as the kernels."""
    del stride  # only stride=1 supported
    x = jnp.transpose(x_nchw, (0, 2, 3, 1)).astype(jnp.float32)

    def bn(v, gamma, beta):
        mean = v.mean(axis=(0, 1, 2))
        var = ((v - mean) ** 2).mean(axis=(0, 1, 2))
        return (v - mean) * jax.lax.rsqrt(var + EPS) * gamma + beta

    def conv3x3(a, w_bf16):
        return jax.lax.conv_general_dilated(
            a.astype(jnp.bfloat16), w_bf16, (1, 1), ((1, 1), (1, 1)),
            dimension_numbers=("NHWC", "HWIO", "NHWC"),
            preferred_element_type=jnp.float32)

    a1 = jnp.maximum(bn(x, params["gamma1"], params["beta1"]), 0.0)
    residual = a1 if first else x
    y1 = conv3x3(a1, params["w1"])
    a2 = jnp.maximum(bn(y1, params["gamma2"], params["beta2"]), 0.0)
    out = conv3x3(a2, params["w2"]) + residual
    return jnp.transpose(out, (0, 3, 1, 2))


# ----------------------------------- main ----------------------------------- #

if __name__ == "__main__":
    key = jax.random.PRNGKey(0)
    kx, kp = jax.random.split(key)
    N, C, H, W = 2, 4, 16, 16
    x = jax.random.normal(kx, (N, C, H, W), jnp.float32)
    params = init_params(kp, C, C)

    fwd = jax.jit(preact_block_forward, static_argnames=("stride", "first"))

    for first in (False, True):
        out = jax.block_until_ready(fwd(x, params, stride=1, first=first))
        ref = reference_forward(x, params, stride=1, first=first)
        assert out.shape == (N, C, H, W)
        if not jnp.allclose(out, ref, atol=5e-3, rtol=5e-3):
            max_diff = float(jnp.max(jnp.abs(out - ref)))
            raise SystemExit(f"mismatch vs reference (first={first}), "
                             f"max abs diff = {max_diff:e}")
    print("KERNEL_OK")
</pallas_src>

<mosaic_0001>
module attributes {stable_mosaic.version = 11 : i64} {
  func.func @_bn_stats_kernel(%arg0: i32, %arg1: memref<256x128xf32, #tpu.memory_space<vmem>>, %arg2: memref<2x128xf32, #tpu.memory_space<vmem>>) attributes {dimension_semantics = [#tpu.dimension_semantics<arbitrary>], iteration_bounds = array<i64: 2>, scalar_prefetch = 0 : i64, scratch_operands = 0 : i64, tpu.core_type = #tpu.core_type<tc>, window_params = [{transform_indices = @transform_0, window_bounds = array<i64: 256, 128>}, {pipeline_mode = #tpu.pipeline_mode<synchronous>, transform_indices = @transform_1, window_bounds = array<i64: 2, 128>}]} {
    %c0_i32 = arith.constant 0 : i32
    %0 = arith.cmpi eq, %arg0, %c0_i32 : i32
    %1 = arith.extui %0 : i1 to i32
    %c0_i32_0 = arith.constant 0 : i32
    %2 = arith.cmpi ne, %1, %c0_i32_0 : i32
    scf.if %2 {
      %cst_7 = arith.constant 0.000000e+00 : f32
      %13 = vector.broadcast %cst_7 : f32 to vector<2x128xf32>
      %c0_8 = arith.constant 0 : index
      %c0_9 = arith.constant 0 : index
      %14 = vector.load %arg2[%c0_8, %c0_9] : memref<2x128xf32, #tpu.memory_space<vmem>>, vector<2x128xf32>
      tpu.vector_store %arg2[%c0_8, %c0_9], %13 {strides = array<i32>} : memref<2x128xf32, #tpu.memory_space<vmem>>, vector<2x128xf32>,
    } else {
    }
    %c0 = arith.constant 0 : index
    %c0_1 = arith.constant 0 : index
    %3 = vector.load %arg1[%c0, %c0_1] : memref<256x128xf32, #tpu.memory_space<vmem>>, vector<256x128xf32>
    %cst = arith.constant dense<0.000000e+00> : vector<128xf32>
    %4 = vector.multi_reduction <add>, %3, %cst [0] : vector<256x128xf32> to vector<128xf32>
    %5 = vector.shape_cast %4 : vector<128xf32> to vector<1x128xf32>
    %6 = arith.mulf %3, %3 : vector<256x128xf32>
    %cst_2 = arith.constant dense<0.000000e+00> : vector<128xf32>
    %7 = vector.multi_reduction <add>, %6, %cst_2 [0] : vector<256x128xf32> to vector<128xf32>
    %8 = vector.shape_cast %7 : vector<128xf32> to vector<1x128xf32>
    %c0_3 = arith.constant 0 : index
    %c0_4 = arith.constant 0 : index
    %9 = vector.load %arg2[%c0_3, %c0_4] : memref<2x128xf32, #tpu.memory_space<vmem>>, vector<2x128xf32>
    %10 = tpu.concatenate %5, %8 in 0 : vector<1x128xf32>, vector<1x128xf32> -> vector<2x128xf32>
    %11 = arith.addf %9, %10 : vector<2x128xf32>
    %c0_5 = arith.constant 0 : index
    %c0_6 = arith.constant 0 : index
    %12 = vector.load %arg2[%c0_5, %c0_6] : memref<2x128xf32, #tpu.memory_space<vmem>>, vector<2x128xf32>
    tpu.vector_store %arg2[%c0_5, %c0_6], %11 {strides = array<i32>} : memref<2x128xf32, #tpu.memory_space<vmem>>, vector<2x128xf32>,
    return
  }
  func.func @transform_0(%arg0: i32) -> (i32, i32) {
    %c0_i32 = arith.constant 0 : i32
    %c0_i32_0 = arith.constant 0 : i32
    return %arg0, %c0_i32 : i32, i32
  }
  func.func @transform_1(%arg0: i32) -> (i32, i32) {
    %c0_i32 = arith.constant 0 : i32
    %c0_i32_0 = arith.constant 0 : i32
    %c0_i32_1 = arith.constant 0 : i32
    return %c0_i32, %c0_i32_0 : i32, i32
  }
}

module attributes {stable_mosaic.version = 11 : i64} {
  func.func @_conv1_kernel(%arg0: i32, %arg1: memref<1x18x18x128xf32, #tpu.memory_space<vmem>>, %arg2: memref<1x128xf32, #tpu.memory_space<vmem>>, %arg3: memref<1x128xf32, #tpu.memory_space<vmem>>, %arg4: memref<9x128x128xbf16, #tpu.memory_space<vmem>>, %arg5: memref<1x16x16x128xf32, #tpu.memory_space<vmem>>, %arg6: memref<2x128xf32, #tpu.memory_space<vmem>>) attributes {dimension_semantics = [#tpu.dimension_semantics<arbitrary>], iteration_bounds = array<i64: 2>, scalar_prefetch = 0 : i64, scratch_operands = 0 : i64, tpu.core_type = #tpu.core_type<tc>, window_params = [{transform_indices = @transform_0, window_bounds = array<i64: 1, 18, 18, 128>}, {pipeline_mode = #tpu.pipeline_mode<synchronous>, transform_indices = @transform_1, window_bounds = array<i64: 1, 128>}, {pipeline_mode = #tpu.pipeline_mode<synchronous>, transform_indices = @transform_2, window_bounds = array<i64: 1, 128>}, {pipeline_mode = #tpu.pipeline_mode<synchronous>, transform_indices = @transform_3, window_bounds = array<i64: 9, 128, 128>}, {transform_indices = @transform_4, window_bounds = array<i64: 1, 16, 16, 128>}, {pipeline_mode = #tpu.pipeline_mode<synchronous>, transform_indices = @transform_5, window_bounds = array<i64: 2, 128>}]} {
    %c0_i32 = arith.constant 0 : i32
    %0 = arith.cmpi eq, %arg0, %c0_i32 : i32
    %1 = arith.extui %0 : i1 to i32
    %c0_i32_0 = arith.constant 0 : i32
    %2 = arith.cmpi ne, %1, %c0_i32_0 : i32
    scf.if %2 {
      %cst_57 = arith.constant 0.000000e+00 : f32
      %118 = vector.broadcast %cst_57 : f32 to vector<2x128xf32>
      %c0_58 = arith.constant 0 : index
      %c0_59 = arith.constant 0 : index
      %119 = vector.load %arg6[%c0_58, %c0_59] : memref<2x128xf32, #tpu.memory_space<vmem>>, vector<2x128xf32>
      tpu.vector_store %arg6[%c0_58, %c0_59], %118 {strides = array<i32>} : memref<2x128xf32, #tpu.memory_space<vmem>>, vector<2x128xf32>,
    } else {
    }
    %c1_i32 = arith.constant 1 : i32
    %c0_i32_1 = arith.constant 0 : i32
    %3 = arith.cmpi eq, %c1_i32, %c0_i32_1 : i32
    %c1_i32_2 = arith.constant 1 : i32
    %4 = arith.select %3, %c1_i32_2, %c1_i32 : i32
    %5 = arith.remsi %arg0, %4 : i32
    %c0_i32_3 = arith.constant 0 : i32
    %6 = arith.cmpi ne, %5, %c0_i32_3 : i32
    %c0_i32_4 = arith.constant 0 : i32
    %7 = arith.cmpi slt, %5, %c0_i32_4 : i32
    %c0_i32_5 = arith.constant 0 : i32
    %8 = arith.cmpi slt, %4, %c0_i32_5 : i32
    %9 = arith.xori %7, %8 : i1
    %10 = arith.andi %9, %6 : i1
    %11 = arith.addi %5, %4 : i32
    %12 = arith.select %10, %11, %5 : i32
    %c16_i32 = arith.constant 16 : i32
    %13 = arith.muli %12, %c16_i32 : i32
    %c0 = arith.constant 0 : index
    %c0_6 = arith.constant 0 : index
    %c0_7 = arith.constant 0 : index
    %c0_8 = arith.constant 0 : index
    %14 = vector.load %arg1[%c0, %c0_6, %c0_7, %c0_8] : memref<1x18x18x128xf32, #tpu.memory_space<vmem>>, vector<1x18x18x128xf32>
    %15 = vector.shape_cast %14 : vector<1x18x18x128xf32> to vector<18x18x128xf32>
    %c0_9 = arith.constant 0 : index
    %c0_10 = arith.constant 0 : index
    %16 = vector.load %arg2[%c0_9, %c0_10] : memref<1x128xf32, #tpu.memory_space<vmem>>, vector<1x128xf32>
    %c0_11 = arith.constant 0 : index
    %c0_12 = arith.constant 0 : index
    %17 = vector.load %arg3[%c0_11, %c0_12] : memref<1x128xf32, #tpu.memory_space<vmem>>, vector<1x128xf32>
    %18 = vector.shape_cast %16 : vector<1x128xf32> to vector<1x1x128xf32>
    %19 = vector.broadcast %18 : vector<1x1x128xf32> to vector<18x18x128xf32>
    %20 = arith.mulf %15, %19 : vector<18x18x128xf32>
    %21 = vector.shape_cast %17 : vector<1x128xf32> to vector<1x1x128xf32>
    %22 = vector.broadcast %21 : vector<1x1x128xf32> to vector<18x18x128xf32>
    %23 = arith.addf %20, %22 : vector<18x18x128xf32>
    %cst = arith.constant 0.000000e+00 : f32
    %24 = vector.broadcast %cst : f32 to vector<18x18x128xf32>
    %25 = arith.maximumf %23, %24 : vector<18x18x128xf32>
    %26 = tpu.iota {dimensions = array<i32: 0>} : vector<18x18x128xi32>
    %27 = vector.broadcast %13 : i32 to vector<18x18x128xi32>
    %28 = arith.addi %26, %27 : vector<18x18x128xi32>
    %29 = tpu.iota {dimensions = array<i32: 1>} : vector<18x18x128xi32>
    %c1_i32_13 = arith.constant 1 : i32
    %30 = vector.broadcast %c1_i32_13 : i32 to vector<18x18x128xi32>
    %31 = arith.cmpi sge, %28, %30 : vector<18x18x128xi32>
    %c16_i32_14 = arith.constant 16 : i32
    %32 = vector.broadcast %c16_i32_14 : i32 to vector<18x18x128xi32>
    %33 = arith.cmpi sle, %28, %32 : vector<18x18x128xi32>
    %34 = arith.andi %31, %33 : vector<18x18x128xi1>
    %c1_i32_15 = arith.constant 1 : i32
    %35 = vector.broadcast %c1_i32_15 : i32 to vector<18x18x128xi32>
    %36 = arith.cmpi sge, %29, %35 : vector<18x18x128xi32>
    %37 = arith.andi %34, %36 : vector<18x18x128xi1>
    %c16_i32_16 = arith.constant 16 : i32
    %38 = vector.broadcast %c16_i32_16 : i32 to vector<18x18x128xi32>
    %39 = arith.cmpi sle, %29, %38 : vector<18x18x128xi32>
    %40 = arith.andi %37, %39 : vector<18x18x128xi1>
    %cst_17 = arith.constant 0.000000e+00 : f32
    %41 = vector.broadcast %cst_17 : f32 to vector<18x18x128xf32>
    %42 = arith.select %40, %25, %41 : vector<18x18x128xi1>, vector<18x18x128xf32>
    %cst_18 = arith.constant 0.000000e+00 : f32
    %43 = vector.broadcast %cst_18 : f32 to vector<256x128xf32>
    %44 = vector.extract_strided_slice %42 {offsets = [0, 0, 0], sizes = [16, 16, 128], strides = [1, 1, 1]} : vector<18x18x128xf32> to vector<16x16x128xf32>
    %45 = vector.shape_cast %44 : vector<16x16x128xf32> to vector<256x128xf32>
    %46 = arith.truncf %45 : vector<256x128xf32> to vector<256x128xbf16>
    %c0_19 = arith.constant 0 : index
    %c0_20 = arith.constant 0 : index
    %c0_21 = arith.constant 0 : index
    %47 = vector.load %arg4[%c0_19, %c0_20, %c0_21] : memref<9x128x128xbf16, #tpu.memory_space<vmem>>, vector<1x128x128xbf16>
    %48 = vector.shape_cast %47 : vector<1x128x128xbf16> to vector<128x128xbf16>
    %cst_22 = arith.constant dense<0.000000e+00> : vector<256x128xf32>
    %49 = tpu.matmul %46, %48, %cst_22 {dimension_numbers = #tpu.dot_dimension_numbers<[1], [0], [0], [1], [0, 0, 1, 1], [], []>} : vector<256x128xbf16>, vector<128x128xbf16>, vector<256x128xf32> -> vector<256x128xf32>
    %50 = arith.addf %43, %49 : vector<256x128xf32>
    %51 = vector.extract_strided_slice %42 {offsets = [0, 1, 0], sizes = [16, 16, 128], strides = [1, 1, 1]} : vector<18x18x128xf32> to vector<16x16x128xf32>
    %52 = vector.shape_cast %51 : vector<16x16x128xf32> to vector<256x128xf32>
    %53 = arith.truncf %52 : vector<256x128xf32> to vector<256x128xbf16>
    %c1 = arith.constant 1 : index
    %c0_23 = arith.constant 0 : index
    %c0_24 = arith.constant 0 : index
    %54 = vector.load %arg4[%c1, %c0_23, %c0_24] : memref<9x128x128xbf16, #tpu.memory_space<vmem>>, vector<1x128x128xbf16>
    %55 = vector.shape_cast %54 : vector<1x128x128xbf16> to vector<128x128xbf16>
    %cst_25 = arith.constant dense<0.000000e+00> : vector<256x128xf32>
    %56 = tpu.matmul %53, %55, %cst_25 {dimension_numbers = #tpu.dot_dimension_numbers<[1], [0], [0], [1], [0, 0, 1, 1], [], []>} : vector<256x128xbf16>, vector<128x128xbf16>, vector<256x128xf32> -> vector<256x128xf32>
    %57 = arith.addf %50, %56 : vector<256x128xf32>
    %58 = vector.extract_strided_slice %42 {offsets = [0, 2, 0], sizes = [16, 16, 128], strides = [1, 1, 1]} : vector<18x18x128xf32> to vector<16x16x128xf32>
    %59 = vector.shape_cast %58 : vector<16x16x128xf32> to vector<256x128xf32>
    %60 = arith.truncf %59 : vector<256x128xf32> to vector<256x128xbf16>
    %c2 = arith.constant 2 : index
    %c0_26 = arith.constant 0 : index
    %c0_27 = arith.constant 0 : index
    %61 = vector.load %arg4[%c2, %c0_26, %c0_27] : memref<9x128x128xbf16, #tpu.memory_space<vmem>>, vector<1x128x128xbf16>
    %62 = vector.shape_cast %61 : vector<1x128x128xbf16> to vector<128x128xbf16>
    %cst_28 = arith.constant dense<0.000000e+00> : vector<256x128xf32>
    %63 = tpu.matmul %60, %62, %cst_28 {dimension_numbers = #tpu.dot_dimension_numbers<[1], [0], [0], [1], [0, 0, 1, 1], [], []>} : vector<256x128xbf16>, vector<128x128xbf16>, vector<256x128xf32> -> vector<256x128xf32>
    %64 = arith.addf %57, %63 : vector<256x128xf32>
    %65 = vector.extract_strided_slice %42 {offsets = [1, 0, 0], sizes = [16, 16, 128], strides = [1, 1, 1]} : vector<18x18x128xf32> to vector<16x16x128xf32>
    %66 = vector.shape_cast %65 : vector<16x16x128xf32> to vector<256x128xf32>
    %67 = arith.truncf %66 : vector<256x128xf32> to vector<256x128xbf16>
    %c3 = arith.constant 3 : index
    %c0_29 = arith.constant 0 : index
    %c0_30 = arith.constant 0 : index
    %68 = vector.load %arg4[%c3, %c0_29, %c0_30] : memref<9x128x128xbf16, #tpu.memory_space<vmem>>, vector<1x128x128xbf16>
    %69 = vector.shape_cast %68 : vector<1x128x128xbf16> to vector<128x128xbf16>
    %cst_31 = arith.constant dense<0.000000e+00> : vector<256x128xf32>
    %70 = tpu.matmul %67, %69, %cst_31 {dimension_numbers = #tpu.dot_dimension_numbers<[1], [0], [0], [1], [0, 0, 1, 1], [], []>} : vector<256x128xbf16>, vector<128x128xbf16>, vector<256x128xf32> -> vector<256x128xf32>
    %71 = arith.addf %64, %70 : vector<256x128xf32>
    %72 = vector.extract_strided_slice %42 {offsets = [1, 1, 0], sizes = [16, 16, 128], strides = [1, 1, 1]} : vector<18x18x128xf32> to vector<16x16x128xf32>
    %73 = vector.shape_cast %72 : vector<16x16x128xf32> to vector<256x128xf32>
    %74 = arith.truncf %73 : vector<256x128xf32> to vector<256x128xbf16>
    %c4 = arith.constant 4 : index
    %c0_32 = arith.constant 0 : index
    %c0_33 = arith.constant 0 : index
    %75 = vector.load %arg4[%c4, %c0_32, %c0_33] : memref<9x128x128xbf16, #tpu.memory_space<vmem>>, vector<1x128x128xbf16>
    %76 = vector.shape_cast %75 : vector<1x128x128xbf16> to vector<128x128xbf16>
    %cst_34 = arith.constant dense<0.000000e+00> : vector<256x128xf32>
    %77 = tpu.matmul %74, %76, %cst_34 {dimension_numbers = #tpu.dot_dimension_numbers<[1], [0], [0], [1], [0, 0, 1, 1], [], []>} : vector<256x128xbf16>, vector<128x128xbf16>, vector<256x128xf32> -> vector<256x128xf32>
    %78 = arith.addf %71, %77 : vector<256x128xf32>
    %79 = vector.extract_strided_slice %42 {offsets = [1, 2, 0], sizes = [16, 16, 128], strides = [1, 1, 1]} : vector<18x18x128xf32> to vector<16x16x128xf32>
    %80 = vector.shape_cast %79 : vector<16x16x128xf32> to vector<256x128xf32>
    %81 = arith.truncf %80 : vector<256x128xf32> to vector<256x128xbf16>
    %c5 = arith.constant 5 : index
    %c0_35 = arith.constant 0 : index
    %c0_36 = arith.constant 0 : index
    %82 = vector.load %arg4[%c5, %c0_35, %c0_36] : memref<9x128x128xbf16, #tpu.memory_space<vmem>>, vector<1x128x128xbf16>
    %83 = vector.shape_cast %82 : vector<1x128x128xbf16> to vector<128x128xbf16>
    %cst_37 = arith.constant dense<0.000000e+00> : vector<256x128xf32>
    %84 = tpu.matmul %81, %83, %cst_37 {dimension_numbers = #tpu.dot_dimension_numbers<[1], [0], [0], [1], [0, 0, 1, 1], [], []>} : vector<256x128xbf16>, vector<128x128xbf16>, vector<256x128xf32> -> vector<256x128xf32>
    %85 = arith.addf %78, %84 : vector<256x128xf32>
    %86 = vector.extract_strided_slice %42 {offsets = [2, 0, 0], sizes = [16, 16, 128], strides = [1, 1, 1]} : vector<18x18x128xf32> to vector<16x16x128xf32>
    %87 = vector.shape_cast %86 : vector<16x16x128xf32> to vector<256x128xf32>
    %88 = arith.truncf %87 : vector<256x128xf32> to vector<256x128xbf16>
    %c6 = arith.constant 6 : index
    %c0_38 = arith.constant 0 : index
    %c0_39 = arith.constant 0 : index
    %89 = vector.load %arg4[%c6, %c0_38, %c0_39] : memref<9x128x128xbf16, #tpu.memory_space<vmem>>, vector<1x128x128xbf16>
    %90 = vector.shape_cast %89 : vector<1x128x128xbf16> to vector<128x128xbf16>
    %cst_40 = arith.constant dense<0.000000e+00> : vector<256x128xf32>
    %91 = tpu.matmul %88, %90, %cst_40 {dimension_numbers = #tpu.dot_dimension_numbers<[1], [0], [0], [1], [0, 0, 1, 1], [], []>} : vector<256x128xbf16>, vector<128x128xbf16>, vector<256x128xf32> -> vector<256x128xf32>
    %92 = arith.addf %85, %91 : vector<256x128xf32>
    %93 = vector.extract_strided_slice %42 {offsets = [2, 1, 0], sizes = [16, 16, 128], strides = [1, 1, 1]} : vector<18x18x128xf32> to vector<16x16x128xf32>
    %94 = vector.shape_cast %93 : vector<16x16x128xf32> to vector<256x128xf32>
    %95 = arith.truncf %94 : vector<256x128xf32> to vector<256x128xbf16>
    %c7 = arith.constant 7 : index
    %c0_41 = arith.constant 0 : index
    %c0_42 = arith.constant 0 : index
    %96 = vector.load %arg4[%c7, %c0_41, %c0_42] : memref<9x128x128xbf16, #tpu.memory_space<vmem>>, vector<1x128x128xbf16>
    %97 = vector.shape_cast %96 : vector<1x128x128xbf16> to vector<128x128xbf16>
    %cst_43 = arith.constant dense<0.000000e+00> : vector<256x128xf32>
    %98 = tpu.matmul %95, %97, %cst_43 {dimension_numbers = #tpu.dot_dimension_numbers<[1], [0], [0], [1], [0, 0, 1, 1], [], []>} : vector<256x128xbf16>, vector<128x128xbf16>, vector<256x128xf32> -> vector<256x128xf32>
    %99 = arith.addf %92, %98 : vector<256x128xf32>
    %100 = vector.extract_strided_slice %42 {offsets = [2, 2, 0], sizes = [16, 16, 128], strides = [1, 1, 1]} : vector<18x18x128xf32> to vector<16x16x128xf32>
    %101 = vector.shape_cast %100 : vector<16x16x128xf32> to vector<256x128xf32>
    %102 = arith.truncf %101 : vector<256x128xf32> to vector<256x128xbf16>
    %c8 = arith.constant 8 : index
    %c0_44 = arith.constant 0 : index
    %c0_45 = arith.constant 0 : index
    %103 = vector.load %arg4[%c8, %c0_44, %c0_45] : memref<9x128x128xbf16, #tpu.memory_space<vmem>>, vector<1x128x128xbf16>
    %104 = vector.shape_cast %103 : vector<1x128x128xbf16> to vector<128x128xbf16>
    %cst_46 = arith.constant dense<0.000000e+00> : vector<256x128xf32>
    %105 = tpu.matmul %102, %104, %cst_46 {dimension_numbers = #tpu.dot_dimension_numbers<[1], [0], [0], [1], [0, 0, 1, 1], [], []>} : vector<256x128xbf16>, vector<128x128xbf16>, vector<256x128xf32> -> vector<256x128xf32>
    %106 = arith.addf %99, %105 : vector<256x128xf32>
    %107 = vector.shape_cast %106 : vector<256x128xf32> to vector<1x16x16x128xf32>
    %c0_47 = arith.constant 0 : index
    %c0_48 = arith.constant 0 : index
    %c0_49 = arith.constant 0 : index
    %c0_50 = arith.constant 0 : index
    %108 = vector.load %arg5[%c0_47, %c0_48, %c0_49, %c0_50] : memref<1x16x16x128xf32, #tpu.memory_space<vmem>>, vector<1x16x16x128xf32>
    tpu.vector_store %arg5[%c0_47, %c0_48, %c0_49, %c0_50], %107 {strides = array<i32>} : memref<1x16x16x128xf32, #tpu.memory_space<vmem>>, vector<1x16x16x128xf32>,
    %cst_51 = arith.constant dense<0.000000e+00> : vector<128xf32>
    %109 = vector.multi_reduction <add>, %106, %cst_51 [0] : vector<256x128xf32> to vector<128xf32>
    %110 = vector.shape_cast %109 : vector<128xf32> to vector<1x128xf32>
    %111 = arith.mulf %106, %106 : vector<256x128xf32>
    %cst_52 = arith.constant dense<0.000000e+00> : vector<128xf32>
    %112 = vector.multi_reduction <add>, %111, %cst_52 [0] : vector<256x128xf32> to vector<128xf32>
    %113 = vector.shape_cast %112 : vector<128xf32> to vector<1x128xf32>
    %c0_53 = arith.constant 0 : index
    %c0_54 = arith.constant 0 : index
    %114 = vector.load %arg6[%c0_53, %c0_54] : memref<2x128xf32, #tpu.memory_space<vmem>>, vector<2x128xf32>
    %115 = tpu.concatenate %110, %113 in 0 : vector<1x128xf32>, vector<1x128xf32> -> vector<2x128xf32>
    %116 = arith.addf %114, %115 : vector<2x128xf32>
    %c0_55 = arith.constant 0 : index
    %c0_56 = arith.constant 0 : index
    %117 = vector.load %arg6[%c0_55, %c0_56] : memref<2x128xf32, #tpu.memory_space<vmem>>, vector<2x128xf32>
    tpu.vector_store %arg6[%c0_55, %c0_56], %116 {strides = array<i32>} : memref<2x128xf32, #tpu.memory_space<vmem>>, vector<2x128xf32>,
    return
  }
  func.func @transform_0(%arg0: i32) -> (i32, i32, i32, i32) {
    %c0_i32 = arith.constant 0 : i32
    %c0_i32_0 = arith.constant 0 : i32
    %c0_i32_1 = arith.constant 0 : i32
    %c0_i32_2 = arith.constant 0 : i32
    return %arg0, %c0_i32, %c0_i32_0, %c0_i32_1 : i32, i32, i32, i32
  }
  func.func @transform_1(%arg0: i32) -> (i32, i32) {
    %c0_i32 = arith.constant 0 : i32
    %c0_i32_0 = arith.constant 0 : i32
    %c0_i32_1 = arith.constant 0 : i32
    return %c0_i32, %c0_i32_0 : i32, i32
  }
  func.func @transform_2(%arg0: i32) -> (i32, i32) {
    %c0_i32 = arith.constant 0 : i32
    %c0_i32_0 = arith.constant 0 : i32
    %c0_i32_1 = arith.constant 0 : i32
    return %c0_i32, %c0_i32_0 : i32, i32
  }
  func.func @transform_3(%arg0: i32) -> (i32, i32, i32) {
    %c0_i32 = arith.constant 0 : i32
    %c0_i32_0 = arith.constant 0 : i32
    %c0_i32_1 = arith.constant 0 : i32
    %c0_i32_2 = arith.constant 0 : i32
    return %c0_i32, %c0_i32_0, %c0_i32_1 : i32, i32, i32
  }
  func.func @transform_4(%arg0: i32) -> (i32, i32, i32, i32) {
    %c0_i32 = arith.constant 0 : i32
    %c0_i32_0 = arith.constant 0 : i32
    %c0_i32_1 = arith.constant 0 : i32
    %c0_i32_2 = arith.constant 0 : i32
    return %arg0, %c0_i32, %c0_i32_0, %c0_i32_1 : i32, i32, i32, i32
  }
  func.func @transform_5(%arg0: i32) -> (i32, i32) {
    %c0_i32 = arith.constant 0 : i32
    %c0_i32_0 = arith.constant 0 : i32
    %c0_i32_1 = arith.constant 0 : i32
    return %c0_i32, %c0_i32_0 : i32, i32
  }
}

module attributes {stable_mosaic.version = 11 : i64} {
  func.func @_conv2_kernel(%arg0: i32, %arg1: memref<1x18x18x128xf32, #tpu.memory_space<vmem>>, %arg2: memref<1x128xf32, #tpu.memory_space<vmem>>, %arg3: memref<1x128xf32, #tpu.memory_space<vmem>>, %arg4: memref<9x128x128xbf16, #tpu.memory_space<vmem>>, %arg5: memref<1x16x16x128xf32, #tpu.memory_space<vmem>>, %arg6: memref<1x128xf32, #tpu.memory_space<vmem>>, %arg7: memref<1x128xf32, #tpu.memory_space<vmem>>, %arg8: memref<1x16x16x128xf32, #tpu.memory_space<vmem>>) attributes {dimension_semantics = [#tpu.dimension_semantics<parallel>], iteration_bounds = array<i64: 2>, scalar_prefetch = 0 : i64, scratch_operands = 0 : i64, tpu.core_type = #tpu.core_type<tc>, window_params = [{transform_indices = @transform_0, window_bounds = array<i64: 1, 18, 18, 128>}, {pipeline_mode = #tpu.pipeline_mode<synchronous>, transform_indices = @transform_1, window_bounds = array<i64: 1, 128>}, {pipeline_mode = #tpu.pipeline_mode<synchronous>, transform_indices = @transform_2, window_bounds = array<i64: 1, 128>}, {pipeline_mode = #tpu.pipeline_mode<synchronous>, transform_indices = @transform_3, window_bounds = array<i64: 9, 128, 128>}, {transform_indices = @transform_4, window_bounds = array<i64: 1, 16, 16, 128>}, {pipeline_mode = #tpu.pipeline_mode<synchronous>, transform_indices = @transform_5, window_bounds = array<i64: 1, 128>}, {pipeline_mode = #tpu.pipeline_mode<synchronous>, transform_indices = @transform_6, window_bounds = array<i64: 1, 128>}, {transform_indices = @transform_7, window_bounds = array<i64: 1, 16, 16, 128>}]} {
    %c1_i32 = arith.constant 1 : i32
    %c0_i32 = arith.constant 0 : i32
    %0 = arith.cmpi eq, %c1_i32, %c0_i32 : i32
    %c1_i32_0 = arith.constant 1 : i32
    %1 = arith.select %0, %c1_i32_0, %c1_i32 : i32
    %2 = arith.remsi %arg0, %1 : i32
    %c0_i32_1 = arith.constant 0 : i32
    %3 = arith.cmpi ne, %2, %c0_i32_1 : i32
    %c0_i32_2 = arith.constant 0 : i32
    %4 = arith.cmpi slt, %2, %c0_i32_2 : i32
    %c0_i32_3 = arith.constant 0 : i32
    %5 = arith.cmpi slt, %1, %c0_i32_3 : i32
    %6 = arith.xori %4, %5 : i1
    %7 = arith.andi %6, %3 : i1
    %8 = arith.addi %2, %1 : i32
    %9 = arith.select %7, %8, %2 : i32
    %c16_i32 = arith.constant 16 : i32
    %10 = arith.muli %9, %c16_i32 : i32
    %c0 = arith.constant 0 : index
    %c0_4 = arith.constant 0 : index
    %c0_5 = arith.constant 0 : index
    %c0_6 = arith.constant 0 : index
    %11 = vector.load %arg1[%c0, %c0_4, %c0_5, %c0_6] : memref<1x18x18x128xf32, #tpu.memory_space<vmem>>, vector<1x18x18x128xf32>
    %12 = vector.shape_cast %11 : vector<1x18x18x128xf32> to vector<18x18x128xf32>
    %c0_7 = arith.constant 0 : index
    %c0_8 = arith.constant 0 : index
    %13 = vector.load %arg2[%c0_7, %c0_8] : memref<1x128xf32, #tpu.memory_space<vmem>>, vector<1x128xf32>
    %c0_9 = arith.constant 0 : index
    %c0_10 = arith.constant 0 : index
    %14 = vector.load %arg3[%c0_9, %c0_10] : memref<1x128xf32, #tpu.memory_space<vmem>>, vector<1x128xf32>
    %15 = vector.shape_cast %13 : vector<1x128xf32> to vector<1x1x128xf32>
    %16 = vector.broadcast %15 : vector<1x1x128xf32> to vector<18x18x128xf32>
    %17 = arith.mulf %12, %16 : vector<18x18x128xf32>
    %18 = vector.shape_cast %14 : vector<1x128xf32> to vector<1x1x128xf32>
    %19 = vector.broadcast %18 : vector<1x1x128xf32> to vector<18x18x128xf32>
    %20 = arith.addf %17, %19 : vector<18x18x128xf32>
    %cst = arith.constant 0.000000e+00 : f32
    %21 = vector.broadcast %cst : f32 to vector<18x18x128xf32>
    %22 = arith.maximumf %20, %21 : vector<18x18x128xf32>
    %23 = tpu.iota {dimensions = array<i32: 0>} : vector<18x18x128xi32>
    %24 = vector.broadcast %10 : i32 to vector<18x18x128xi32>
    %25 = arith.addi %23, %24 : vector<18x18x128xi32>
    %26 = tpu.iota {dimensions = array<i32: 1>} : vector<18x18x128xi32>
    %c1_i32_11 = arith.constant 1 : i32
    %27 = vector.broadcast %c1_i32_11 : i32 to vector<18x18x128xi32>
    %28 = arith.cmpi sge, %25, %27 : vector<18x18x128xi32>
    %c16_i32_12 = arith.constant 16 : i32
    %29 = vector.broadcast %c16_i32_12 : i32 to vector<18x18x128xi32>
    %30 = arith.cmpi sle, %25, %29 : vector<18x18x128xi32>
    %31 = arith.andi %28, %30 : vector<18x18x128xi1>
    %c1_i32_13 = arith.constant 1 : i32
    %32 = vector.broadcast %c1_i32_13 : i32 to vector<18x18x128xi32>
    %33 = arith.cmpi sge, %26, %32 : vector<18x18x128xi32>
    %34 = arith.andi %31, %33 : vector<18x18x128xi1>
    %c16_i32_14 = arith.constant 16 : i32
    %35 = vector.broadcast %c16_i32_14 : i32 to vector<18x18x128xi32>
    %36 = arith.cmpi sle, %26, %35 : vector<18x18x128xi32>
    %37 = arith.andi %34, %36 : vector<18x18x128xi1>
    %cst_15 = arith.constant 0.000000e+00 : f32
    %38 = vector.broadcast %cst_15 : f32 to vector<18x18x128xf32>
    %39 = arith.select %37, %22, %38 : vector<18x18x128xi1>, vector<18x18x128xf32>
    %cst_16 = arith.constant 0.000000e+00 : f32
    %40 = vector.broadcast %cst_16 : f32 to vector<256x128xf32>
    %41 = vector.extract_strided_slice %39 {offsets = [0, 0, 0], sizes = [16, 16, 128], strides = [1, 1, 1]} : vector<18x18x128xf32> to vector<16x16x128xf32>
    %42 = vector.shape_cast %41 : vector<16x16x128xf32> to vector<256x128xf32>
    %43 = arith.truncf %42 : vector<256x128xf32> to vector<256x128xbf16>
    %c0_17 = arith.constant 0 : index
    %c0_18 = arith.constant 0 : index
    %c0_19 = arith.constant 0 : index
    %44 = vector.load %arg4[%c0_17, %c0_18, %c0_19] : memref<9x128x128xbf16, #tpu.memory_space<vmem>>, vector<1x128x128xbf16>
    %45 = vector.shape_cast %44 : vector<1x128x128xbf16> to vector<128x128xbf16>
    %cst_20 = arith.constant dense<0.000000e+00> : vector<256x128xf32>
    %46 = tpu.matmul %43, %45, %cst_20 {dimension_numbers = #tpu.dot_dimension_numbers<[1], [0], [0], [1], [0, 0, 1, 1], [], []>} : vector<256x128xbf16>, vector<128x128xbf16>, vector<256x128xf32> -> vector<256x128xf32>
    %47 = arith.addf %40, %46 : vector<256x128xf32>
    %48 = vector.extract_strided_slice %39 {offsets = [0, 1, 0], sizes = [16, 16, 128], strides = [1, 1, 1]} : vector<18x18x128xf32> to vector<16x16x128xf32>
    %49 = vector.shape_cast %48 : vector<16x16x128xf32> to vector<256x128xf32>
    %50 = arith.truncf %49 : vector<256x128xf32> to vector<256x128xbf16>
    %c1 = arith.constant 1 : index
    %c0_21 = arith.constant 0 : index
    %c0_22 = arith.constant 0 : index
    %51 = vector.load %arg4[%c1, %c0_21, %c0_22] : memref<9x128x128xbf16, #tpu.memory_space<vmem>>, vector<1x128x128xbf16>
    %52 = vector.shape_cast %51 : vector<1x128x128xbf16> to vector<128x128xbf16>
    %cst_23 = arith.constant dense<0.000000e+00> : vector<256x128xf32>
    %53 = tpu.matmul %50, %52, %cst_23 {dimension_numbers = #tpu.dot_dimension_numbers<[1], [0], [0], [1], [0, 0, 1, 1], [], []>} : vector<256x128xbf16>, vector<128x128xbf16>, vector<256x128xf32> -> vector<256x128xf32>
    %54 = arith.addf %47, %53 : vector<256x128xf32>
    %55 = vector.extract_strided_slice %39 {offsets = [0, 2, 0], sizes = [16, 16, 128], strides = [1, 1, 1]} : vector<18x18x128xf32> to vector<16x16x128xf32>
    %56 = vector.shape_cast %55 : vector<16x16x128xf32> to vector<256x128xf32>
    %57 = arith.truncf %56 : vector<256x128xf32> to vector<256x128xbf16>
    %c2 = arith.constant 2 : index
    %c0_24 = arith.constant 0 : index
    %c0_25 = arith.constant 0 : index
    %58 = vector.load %arg4[%c2, %c0_24, %c0_25] : memref<9x128x128xbf16, #tpu.memory_space<vmem>>, vector<1x128x128xbf16>
    %59 = vector.shape_cast %58 : vector<1x128x128xbf16> to vector<128x128xbf16>
    %cst_26 = arith.constant dense<0.000000e+00> : vector<256x128xf32>
    %60 = tpu.matmul %57, %59, %cst_26 {dimension_numbers = #tpu.dot_dimension_numbers<[1], [0], [0], [1], [0, 0, 1, 1], [], []>} : vector<256x128xbf16>, vector<128x128xbf16>, vector<256x128xf32> -> vector<256x128xf32>
    %61 = arith.addf %54, %60 : vector<256x128xf32>
    %62 = vector.extract_strided_slice %39 {offsets = [1, 0, 0], sizes = [16, 16, 128], strides = [1, 1, 1]} : vector<18x18x128xf32> to vector<16x16x128xf32>
    %63 = vector.shape_cast %62 : vector<16x16x128xf32> to vector<256x128xf32>
    %64 = arith.truncf %63 : vector<256x128xf32> to vector<256x128xbf16>
    %c3 = arith.constant 3 : index
    %c0_27 = arith.constant 0 : index
    %c0_28 = arith.constant 0 : index
    %65 = vector.load %arg4[%c3, %c0_27, %c0_28] : memref<9x128x128xbf16, #tpu.memory_space<vmem>>, vector<1x128x128xbf16>
    %66 = vector.shape_cast %65 : vector<1x128x128xbf16> to vector<128x128xbf16>
    %cst_29 = arith.constant dense<0.000000e+00> : vector<256x128xf32>
    %67 = tpu.matmul %64, %66, %cst_29 {dimension_numbers = #tpu.dot_dimension_numbers<[1], [0], [0], [1], [0, 0, 1, 1], [], []>} : vector<256x128xbf16>, vector<128x128xbf16>, vector<256x128xf32> -> vector<256x128xf32>
    %68 = arith.addf %61, %67 : vector<256x128xf32>
    %69 = vector.extract_strided_slice %39 {offsets = [1, 1, 0], sizes = [16, 16, 128], strides = [1, 1, 1]} : vector<18x18x128xf32> to vector<16x16x128xf32>
    %70 = vector.shape_cast %69 : vector<16x16x128xf32> to vector<256x128xf32>
    %71 = arith.truncf %70 : vector<256x128xf32> to vector<256x128xbf16>
    %c4 = arith.constant 4 : index
    %c0_30 = arith.constant 0 : index
    %c0_31 = arith.constant 0 : index
    %72 = vector.load %arg4[%c4, %c0_30, %c0_31] : memref<9x128x128xbf16, #tpu.memory_space<vmem>>, vector<1x128x128xbf16>
    %73 = vector.shape_cast %72 : vector<1x128x128xbf16> to vector<128x128xbf16>
    %cst_32 = arith.constant dense<0.000000e+00> : vector<256x128xf32>
    %74 = tpu.matmul %71, %73, %cst_32 {dimension_numbers = #tpu.dot_dimension_numbers<[1], [0], [0], [1], [0, 0, 1, 1], [], []>} : vector<256x128xbf16>, vector<128x128xbf16>, vector<256x128xf32> -> vector<256x128xf32>
    %75 = arith.addf %68, %74 : vector<256x128xf32>
    %76 = vector.extract_strided_slice %39 {offsets = [1, 2, 0], sizes = [16, 16, 128], strides = [1, 1, 1]} : vector<18x18x128xf32> to vector<16x16x128xf32>
    %77 = vector.shape_cast %76 : vector<16x16x128xf32> to vector<256x128xf32>
    %78 = arith.truncf %77 : vector<256x128xf32> to vector<256x128xbf16>
    %c5 = arith.constant 5 : index
    %c0_33 = arith.constant 0 : index
    %c0_34 = arith.constant 0 : index
    %79 = vector.load %arg4[%c5, %c0_33, %c0_34] : memref<9x128x128xbf16, #tpu.memory_space<vmem>>, vector<1x128x128xbf16>
    %80 = vector.shape_cast %79 : vector<1x128x128xbf16> to vector<128x128xbf16>
    %cst_35 = arith.constant dense<0.000000e+00> : vector<256x128xf32>
    %81 = tpu.matmul %78, %80, %cst_35 {dimension_numbers = #tpu.dot_dimension_numbers<[1], [0], [0], [1], [0, 0, 1, 1], [], []>} : vector<256x128xbf16>, vector<128x128xbf16>, vector<256x128xf32> -> vector<256x128xf32>
    %82 = arith.addf %75, %81 : vector<256x128xf32>
    %83 = vector.extract_strided_slice %39 {offsets = [2, 0, 0], sizes = [16, 16, 128], strides = [1, 1, 1]} : vector<18x18x128xf32> to vector<16x16x128xf32>
    %84 = vector.shape_cast %83 : vector<16x16x128xf32> to vector<256x128xf32>
    %85 = arith.truncf %84 : vector<256x128xf32> to vector<256x128xbf16>
    %c6 = arith.constant 6 : index
    %c0_36 = arith.constant 0 : index
    %c0_37 = arith.constant 0 : index
    %86 = vector.load %arg4[%c6, %c0_36, %c0_37] : memref<9x128x128xbf16, #tpu.memory_space<vmem>>, vector<1x128x128xbf16>
    %87 = vector.shape_cast %86 : vector<1x128x128xbf16> to vector<128x128xbf16>
    %cst_38 = arith.constant dense<0.000000e+00> : vector<256x128xf32>
    %88 = tpu.matmul %85, %87, %cst_38 {dimension_numbers = #tpu.dot_dimension_numbers<[1], [0], [0], [1], [0, 0, 1, 1], [], []>} : vector<256x128xbf16>, vector<128x128xbf16>, vector<256x128xf32> -> vector<256x128xf32>
    %89 = arith.addf %82, %88 : vector<256x128xf32>
    %90 = vector.extract_strided_slice %39 {offsets = [2, 1, 0], sizes = [16, 16, 128], strides = [1, 1, 1]} : vector<18x18x128xf32> to vector<16x16x128xf32>
    %91 = vector.shape_cast %90 : vector<16x16x128xf32> to vector<256x128xf32>
    %92 = arith.truncf %91 : vector<256x128xf32> to vector<256x128xbf16>
    %c7 = arith.constant 7 : index
    %c0_39 = arith.constant 0 : index
    %c0_40 = arith.constant 0 : index
    %93 = vector.load %arg4[%c7, %c0_39, %c0_40] : memref<9x128x128xbf16, #tpu.memory_space<vmem>>, vector<1x128x128xbf16>
    %94 = vector.shape_cast %93 : vector<1x128x128xbf16> to vector<128x128xbf16>
    %cst_41 = arith.constant dense<0.000000e+00> : vector<256x128xf32>
    %95 = tpu.matmul %92, %94, %cst_41 {dimension_numbers = #tpu.dot_dimension_numbers<[1], [0], [0], [1], [0, 0, 1, 1], [], []>} : vector<256x128xbf16>, vector<128x128xbf16>, vector<256x128xf32> -> vector<256x128xf32>
    %96 = arith.addf %89, %95 : vector<256x128xf32>
    %97 = vector.extract_strided_slice %39 {offsets = [2, 2, 0], sizes = [16, 16, 128], strides = [1, 1, 1]} : vector<18x18x128xf32> to vector<16x16x128xf32>
    %98 = vector.shape_cast %97 : vector<16x16x128xf32> to vector<256x128xf32>
    %99 = arith.truncf %98 : vector<256x128xf32> to vector<256x128xbf16>
    %c8 = arith.constant 8 : index
    %c0_42 = arith.constant 0 : index
    %c0_43 = arith.constant 0 : index
    %100 = vector.load %arg4[%c8, %c0_42, %c0_43] : memref<9x128x128xbf16, #tpu.memory_space<vmem>>, vector<1x128x128xbf16>
    %101 = vector.shape_cast %100 : vector<1x128x128xbf16> to vector<128x128xbf16>
    %cst_44 = arith.constant dense<0.000000e+00> : vector<256x128xf32>
    %102 = tpu.matmul %99, %101, %cst_44 {dimension_numbers = #tpu.dot_dimension_numbers<[1], [0], [0], [1], [0, 0, 1, 1], [], []>} : vector<256x128xbf16>, vector<128x128xbf16>, vector<256x128xf32> -> vector<256x128xf32>
    %103 = arith.addf %96, %102 : vector<256x128xf32>
    %c0_45 = arith.constant 0 : index
    %c0_46 = arith.constant 0 : index
    %c0_47 = arith.constant 0 : index
    %c0_48 = arith.constant 0 : index
    %104 = vector.load %arg5[%c0_45, %c0_46, %c0_47, %c0_48] : memref<1x16x16x128xf32, #tpu.memory_space<vmem>>, vector<1x16x16x128xf32>
    %105 = vector.shape_cast %104 : vector<1x16x16x128xf32> to vector<16x16x128xf32>
    %106 = vector.shape_cast %105 : vector<16x16x128xf32> to vector<256x128xf32>
    %107 = arith.addf %103, %106 : vector<256x128xf32>
    %108 = vector.shape_cast %107 : vector<256x128xf32> to vector<1x16x16x128xf32>
    %c0_49 = arith.constant 0 : index
    %c0_50 = arith.constant 0 : index
    %c0_51 = arith.constant 0 : index
    %c0_52 = arith.constant 0 : index
    %109 = vector.load %arg8[%c0_49, %c0_50, %c0_51, %c0_52] : memref<1x16x16x128xf32, #tpu.memory_space<vmem>>, vector<1x16x16x128xf32>
    tpu.vector_store %arg8[%c0_49, %c0_50, %c0_51, %c0_52], %108 {strides = array<i32>} : memref<1x16x16x128xf32, #tpu.memory_space<vmem>>, vector<1x16x16x128xf32>,
    return
  }
  func.func @transform_0(%arg0: i32) -> (i32, i32, i32, i32) {
    %c0_i32 = arith.constant 0 : i32
    %c0_i32_0 = arith.constant 0 : i32
    %c0_i32_1 = arith.constant 0 : i32
    %c0_i32_2 = arith.constant 0 : i32
    return %arg0, %c0_i32, %c0_i32_0, %c0_i32_1 : i32, i32, i32, i32
  }
  func.func @transform_1(%arg0: i32) -> (i32, i32) {
    %c0_i32 = arith.constant 0 : i32
    %c0_i32_0 = arith.constant 0 : i32
    %c0_i32_1 = arith.constant 0 : i32
    return %c0_i32, %c0_i32_0 : i32, i32
  }
  func.func @transform_2(%arg0: i32) -> (i32, i32) {
    %c0_i32 = arith.constant 0 : i32
    %c0_i32_0 = arith.constant 0 : i32
    %c0_i32_1 = arith.constant 0 : i32
    return %c0_i32, %c0_i32_0 : i32, i32
  }
  func.func @transform_3(%arg0: i32) -> (i32, i32, i32) {
    %c0_i32 = arith.constant 0 : i32
    %c0_i32_0 = arith.constant 0 : i32
    %c0_i32_1 = arith.constant 0 : i32
    %c0_i32_2 = arith.constant 0 : i32
    return %c0_i32, %c0_i32_0, %c0_i32_1 : i32, i32, i32
  }
  func.func @transform_4(%arg0: i32) -> (i32, i32, i32, i32) {
    %c0_i32 = arith.constant 0 : i32
    %c0_i32_0 = arith.constant 0 : i32
    %c0_i32_1 = arith.constant 0 : i32
    %c0_i32_2 = arith.constant 0 : i32
    return %arg0, %c0_i32, %c0_i32_0, %c0_i32_1 : i32, i32, i32, i32
  }
  func.func @transform_5(%arg0: i32) -> (i32, i32) {
    %c0_i32 = arith.constant 0 : i32
    %c0_i32_0 = arith.constant 0 : i32
    %c0_i32_1 = arith.constant 0 : i32
    return %c0_i32, %c0_i32_0 : i32, i32
  }
  func.func @transform_6(%arg0: i32) -> (i32, i32) {
    %c0_i32 = arith.constant 0 : i32
    %c0_i32_0 = arith.constant 0 : i32
    %c0_i32_1 = arith.constant 0 : i32
    return %c0_i32, %c0_i32_0 : i32, i32
  }
  func.func @transform_7(%arg0: i32) -> (i32, i32, i32, i32) {
    %c0_i32 = arith.constant 0 : i32
    %c0_i32_0 = arith.constant 0 : i32
    %c0_i32_1 = arith.constant 0 : i32
    %c0_i32_2 = arith.constant 0 : i32
    return %arg0, %c0_i32, %c0_i32_0, %c0_i32_1 : i32, i32, i32, i32
  }
}

</mosaic_0001>

<bundles_post_ra>
// kernel: preact_block_forward.3
= control target key start
LH: loop header
LB: loop body
LE: loop exit
PB: predicated region body
PF: predicated region fallthrough
CT: control target
= control target key end

     0   :  { %s317_s6 = smov 0   ;;  %s374_s0 = inlined_call_operand.vmem [shape: f32[512,128], index: 0, kind: input, shape index: {}]   ;;  %s375_s1 = inlined_call_operand.vmem [shape: f32[2,128], index: 1, kind: output, shape index: {}]  }
   0x1 LB: > { %s280_s7 = sadd.s32 4294967295, %s304_s6   ;;  %p283_p0 = scmp.ge.s32.totalorder %s304_s6, 1  ;;  %s304_s6 = sphi %s317_s6, %s11_s6  }
   0x2   : > { %p83_p1 = scmp.lt.s32.totalorder %s304_s6, 3 }
   0x4   : > { %p84_p2 = pnand %p283_p0, %p83_p1 }
   0x5   : > { %s284_s8 = sshll.u32 (!%p84_p2), %s280_s7, 5  ;;  %p286_p4 = scmp.ne.s32.totalorder (!%p84_p2), %s280_s7, 0 }
   0x6   : > { %87 = sbr.rel (%p84_p2) target bundleno = 99 (0x63), region = 24  ;;  %p99_p3 = scmp.lt.s32.totalorder (!%p84_p2), %s284_s8, 63 }
   0xb   : > { %s377_s8 = smov (!%p99_p3, %s284_s8), 63  ;;  %107 = sbr.rel (%p286_p4) target bundleno = 18 (0x12), region = 28 }
   0xc   : > { %s285_s9 = sshll.u32 %s377_s8, 3 }
   0xd   : > { %s328_s12 = scalar_lea.vmem %s374_s0, %s285_s9 }
  0x10   : > { %v306_v0 = vmov 0.0  }
  0x11   : > { %108 = vst [vmem:[%s375_s1] sm:$0x3] %v306_v0 }
  0x12 PF: > { %v109_v1 = vld [vmem:[%s328_s12] sm:$0xff]  ;;  %v110_v2 = vld [vmem:[%s328_s12 + $0x8] sm:$0xff]  ;;  %v111_v3 = vld [vmem:[%s328_s12 + $0x10] sm:$0xff]  ;;  %vm248_vm0 = vcmask 1040384  }
  0x13   : > { %v112_v4 = vld [vmem:[%s328_s12 + $0x18] sm:$0xff]  ;;  %v141_v5 = vadd.f32 %v110_v2, %v109_v1  ;;  %v178_v6 = vmul.f32 %v109_v1, %v109_v1  ;;  %v179_v7 = vmul.f32 %v110_v2, %v110_v2  ;;  %v180_v8 = vmul.f32 %v111_v3, %v111_v3  ;;  %v113_v9 = vld [vmem:[%s328_s12 + $0x20] sm:$0xff]  ;;  %v114_v13 = vld [vmem:[%s328_s12 + $0x28] sm:$0xff] }
  0x14   : > { %v181_v11 = vmul.f32 %v112_v4, %v112_v4  ;;  %v182_v15 = vmul.f32 %v113_v9, %v113_v9  ;;  %v115_v17 = vld [vmem:[%s328_s12 + $0x30] sm:$0xff]  ;;  %v183_v19 = vmul.f32 %v114_v13, %v114_v13  ;;  %v116_v21 = vld [vmem:[%s328_s12 + $0x38] sm:$0xff]  ;;  %v117_v25 = vld [vmem:[%s328_s12 + $0x40] sm:$0xff] }
  0x15   : > { %v142_v10 = vadd.f32 %v141_v5, %v111_v3  ;;  %v210_v12 = vadd.f32 %v179_v7, %v178_v6  ;;  %v184_v23 = vmul.f32 %v115_v17, %v115_v17  ;;  %v185_v27 = vmul.f32 %v116_v21, %v116_v21  ;;  %v118_v29 = vld [vmem:[%s328_s12 + $0x48] sm:$0xff]  ;;  %v119_v33 = vld [vmem:[%s328_s12 + $0x50] sm:$0xff]  ;;  %v120_v37 = vld [vmem:[%s328_s12 + $0x58] sm:$0xff] }
  0x16   : > { %v186_v31 = vmul.f32 %v117_v25, %v117_v25  ;;  %v187_v35 = vmul.f32 %v118_v29, %v118_v29  ;;  %v188_v39 = vmul.f32 %v119_v33, %v119_v33  ;;  %v121_v41 = vld [vmem:[%s328_s12 + $0x60] sm:$0xff]  ;;  %v189_v43 = vmul.f32 %v120_v37, %v120_v37  ;;  %v122_v45 = vld [vmem:[%s328_s12 + $0x68] sm:$0xff]  ;;  %v123_v49 = vld [vmem:[%s328_s12 + $0x70] sm:$0xff] }
  0x17   : > { %v143_v14 = vadd.f32 %v142_v10, %v112_v4  ;;  %v211_v16 = vadd.f32 %v210_v12, %v180_v8  ;;  %v190_v47 = vmul.f32 %v121_v41, %v121_v41  ;;  %v191_v51 = vmul.f32 %v122_v45, %v122_v45  ;;  %v124_v53 = vld [vmem:[%s328_s12 + $0x78] sm:$0xff]  ;;  %v125_v57 = vld [vmem:[%s328_s12 + $0x80] sm:$0xff]  ;;  %v126_v61 = vld [vmem:[%s328_s12 + $0x88] sm:$0xff] }
  0x18   : > { %v192_v55 = vmul.f32 %v123_v49, %v123_v49  ;;  %v193_v59 = vmul.f32 %v124_v53, %v124_v53  ;;  %v194_v63 = vmul.f32 %v125_v57, %v125_v57  ;;  %v127_v1 = vld [vmem:[%s328_s12 + $0x90] sm:$0xff]  ;;  %v195_v3 = vmul.f32 %v126_v61, %v126_v61  ;;  %v128_v5 = vld [vmem:[%s328_s12 + $0x98] sm:$0xff] }
  0x19   : > { %v144_v18 = vadd.f32 %v143_v14, %v113_v9  ;;  %v212_v20 = vadd.f32 %v211_v16, %v181_v11  ;;  %v196_v7 = vmul.f32 %v127_v1, %v127_v1  ;;  %v129_v9 = vld [vmem:[%s328_s12 + $0xa0] sm:$0xff]  ;;  %v197_v11 = vmul.f32 %v128_v5, %v128_v5 }
  0x1b   : > { %v145_v22 = vadd.f32 %v144_v18, %v114_v13  ;;  %v213_v24 = vadd.f32 %v212_v20, %v182_v15  ;;  %v130_v13 = vld [vmem:[%s328_s12 + $0xa8] sm:$0xff]  ;;  %v198_v15 = vmul.f32 %v129_v9, %v129_v9 }
  0x1d   : > { %v146_v26 = vadd.f32 %v145_v22, %v115_v17  ;;  %v214_v28 = vadd.f32 %v213_v24, %v183_v19  ;;  %v131_v17 = vld [vmem:[%s328_s12 + $0xb0] sm:$0xff]  ;;  %v199_v19 = vmul.f32 %v130_v13, %v130_v13 }
  0x1f   : > { %v147_v30 = vadd.f32 %v146_v26, %v116_v21  ;;  %v215_v32 = vadd.f32 %v214_v28, %v184_v23  ;;  %v132_v21 = vld [vmem:[%s328_s12 + $0xb8] sm:$0xff]  ;;  %v200_v23 = vmul.f32 %v131_v17, %v131_v17 }
  0x21   : > { %v148_v34 = vadd.f32 %v147_v30, %v117_v25  ;;  %v216_v36 = vadd.f32 %v215_v32, %v185_v27  ;;  %v133_v25 = vld [vmem:[%s328_s12 + $0xc0] sm:$0xff]  ;;  %v201_v27 = vmul.f32 %v132_v21, %v132_v21 }
  0x23   : > { %v149_v38 = vadd.f32 %v148_v34, %v118_v29  ;;  %v217_v40 = vadd.f32 %v216_v36, %v186_v31  ;;  %v134_v29 = vld [vmem:[%s328_s12 + $0xc8] sm:$0xff]  ;;  %v202_v31 = vmul.f32 %v133_v25, %v133_v25 }
  0x25   : > { %v150_v42 = vadd.f32 %v149_v38, %v119_v33  ;;  %v218_v44 = vadd.f32 %v217_v40, %v187_v35  ;;  %v135_v33 = vld [vmem:[%s328_s12 + $0xd0] sm:$0xff]  ;;  %v203_v35 = vmul.f32 %v134_v29, %v134_v29 }
  0x27   : > { %v151_v46 = vadd.f32 %v150_v42, %v120_v37  ;;  %v219_v48 = vadd.f32 %v218_v44, %v188_v39  ;;  %v136_v37 = vld [vmem:[%s328_s12 + $0xd8] sm:$0xff]  ;;  %v204_v39 = vmul.f32 %v135_v33, %v135_v33 }
  0x29   : > { %v152_v50 = vadd.f32 %v151_v46, %v121_v41  ;;  %v220_v52 = vadd.f32 %v219_v48, %v189_v43  ;;  %v137_v41 = vld [vmem:[%s328_s12 + $0xe0] sm:$0xff]  ;;  %v205_v43 = vmul.f32 %v136_v37, %v136_v37 }
  0x2b   : > { %v153_v54 = vadd.f32 %v152_v50, %v122_v45  ;;  %v221_v56 = vadd.f32 %v220_v52, %v190_v47  ;;  %v138_v45 = vld [vmem:[%s328_s12 + $0xe8] sm:$0xff]  ;;  %v206_v47 = vmul.f32 %v137_v41, %v137_v41 }
  0x2d   : > { %v154_v58 = vadd.f32 %v153_v54, %v123_v49  ;;  %v222_v60 = vadd.f32 %v221_v56, %v191_v51  ;;  %v139_v49 = vld [vmem:[%s328_s12 + $0xf0] sm:$0xff]  ;;  %v207_v51 = vmul.f32 %v138_v45, %v138_v45 }
  0x2f   : > { %v155_v62 = vadd.f32 %v154_v58, %v124_v53  ;;  %v223_v0 = vadd.f32 %v222_v60, %v192_v55  ;;  %v140_v53 = vld [vmem:[%s328_s12 + $0xf8] sm:$0xff]  ;;  %v208_v55 = vmul.f32 %v139_v49, %v139_v49 }
  0x30   : > { %v209_v58 = vmul.f32 %v140_v53, %v140_v53 }
  0x31   : > { %v156_v2 = vadd.f32 %v155_v62, %v125_v57  ;;  %v224_v4 = vadd.f32 %v223_v0, %v193_v59 }
  0x33   : > { %v157_v6 = vadd.f32 %v156_v2, %v126_v61  ;;  %v225_v8 = vadd.f32 %v224_v4, %v194_v63 }
  0x35   : > { %v158_v10 = vadd.f32 %v157_v6, %v127_v1  ;;  %v226_v12 = vadd.f32 %v225_v8, %v195_v3 }
  0x37   : > { %v159_v14 = vadd.f32 %v158_v10, %v128_v5  ;;  %v227_v16 = vadd.f32 %v226_v12, %v196_v7 }
  0x39   : > { %v160_v18 = vadd.f32 %v159_v14, %v129_v9  ;;  %v228_v20 = vadd.f32 %v227_v16, %v197_v11  ;;  %v247_v11 = vld [vmem:[%s375_s1] sm:$0x3] }
  0x3b   : > { %v161_v22 = vadd.f32 %v160_v18, %v130_v13  ;;  %v229_v24 = vadd.f32 %v228_v20, %v198_v15 }
  0x3d   : > { %v162_v26 = vadd.f32 %v161_v22, %v131_v17  ;;  %v230_v28 = vadd.f32 %v229_v24, %v199_v19 }
  0x3f   : > { %v163_v30 = vadd.f32 %v162_v26, %v132_v21  ;;  %v231_v32 = vadd.f32 %v230_v28, %v200_v23 }
  0x41   : > { %v164_v34 = vadd.f32 %v163_v30, %v133_v25  ;;  %v232_v36 = vadd.f32 %v231_v32, %v201_v27 }
  0x43   : > { %v165_v38 = vadd.f32 %v164_v34, %v134_v29  ;;  %v233_v40 = vadd.f32 %v232_v36, %v202_v31 }
  0x45   : > { %v166_v42 = vadd.f32 %v165_v38, %v135_v33  ;;  %v234_v44 = vadd.f32 %v233_v40, %v203_v35 }
  0x47   : > { %v167_v46 = vadd.f32 %v166_v42, %v136_v37  ;;  %v235_v48 = vadd.f32 %v234_v44, %v204_v39 }
  0x49   : > { %v168_v50 = vadd.f32 %v167_v46, %v137_v41  ;;  %v236_v52 = vadd.f32 %v235_v48, %v205_v43 }
  0x4b   : > { %v169_v54 = vadd.f32 %v168_v50, %v138_v45  ;;  %v237_v56 = vadd.f32 %v236_v52, %v206_v47 }
  0x4d   : > { %v170_v57 = vadd.f32 %v169_v54, %v139_v49  ;;  %v238_v59 = vadd.f32 %v237_v56, %v207_v51 }
  0x4f   : > { %v171_v60 = vadd.f32 %v170_v57, %v140_v53  ;;  %v239_v61 = vadd.f32 %v238_v59, %v208_v55 }
  0x51   : > { %v172_v62 = vrot.slane %v171_v60, 4  ;;  %v240_v63 = vadd.f32 %v239_v61, %v209_v58 }
  0x53   : > { %v173_v0 = vadd.f32 %v172_v62, %v171_v60  ;;  %v241_v1 = vrot.slane %v240_v63, 4 }
  0x55   : > { %v174_v2 = vrot.slane %v173_v0, 2  ;;  %v242_v3 = vadd.f32 %v241_v1, %v240_v63 }
  0x57   : > { %v175_v4 = vadd.f32 %v174_v2, %v173_v0  ;;  %v243_v5 = vrot.slane %v242_v3, 2 }
  0x59   : > { %v176_v6 = vrot.slane %v175_v4, 1  ;;  %v244_v7 = vadd.f32 %v243_v5, %v242_v3 }
  0x5b   : > { %v177_v8 = vadd.f32 %v176_v6, %v175_v4  ;;  %v245_v9 = vrot.slane %v244_v7, 1 }
  0x5d   : > { %v246_v10 = vadd.f32 %v245_v9, %v244_v7 }
  0x5f   : > { %v249_v12 = vsel %vm248_vm0, %v177_v8, %v246_v10 }
  0x60   : > { %v250_v13 = vadd.f32 %v249_v12, %v247_v11 }
  0x62   : > { %251 = vst [vmem:[%s375_s1] sm:$0x3] %v250_v13 }
  0x63 PF: > { %s11_s6 = sadd.s32 1, %s304_s6  }
  0x64   : > { %p8_p5 = scmp.ge.s32.totalorder %s11_s6, 4  }
  0x66   :  { %10 = sbr.rel (!%p8_p5) target bundleno = 1 (0x1), region = 54 }

// kernel: preact_block_forward.5
= control target key start
LH: loop header
LB: loop body
LE: loop exit
PB: predicated region body
PF: predicated region fallthrough
CT: control target
= control target key end

     0   :  { %s3464_s24 = smov 0   ;;  %s4914_s0 = inlined_call_operand.vmem [shape: f32[2,18,18,128], index: 0, kind: input, shape index: {}]   ;;  %s4915_s1 = inlined_call_operand.vmem [shape: f32[1,128], index: 1, kind: input, shape index: {}]   ;;  %s4916_s2 = inlined_call_operand.vmem [shape: f32[1,128], index: 2, kind: input, shape index: {}]   ;;  %s4917_s3 = inlined_call_operand.vmem [shape: bf16[9,128,128], index: 3, kind: input, shape index: {}]   ;;  %s4918_s4 = inlined_call_operand.vmem [shape: f32[2,16,16,128], index: 4, kind: input, shape index: {}]   ;;  %s4919_s5 = inlined_call_operand.vmem [shape: f32[1,128], index: 5, kind: input, shape index: {}]   ;;  %s4920_s6 = inlined_call_operand.vmem [shape: f32[1,128], index: 6, kind: input, shape index: {}]   ;;  %s4921_s7 = inlined_call_operand.vmem [shape: f32[2,16,16,128], index: 7, kind: output, shape index: {}]  }
   0x1 LB: > { %s2733_s25 = sadd.s32 4294967295, %s3419_s24   ;;  %p2737_p0 = scmp.ge.s32.totalorder %s3419_s24, 1  ;;  %s3419_s24 = sphi %s3464_s24, %s17_s24  }
   0x2   : > { %p247_p1 = scmp.lt.s32.totalorder %s3419_s24, 3 }
   0x4   : > { %p248_p2 = pnand %p2737_p0, %p247_p1 }
   0x6   : > { %251 = sbr.rel (%p248_p2) target bundleno = 752 (0x2f0), region = 48 }
   0xb   : > { %v3316_v0 = vld [vmem:[%s4917_s3 + $0x78] sm:$0xff]  ;;  %p284_p3 = scmp.lt.s32.totalorder %s2733_s25, 1  ;;  %v523_v1 = vlaneseq  ;;  %v3315_v2 = vld [vmem:[%s4917_s3 + $0x70] sm:$0xff]  ;;  %v3486_v4 = vld [vmem:[%s4915_s1] ss:$0 sm:$0xff]  ;;  %v4929_v37 = vmov 0.0  }
   0xc   : > { %3373 = vmatpush.bf16.msra.mxu1 %v3316_v0  ;;  %3374 = vmatpush.bf16.msra.mxu2 %v3316_v0  ;;  %v3314_v5 = vld [vmem:[%s4917_s3 + $0x68] sm:$0xff]  ;;  %v3499_v6 = vld [vmem:[%s4916_s2] ss:$0 sm:$0xff]  ;;  %v680_v38 = vrot.slane %v4929_v37, 1  ;;  %v3312_v39 = vld [vmem:[%s4917_s3 + $0x58] sm:$0xff]  ;;  %vm679_vm2 = vcmask 1046528  }
   0xd   : > { %s5152_s25 = smov (!%p284_p3, %s2733_s25), 1  ;;  %3375 = vmatpush.bf16.msra.mxu3 %v3316_v0  ;;  %873 = vmatpush.bf16.msra.mxu0 %v3316_v0  ;;  %v3480_v3 = vshrl.u32 %v523_v1, 7  ;;  %v3313_v21 = vld [vmem:[%s4917_s3 + $0x60] sm:$0xff]  ;;  %v3311_v57 = vld [vmem:[%s4917_s3 + $0x50] sm:$0xff]  ;;  %vm3422_vm3 = vmmov 1   ;;  %vm1099_vm5 = vcmask 1045504  }
   0xe   : > { %s3397_s28 = smul.u32 432, %s5152_s25  ;;  %v3576_v53 = vpack.c.bf16 %v680_v38, %v680_v38 }
   0xf   : > { %v3505_v10 = vadd.s32 16, %v3480_v3  ;;  %vm527_vm0 = vcmp.ge.s32.totalorder %v3480_v3, 1 }
  0x10   : > { %3376 = vmatpush.bf16.msra.mxu1 %v3315_v2  ;;  %3377 = vmatpush.bf16.msra.mxu2 %v3315_v2  ;;  %s3494_s12 = scalar_lea.vmem %s4914_s0, %s3397_s28  ;;  %4998 = vst [vmem:[#allocation4_spill] sm:$0xff] %v3576_v53  ;;  %vm4131_vm4 = vmpackc.low %vm3422_vm3, %vm527_vm0 }
  0x11   : > { %3378 = vmatpush.bf16.msra.mxu3 %v3315_v2  ;;  %874 = vmatpush.bf16.msra.mxu0 %v3315_v2  ;;  %v311_v7 = vld [vmem:[%s3494_s12 + $0x60] sm:$0xff]  ;;  %v312_v8 = vld [vmem:[%s3494_s12 + $0x68] sm:$0xff]  ;;  %v313_v9 = vld [vmem:[%s3494_s12 + $0x70] sm:$0x3]  ;;  %4996 = vst [vmem:[#allocation2_spill] sm:$0xff] %v3505_v10  ;;  %vm538_vm1 = vcmp.le.s32.totalorder %v3505_v10, 16 }
  0x12   : > { %v370_v11 = vmul.f32 %v3486_v4, %v311_v7  ;;  %v371_v12 = vmul.f32 %v3486_v4, %v312_v8  ;;  %v372_v13 = vmul.f32 %v3486_v4, %v313_v9  ;;  %v323_v14 = vld [vmem:[%s3494_s12 + $0xc0] sm:$0xff]  ;;  %v324_v15 = vld [vmem:[%s3494_s12 + $0xc8] sm:$0xff]  ;;  %v325_v16 = vld [vmem:[%s3494_s12 + $0xd0] sm:$0x3] }
  0x13   : > { %v382_v17 = vmul.f32 %v3486_v4, %v323_v14  ;;  %v383_v18 = vmul.f32 %v3486_v4, %v324_v15  ;;  %v384_v19 = vmul.f32 %v3486_v4, %v325_v16  ;;  %v335_v20 = vld [vmem:[%s3494_s12 + $0x120] sm:$0xff]  ;;  %v336_v25 = vld [vmem:[%s3494_s12 + $0x128] sm:$0xff]  ;;  %v337_v29 = vld [vmem:[%s3494_s12 + $0x130] sm:$0x3] }
  0x14   : > { %3379 = vmatpush.bf16.msra.mxu1 %v3314_v5  ;;  %3380 = vmatpush.bf16.msra.mxu2 %v3314_v5  ;;  %v3521_v22 = vadd.f32 %v3499_v6, %v370_v11  ;;  %v428_v23 = vadd.f32 %v3499_v6, %v371_v12  ;;  %v429_v24 = vadd.f32 %v3499_v6, %v372_v13  ;;  %v314_v49 = vld [vmem:[%s3494_s12 + $0x78] sm:$0xff]  ;;  %v315_v54 = vld [vmem:[%s3494_s12 + $0x80] sm:$0xff]  ;;  %v316_v55 = vld [vmem:[%s3494_s12 + $0x88] sm:$0x3] }
  0x15   : > { %3381 = vmatpush.bf16.msra.mxu3 %v3314_v5  ;;  %875 = vmatpush.bf16.msra.mxu0 %v3314_v5  ;;  %v3529_v26 = vadd.f32 %v3499_v6, %v382_v17  ;;  %v440_v27 = vadd.f32 %v3499_v6, %v383_v18  ;;  %v441_v28 = vadd.f32 %v3499_v6, %v384_v19  ;;  %v326_v56 = vld [vmem:[%s3494_s12 + $0xd8] sm:$0xff]  ;;  %v327_v2 = vld [vmem:[%s3494_s12 + $0xe0] sm:$0xff]  ;;  %v328_v9 = vld [vmem:[%s3494_s12 + $0xe8] sm:$0x3] }
  0x16   : > { %v4927_v30 = vmax.f32 %v3521_v22, 0.0  ;;  %v3535_v31 = vmax.f32 %v428_v23, 0.0  ;;  %v483_v32 = vmax.f32 %v429_v24, 0.0  ;;  %v394_v33 = vmul.f32 %v3486_v4, %v335_v20  ;;  %v3310_v16 = vld [vmem:[%s4917_s3 + $0x48] sm:$0xff]  ;;  %v341_v37 = vld [vmem:[%s3494_s12 + $0x150] sm:$0xff] }
  0x17   : > { %v4925_v34 = vmax.f32 %v3529_v26, 0.0  ;;  %v495_v35 = vmax.f32 %v441_v28, 0.0  ;;  %v395_v36 = vmul.f32 %v3486_v4, %v336_v25  ;;  %v3554_v42 = vmax.f32 %v440_v27, 0.0 }
  0x18   : > { %3382 = vmatpush.bf16.msra.mxu1 %v3313_v21  ;;  %3383 = vmatpush.bf16.msra.mxu2 %v3313_v21  ;;  %v3548_v40 = vsel %vm527_vm0, %v4927_v30, 0.0  ;;  %v3552_v41 = vsel %vm538_vm1, %v483_v32, 0.0  ;;  %v396_v43 = vmul.f32 %v3486_v4, %v337_v29  ;;  %v701_v45 = vrot.slane %v3535_v31, 1 }
  0x19   : > { %3384 = vmatpush.bf16.msra.mxu3 %v3313_v21  ;;  %876 = vmatpush.bf16.msra.mxu0 %v3313_v21  ;;  %v700_v44 = vrot.slane %v3548_v40, 1  ;;  %v3563_v46 = vsel %vm527_vm0, %v4925_v34, 0.0  ;;  %v3567_v47 = vsel %vm538_vm1, %v495_v35, 0.0  ;;  %v3570_v48 = vadd.f32 %v3499_v6, %v394_v33  ;;  %v338_v33 = vld [vmem:[%s3494_s12 + $0x138] sm:$0xff] }
  0x1a   : > { %v703_v50 = vrot.slane %v3552_v41, 1  ;;  %v452_v51 = vadd.f32 %v3499_v6, %v395_v36  ;;  %v453_v52 = vadd.f32 %v3499_v6, %v396_v43  ;;  %v720_v58 = vrot.slane %v3563_v46, 1  ;;  %v339_v43 = vld [vmem:[%s3494_s12 + $0x140] sm:$0xff] }
  0x1b   : > { %4997 = vst [vmem:[#allocation3_spill] sm:$0xff] %v3570_v48  ;;  %v721_v59 = vrot.slane %v3554_v42, 1  ;;  %v723_v60 = vrot.slane %v3567_v47, 1  ;;  %v4923_v61 = vmax.f32 %v3570_v48, 0.0  ;;  %v702_v62 = vsel %vm679_vm2, %v700_v44, %v701_v45  ;;  %v3309_v44 = vld [vmem:[%s4917_s3 + $0x40] sm:$0xff]  ;;  %v333_v48 = vld [vmem:[%s3494_s12 + $0x110] sm:$0xff] }
  0x1c   : > { %3385 = vmatpush.bf16.msra.mxu1 %v3312_v39  ;;  %3386 = vmatpush.bf16.msra.mxu2 %v3312_v39  ;;  %v3589_v63 = vmax.f32 %v452_v51, 0.0  ;;  %v507_v0 = vmax.f32 %v453_v52, 0.0  ;;  %v373_v1 = vmul.f32 %v3486_v4, %v314_v49  ;;  %v374_v7 = vmul.f32 %v3486_v4, %v315_v54  ;;  %v340_v52 = vld [vmem:[%s3494_s12 + $0x148] sm:$0x3]  ;;  %v3324_v54 = vld [vmem:[%s4917_s3 + $0xb8] sm:$0xff] }
  0x1d   : > { %3387 = vmatpush.bf16.msra.mxu3 %v3312_v39  ;;  %877 = vmatpush.bf16.msra.mxu0 %v3312_v39  ;;  %v3597_v5 = vsel %vm527_vm0, %v4923_v61, 0.0  ;;  %v375_v8 = vmul.f32 %v3486_v4, %v316_v55  ;;  %v385_v11 = vmul.f32 %v3486_v4, %v326_v56  ;;  %v386_v20 = vmul.f32 %v3486_v4, %v327_v2 }
  0x1e   : > { %4999 = vst [vmem:[#allocation5_spill] sm:$0xff] %v3589_v63  ;;  %v3605_v12 = vsel %vm538_vm1, %v507_v0, 0.0  ;;  %v740_v13 = vrot.slane %v3597_v5, 1  ;;  %v741_v14 = vrot.slane %v3589_v63, 1  ;;  %v3610_v15 = vadd.f32 %v3499_v6, %v373_v1  ;;  %v3332_v0 = vld [vmem:[%s4917_s3 + $0xf8] sm:$0xff] }
  0x1f   : > { %5000 = vst [vmem:[#allocation6_spill] sm:$0xff] %v3597_v5  ;;  %v743_v17 = vrot.slane %v3605_v12, 1  ;;  %v431_v18 = vadd.f32 %v3499_v6, %v374_v7  ;;  %v432_v19 = vadd.f32 %v3499_v6, %v375_v8  ;;  %v704_v21 = vsel %vm679_vm2, %v701_v45, %v703_v50  ;;  %v302_v7 = vld [vmem:[%s3494_s12 + $0x18] sm:$0xff]  ;;  %v303_v8 = vld [vmem:[%s3494_s12 + $0x20] sm:$0xff] }
  0x20   : > { %5001 = vst [vmem:[#allocation7_spill] sm:$0xff] %v3605_v12  ;;  %3388 = vmatpush.bf16.msra.mxu1 %v3311_v57  ;;  %3389 = vmatpush.bf16.msra.mxu2 %v3311_v57  ;;  %v4926_v23 = vmax.f32 %v3610_v15, 0.0  ;;  %v387_v24 = vmul.f32 %v3486_v4, %v328_v9  ;;  %v3623_v25 = vadd.f32 %v3499_v6, %v385_v11 }
  0x21   : > { %3390 = vmatpush.bf16.msra.mxu3 %v3311_v57  ;;  %878 = vmatpush.bf16.msra.mxu0 %v3311_v57  ;;  %v722_v27 = vsel %vm679_vm2, %v720_v58, %v721_v59  ;;  %v3626_v28 = vmax.f32 %v431_v18, 0.0  ;;  %v486_v29 = vmax.f32 %v432_v19, 0.0  ;;  %v443_v32 = vadd.f32 %v3499_v6, %v386_v20 }
  0x22   : > { %5002 = vst [vmem:[#allocation8_spill] sm:$0xff] %v3623_v25  ;;  %v724_v35 = vsel %vm679_vm2, %v721_v59, %v723_v60  ;;  %v3635_v36 = vsel %vm527_vm0, %v4926_v23, 0.0  ;;  %v444_v38 = vadd.f32 %v3499_v6, %v387_v24  ;;  %v4924_v39 = vmax.f32 %v3623_v25, 0.0  ;;  %v3323_v24 = vld [vmem:[%s4917_s3 + $0xb0] sm:$0xff]  ;;  %v331_v23 = vld [vmem:[%s3494_s12 + $0x100] sm:$0x3] }
  0x23   : > { %v742_v45 = vsel %vm679_vm2, %v740_v13, %v741_v14  ;;  %v744_v49 = vsel %vm679_vm2, %v741_v14, %v743_v17  ;;  %v705_v50 = vrot.slane %v3635_v36, 1  ;;  %v706_v51 = vrot.slane %v3626_v28, 1  ;;  %v304_v14 = vld [vmem:[%s3494_s12 + $0x28] sm:$0x3] }
  0x24   : > { %3391 = vmatpush.bf16.msra.mxu1 %v3310_v16  ;;  %3392 = vmatpush.bf16.msra.mxu2 %v3310_v16  ;;  %v3653_v55 = vsel %vm538_vm1, %v486_v29, 0.0  ;;  %v498_v56 = vmax.f32 %v444_v38, 0.0  ;;  %v3659_v57 = vsel %vm527_vm0, %v4924_v39, 0.0  ;;  %v397_v58 = vmul.f32 %v3486_v4, %v338_v33  ;;  %v3340_v29 = vld [vmem:[%s4917_s3 + $0x138] sm:$0xff] }
  0x25   : > { %3393 = vmatpush.bf16.msra.mxu3 %v3310_v16  ;;  %879 = vmatpush.bf16.msra.mxu0 %v3310_v16  ;;  %5003 = vst [vmem:[#allocation9_spill] sm:$0xff] %v3659_v57  ;;  %v3662_v59 = vpack.c.bf16 %v704_v21, %v702_v62  ;;  %v3664_v60 = vpack.c.bf16 %v724_v35, %v722_v27  ;;  %v3669_v1 = vmax.f32 %v443_v32, 0.0  ;;  %v3308_v16 = vld [vmem:[%s4917_s3 + $0x38] sm:$0xff]  ;;  %v708_v18 = vrot.slane %v3653_v55, 1  ;;  %v317_v21 = vld [vmem:[%s3494_s12 + $0x90] sm:$0xff] }
  0x26   : > { %v398_v2 = vmul.f32 %v3486_v4, %v339_v43  ;;  %v3674_v9 = vpack.c.bf16 %v744_v49, %v742_v45  ;;  %v3678_v11 = vsel %vm538_vm1, %v498_v56, 0.0  ;;  %v399_v62 = vmul.f32 %v3486_v4, %v340_v52  ;;  %v3331_v27 = vld [vmem:[%s4917_s3 + $0xf0] sm:$0xff]  ;;  %v319_v52 = vld [vmem:[%s3494_s12 + $0xa0] sm:$0x3] }
  0x27   : > { %5004 = vst [vmem:[#allocation10_spill] sm:$0xff] %v3664_v60  ;;  %v3682_v13 = vadd.f32 %v3499_v6, %v397_v58  ;;  %v3691_v17 = vsel %vm679_vm2, %v705_v50, %v706_v51  ;;  %v725_v19 = vrot.slane %v3659_v57, 1  ;;  %v361_v35 = vmul.f32 %v3486_v4, %v302_v7  ;;  %v318_v50 = vld [vmem:[%s3494_s12 + $0x98] sm:$0xff]  ;;  %v344_v57 = vld [vmem:[%s3494_s12 + $0x168] sm:$0xff] }
  0x28   : > { %5005 = vst [vmem:[#allocation11_spill] sm:$0xff] %v3669_v1  ;;  %3394 = vmatpush.bf16.msra.mxu1 %v3309_v44  ;;  %3395 = vmatpush.bf16.msra.mxu2 %v3309_v44  ;;  %v455_v20 = vadd.f32 %v3499_v6, %v398_v2  ;;  %v456_v32 = vadd.f32 %v3499_v6, %v399_v62  ;;  %v726_v43 = vrot.slane %v3669_v1, 1 }
  0x29   : > { %5006 = vst [vmem:[#allocation12_spill] sm:$0xff] %v3674_v9  ;;  %3396 = vmatpush.bf16.msra.mxu3 %v3309_v44  ;;  %880 = vmatpush.bf16.msra.mxu0 %v3309_v44  ;;  %v4922_v33 = vmax.f32 %v3682_v13, 0.0  ;;  %v362_v38 = vmul.f32 %v3486_v4, %v303_v8  ;;  %v728_v44 = vrot.slane %v3678_v11, 1  ;;  %v363_v49 = vmul.f32 %v3486_v4, %v304_v14  ;;  %v3307_v14 = vld [vmem:[%s4917_s3 + $0x30] sm:$0xff] }
  0x2a   : > { %5007 = vst [vmem:[#allocation13_spill] sm:$0xff] %v3678_v11  ;;  %v3712_v45 = vmax.f32 %v455_v20, 0.0  ;;  %v510_v56 = vmax.f32 %v456_v32, 0.0  ;;  %v3726_v58 = vadd.f32 %v3499_v6, %v361_v35  ;;  %v3339_v32 = vld [vmem:[%s4917_s3 + $0x130] sm:$0xff]  ;;  %v377_v35 = vmul.f32 %v3486_v4, %v318_v50  ;;  %v3330_v50 = vld [vmem:[%s4917_s3 + $0xe8] sm:$0xff] }
  0x2b   : > { %5008 = vst [vmem:[#allocation14_spill] sm:$0xff] %v3682_v13  ;;  %901 = vmatmul.bf16.vlgmr.msra.gmra.mxu1 %v3662_v59  ;;  %921 = vmatmul.bf16.vlgmr.msra.gmra.mxu2 %v3664_v60  ;;  %v419_v8 = vadd.f32 %v3499_v6, %v362_v38  ;;  %v420_v62 = vadd.f32 %v3499_v6, %v363_v49  ;;  %v3322_v49 = vld [vmem:[%s4917_s3 + $0xa8] sm:$0xff]  ;;  %v3335_v13 = vld [vmem:[%s4917_s3 + $0x110] sm:$0xff] }
  0x2c   : > { %1293 = vmatpush.bf16.msrb.mxu2 %v3324_v54  ;;  %5009 = vst [vmem:[#allocation15_spill] sm:$0xff] %v3712_v45  ;;  %v3723_v54 = vsel %vm527_vm0, %v4922_v33, 0.0  ;;  %941 = vmatmul.bf16.vlgmr.msra.gmra.mxu3 %v3674_v9  ;;  %v746_v7 = vrot.slane %v3712_v45, 1  ;;  %v3740_v20 = vsel %vm538_vm1, %v510_v56, 0.0 }
  0x2d   : > { %1480 = vmatpush.bf16.msrb.mxu3 %v3332_v0  ;;  %5010 = vst [vmem:[#allocation16_spill] sm:$0xff] %v3723_v54  ;;  %v376_v0 = vmul.f32 %v3486_v4, %v317_v21  ;;  %881 = vmatmul.bf16.vlgmr.msra.gmra.mxu0 %v3576_v53  ;;  %v745_v2 = vrot.slane %v3723_v54, 1  ;;  %v4928_v21 = vmax.f32 %v3726_v58, 0.0  ;;  %v748_v38 = vrot.slane %v3740_v20, 1 }
  0x2e   : > { %1010 = vmatpush.bf16.msrb.mxu1 %v3308_v16  ;;  %1677 = vmatpush.bf16.msrb.mxu0 %v3340_v29  ;;  %5011 = vst [vmem:[#allocation17_spill] sm:$0xff] %v3740_v20  ;;  %v378_v16 = vmul.f32 %v3486_v4, %v319_v52  ;;  %v709_v29 = vsel %vm679_vm2, %v706_v51, %v708_v18  ;;  %v3755_v56 = vmax.f32 %v419_v8, 0.0  ;;  %v474_v33 = vmax.f32 %v420_v62, 0.0  ;;  %v329_v52 = vld [vmem:[%s3494_s12 + $0xf0] sm:$0xff]  ;;  %v330_v8 = vld [vmem:[%s3494_s12 + $0xf8] sm:$0xff] }
  0x2f   : > { %v3767_v51 = vadd.f32 %v3499_v6, %v376_v0  ;;  %v434_v18 = vadd.f32 %v3499_v6, %v377_v35  ;;  %v727_v62 = vsel %vm679_vm2, %v725_v19, %v726_v43  ;;  %v729_v0 = vsel %vm679_vm2, %v726_v43, %v728_v44  ;;  %v3306_v19 = vld [vmem:[%s4917_s3 + $0x28] sm:$0xff]  ;;  %v3321_v43 = vld [vmem:[%s4917_s3 + $0xa0] sm:$0xff] }
  0x30   : > { %1294 = vmatpush.bf16.msrb.mxu2 %v3323_v24  ;;  %v3764_v24 = vsel %vm527_vm0, %v4928_v21, 0.0  ;;  %v3776_v61 = vsel %vm538_vm1, %v474_v33, 0.0  ;;  %v686_v34 = vrot.slane %v3755_v56, 1  ;;  %v747_v35 = vsel %vm679_vm2, %v745_v2, %v746_v7  ;;  %v3338_v33 = vld [vmem:[%s4917_s3 + $0x128] sm:$0xff]  ;;  %v3329_v44 = vld [vmem:[%s4917_s3 + $0xe0] sm:$0xff] }
  0x31   : > { %1481 = vmatpush.bf16.msrb.mxu3 %v3331_v27  ;;  %v435_v27 = vadd.f32 %v3499_v6, %v378_v16  ;;  %v685_v39 = vrot.slane %v3764_v24, 1  ;;  %v688_v16 = vrot.slane %v3776_v61, 1  ;;  %v749_v30 = vsel %vm679_vm2, %v746_v7, %v748_v38 }
  0x32   : > { %1011 = vmatpush.bf16.msrb.mxu1 %v3307_v14  ;;  %1678 = vmatpush.bf16.msrb.mxu0 %v3339_v32  ;;  %v388_v32 = vmul.f32 %v3486_v4, %v329_v52  ;;  %v389_v21 = vmul.f32 %v3486_v4, %v330_v8  ;;  %v3802_v14 = vpack.c.bf16 %v709_v29, %v3691_v17  ;;  %v3804_v7 = vmax.f32 %v434_v18, 0.0  ;;  %v3305_v17 = vld [vmem:[%s4917_s3 + $0x20] sm:$0xff] }
  0x33   : > { %v489_v2 = vmax.f32 %v435_v27, 0.0  ;;  %v390_v38 = vmul.f32 %v3486_v4, %v331_v23  ;;  %v3809_v53 = vpack.c.bf16 %v729_v0, %v727_v62  ;;  %v687_v20 = vsel %vm679_vm2, %v685_v39, %v686_v34 }
  0x34   : > { %1295 = vmatpush.bf16.msrb.mxu2 %v3322_v49  ;;  %v342_v49 = vld [vmem:[%s3494_s12 + $0x158] sm:$0xff]  ;;  %v689_v27 = vsel %vm679_vm2, %v686_v34, %v688_v16  ;;  %v3814_v52 = vadd.f32 %v3499_v6, %v388_v32  ;;  %v3816_v8 = vpack.c.bf16 %v749_v30, %v747_v35  ;;  %v5015_v23 = vmax.f32 %v3767_v51, 0.0  ;;  %v3337_v30 = vld [vmem:[%s4917_s3 + $0x120] sm:$0xff] }
  0x35   : > { %1482 = vmatpush.bf16.msrb.mxu3 %v3330_v50  ;;  %v343_v50 = vld [vmem:[%s3494_s12 + $0x160] sm:$0x3]  ;;  %5012 = vst [vmem:[#allocation18_spill] sm:$0xff] %v3809_v53  ;;  %v447_v34 = vadd.f32 %v3499_v6, %v390_v38  ;;  %v400_v39 = vmul.f32 %v3486_v4, %v341_v37  ;;  %v3834_v18 = vsel %vm538_vm1, %v489_v2, 0.0  ;;  %v446_v62 = vadd.f32 %v3499_v6, %v389_v21  ;;  %v3320_v37 = vld [vmem:[%s4917_s3 + $0x98] sm:$0xff] }
  0x36   : > { %5013 = vst [vmem:[#allocation19_spill] sm:$0xff] %v3814_v52  ;;  %1012 = vmatpush.bf16.msrb.mxu1 %v3306_v19  ;;  %1679 = vmatpush.bf16.msrb.mxu0 %v3338_v33  ;;  %v3825_v29 = vsel %vm527_vm0, %v5015_v23, 0.0  ;;  %v401_v0 = vmul.f32 %v3486_v4, %v342_v49  ;;  %v402_v35 = vmul.f32 %v3486_v4, %v343_v50  ;;  %v3328_v16 = vld [vmem:[%s4917_s3 + $0xd8] sm:$0xff]  ;;  %v711_v33 = vrot.slane %v3804_v7, 1  ;;  %v307_v23 = vld [vmem:[%s3494_s12 + $0x40] sm:$0x3] }
  0x37   : > { %5014 = vst [vmem:[#allocation20_spill] sm:$0xff] %v3816_v8  ;;  %v3845_v19 = vpack.c.bf16 %v689_v27, %v687_v20  ;;  %v3850_v21 = vadd.f32 %v3499_v6, %v400_v39  ;;  %v710_v2 = vrot.slane %v3825_v29, 1  ;;  %v501_v32 = vmax.f32 %v447_v34, 0.0  ;;  %v306_v50 = vld [vmem:[%s3494_s12 + $0x38] sm:$0xff]  ;;  %v3319_v27 = vld [vmem:[%s4917_s3 + $0x90] sm:$0xff] }
  0x38   : > { %1296 = vmatpush.bf16.msrb.mxu2 %v3321_v43  ;;  %v4933_v43 = vmax.f32 %v3814_v52, 0.0  ;;  %v458_v38 = vadd.f32 %v3499_v6, %v401_v0  ;;  %v459_v49 = vadd.f32 %v3499_v6, %v402_v35  ;;  %v713_v20 = vrot.slane %v3834_v18, 1  ;;  %v3304_v39 = vld [vmem:[%s4917_s3 + $0x18] sm:$0xff] }
  0x39   : > { %1483 = vmatpush.bf16.msrb.mxu3 %v3329_v44  ;;  %5016 = vst [vmem:[#allocation21_spill] sm:$0xff] %v3850_v21  ;;  %v305_v44 = vld [vmem:[%s3494_s12 + $0x30] sm:$0xff]  ;;  %v3336_v34 = vld [vmem:[%s4917_s3 + $0x118] sm:$0xff]  ;;  %v3866_v0 = vmax.f32 %v446_v62, 0.0  ;;  %v3893_v54 = vsel %vm538_vm1, %v501_v32, 0.0 }
  0x3a   : > { %1013 = vmatpush.bf16.msrb.mxu1 %v3305_v17  ;;  %1680 = vmatpush.bf16.msrb.mxu0 %v3337_v30  ;;  %v513_v35 = vmax.f32 %v459_v49, 0.0  ;;  %v364_v17 = vmul.f32 %v3486_v4, %v305_v44  ;;  %v3327_v30 = vld [vmem:[%s4917_s3 + $0xd0] sm:$0xff]  ;;  %v3881_v62 = vsel %vm527_vm0, %v4933_v43, 0.0  ;;  %v320_v44 = vld [vmem:[%s3494_s12 + $0xa8] sm:$0xff]  ;;  %v3889_v49 = vsel %vm679_vm2, %v710_v2, %v711_v33  ;;  %5019 = vst [vmem:[#allocation24_spill] sm:$0xff] %v3893_v54 }
  0x3b   : > { %5017 = vst [vmem:[#allocation22_spill] sm:$0xff] %v3866_v0  ;;  %906 = vmatmul.bf16.gmra.mxu1 %v3802_v14  ;;  %926 = vmatmul.bf16.gmra.mxu2 %v3809_v53  ;;  %v3895_v43 = vmax.f32 %v458_v38, 0.0  ;;  %v714_v2 = vsel %vm679_vm2, %v711_v33, %v713_v20  ;;  %v730_v12 = vrot.slane %v3881_v62, 1  ;;  %v731_v33 = vrot.slane %v3866_v0, 1  ;;  %v345_v53 = vld [vmem:[%s3494_s12 + $0x170] sm:$0xff] }
  0x3c   : > { %1297 = vmatpush.bf16.msrb.mxu2 %v3320_v37  ;;  %5018 = vst [vmem:[#allocation23_spill] sm:$0xff] %v3881_v62  ;;  %v365_v37 = vmul.f32 %v3486_v4, %v306_v50  ;;  %946 = vmatmul.bf16.gmra.mxu3 %v3816_v8  ;;  %v5021_v50 = vmax.f32 %v3850_v21, 0.0  ;;  %v3303_v8 = vld [vmem:[%s4917_s3 + $0x10] sm:$0xff]  ;;  %v3909_v45 = vsel %vm538_vm1, %v513_v35, 0.0  ;;  %v3912_v32 = vadd.f32 %v3499_v6, %v364_v17  ;;  %v322_v21 = vld [vmem:[%s3494_s12 + $0xb8] sm:$0x3] }
  0x3d   : > { %1484 = vmatpush.bf16.msrb.mxu3 %v3328_v16  ;;  %v366_v16 = vmul.f32 %v3486_v4, %v307_v23  ;;  %886 = vmatmul.bf16.gmra.mxu0 %v3845_v19  ;;  %5020 = vst [vmem:[#allocation25_spill] sm:$0xff] %v3895_v43  ;;  %v379_v35 = vmul.f32 %v3486_v4, %v320_v44  ;;  %v3326_v17 = vld [vmem:[%s4917_s3 + $0xc8] sm:$0xff]  ;;  %v334_v62 = vld [vmem:[%s3494_s12 + $0x118] sm:$0x3] }
  0x3e   : > { %v3901_v23 = vsel %vm527_vm0, %v5021_v50, 0.0  ;;  %5023 = vst [vmem:[#allocation27_spill] sm:$0xff] %v3909_v45  ;;  %v422_v38 = vadd.f32 %v3499_v6, %v365_v37  ;;  %1014 = vmatpush.bf16.msrb.mxu1 %v3304_v39  ;;  %1681 = vmatpush.bf16.msrb.mxu0 %v3336_v34  ;;  %v321_v50 = vld [vmem:[%s3494_s12 + $0xb0] sm:$0xff]  ;;  %v332_v39 = vld [vmem:[%s3494_s12 + $0x108] sm:$0xff]  ;;  %v733_v37 = vrot.slane %v3893_v54, 1  ;;  %v381_v63 = vmul.f32 %v3486_v4, %v322_v21 }
  0x3f   : > { %5022 = vst [vmem:[#allocation26_spill] sm:$0xff] %v3901_v23  ;;  %v423_v20 = vadd.f32 %v3499_v6, %v366_v16  ;;  %v3318_v34 = vld [vmem:[%s4917_s3 + $0x88] sm:$0xff]  ;;  %v750_v5 = vrot.slane %v3901_v23, 1  ;;  %v4952_v16 = vmax.f32 %v3912_v32, 0.0  ;;  %v393_v52 = vmul.f32 %v3486_v4, %v334_v62 }
  0x40   : > { %1298 = vmatpush.bf16.msrb.mxu2 %v3319_v27  ;;  %v3934_v9 = vmax.f32 %v422_v38, 0.0  ;;  %v751_v27 = vrot.slane %v3895_v43, 1  ;;  %v380_v38 = vmul.f32 %v3486_v4, %v321_v50  ;;  %v391_v43 = vmul.f32 %v3486_v4, %v332_v39  ;;  %v3302_v21 = vld [vmem:[%s4917_s3 + $0x8] sm:$0xff]  ;;  %v3317_v39 = vld [vmem:[%s4917_s3 + $0x80] sm:$0xff] }
  0x41   : > { %1485 = vmatpush.bf16.msrb.mxu3 %v3327_v30  ;;  %v753_v30 = vrot.slane %v3909_v45, 1  ;;  %v477_v44 = vmax.f32 %v423_v20, 0.0  ;;  %v3945_v54 = vsel %vm527_vm0, %v4952_v16, 0.0  ;;  %v3334_v20 = vld [vmem:[%s4917_s3 + $0x108] sm:$0xff]  ;;  %v3962_v50 = vadd.f32 %v3499_v6, %v379_v35 }
  0x42   : > { %v691_v23 = vrot.slane %v3934_v9, 1  ;;  %1015 = vmatpush.bf16.msrb.mxu1 %v3303_v8  ;;  %1682 = vmatpush.bf16.msrb.mxu0 %v3335_v13  ;;  %v690_v8 = vrot.slane %v3945_v54, 1  ;;  %v438_v13 = vadd.f32 %v3499_v6, %v381_v63  ;;  %v732_v45 = vsel %vm679_vm2, %v730_v12, %v731_v33 }
  0x43   : > { %v3958_v16 = vsel %vm538_vm1, %v477_v44, 0.0  ;;  %v3325_v44 = vld [vmem:[%s4917_s3 + $0xc0] sm:$0xff]  ;;  %v392_v35 = vmul.f32 %v3486_v4, %v333_v48  ;;  %v734_v63 = vsel %vm679_vm2, %v731_v33, %v733_v37  ;;  %v3979_v11 = vadd.f32 %v3499_v6, %v391_v43  ;;  %v346_v48 = vld [vmem:[%s3494_s12 + $0x178] sm:$0x3] }
  0x44   : > { %1299 = vmatpush.bf16.msrb.mxu2 %v3318_v34  ;;  %v693_v0 = vrot.slane %v3958_v16, 1  ;;  %v752_v34 = vsel %vm679_vm2, %v750_v5, %v751_v27  ;;  %v692_v1 = vsel %vm679_vm2, %v690_v8, %v691_v23  ;;  %v437_v25 = vadd.f32 %v3499_v6, %v380_v38  ;;  %v3301_v5 = vld [vmem:[%s4917_s3] sm:$0xff] }
  0x45   : > { %1486 = vmatpush.bf16.msrb.mxu3 %v3326_v17  ;;  %v754_v17 = vsel %vm679_vm2, %v751_v27, %v753_v30  ;;  %v3333_v43 = vld [vmem:[%s4917_s3 + $0x100] sm:$0xff]  ;;  %v3994_v62 = vpack.c.bf16 %v714_v2, %v3889_v49  ;;  %v4966_v33 = vmax.f32 %v3962_v50, 0.0  ;;  %v3998_v37 = vpack.c.bf16 %v734_v63, %v732_v45 }
  0x46   : > { %v694_v12 = vsel %vm679_vm2, %v691_v23, %v693_v0  ;;  %1016 = vmatpush.bf16.msrb.mxu1 %v3302_v21  ;;  %1683 = vmatpush.bf16.msrb.mxu0 %v3334_v20  ;;  %v492_v0 = vmax.f32 %v438_v13, 0.0  ;;  %v450_v23 = vadd.f32 %v3499_v6, %v393_v52  ;;  %v449_v27 = vadd.f32 %v3499_v6, %v392_v35  ;;  %v308_v52 = vld [vmem:[%s3494_s12 + $0x48] sm:$0xff] }
  0x47   : > { %5024 = vst [vmem:[#allocation28_spill] sm:$0xff] %v3994_v62  ;;  %v4965_v30 = vmax.f32 %v3979_v11, 0.0  ;;  %v403_v38 = vmul.f32 %v3486_v4, %v344_v57  ;;  %v4003_v21 = vpack.c.bf16 %v754_v17, %v752_v34  ;;  %v4005_v49 = vpack.c.bf16 %v694_v12, %v692_v1 }
  0x48   : > { %1300 = vmatpush.bf16.msrb.mxu2 %v3317_v39  ;;  %v404_v2 = vmul.f32 %v3486_v4, %v345_v53  ;;  %v405_v20 = vmul.f32 %v3486_v4, %v346_v48  ;;  %v4010_v8 = vmax.f32 %v437_v25, 0.0  ;;  %v504_v13 = vmax.f32 %v450_v23, 0.0  ;;  %v309_v39 = vld [vmem:[%s3494_s12 + $0x50] sm:$0xff]  ;;  %v3364_v23 = vld [vmem:[%s4917_s3 + $0x1f8] sm:$0xff] }
  0x49   : > { %1487 = vmatpush.bf16.msrb.mxu3 %v3325_v44  ;;  %5025 = vst [vmem:[#allocation29_spill] sm:$0xff] %v4003_v21  ;;  %v4013_v45 = vadd.f32 %v3499_v6, %v403_v38  ;;  %v310_v44 = vld [vmem:[%s3494_s12 + $0x58] sm:$0x3]  ;;  %v4021_v57 = vsel %vm527_vm0, %v4966_v33, 0.0  ;;  %v4025_v53 = vsel %vm538_vm1, %v492_v0, 0.0  ;;  %v4031_v35 = vmax.f32 %v449_v27, 0.0 }
  0x4a   : > { %1017 = vmatpush.bf16.msrb.mxu1 %v3301_v5  ;;  %1684 = vmatpush.bf16.msrb.mxu0 %v3333_v43  ;;  %v461_v25 = vadd.f32 %v3499_v6, %v404_v2  ;;  %v462_v1 = vadd.f32 %v3499_v6, %v405_v20  ;;  %v4037_v63 = vsel %vm527_vm0, %v4965_v30, 0.0  ;;  %v367_v17 = vmul.f32 %v3486_v4, %v308_v52  ;;  %v3356_v0 = vld [vmem:[%s4917_s3 + $0x1b8] sm:$0xff] }
  0x4b   : > { %5026 = vst [vmem:[#allocation30_spill] sm:$0xff] %v4013_v45  ;;  %911 = vmatmul.bf16.gmra.mxu1 %v3994_v62  ;;  %931 = vmatmul.bf16.gmra.mxu2 %v3998_v37  ;;  %v4964_v34 = vmax.f32 %v4013_v45, 0.0  ;;  %v368_v5 = vmul.f32 %v3486_v4, %v309_v39  ;;  %v369_v43 = vmul.f32 %v3486_v4, %v310_v44  ;;  %v3348_v27 = vld [vmem:[%s4917_s3 + $0x178] sm:$0xff]  ;;  %v4058_v38 = vsel %vm538_vm1, %v504_v13, 0.0 }
  0x4c   : > { %5027 = vst [vmem:[#allocation31_spill] sm:$0xff] %v4037_v63  ;;  %951 = vmatmul.bf16.gmra.mxu3 %v4003_v21  ;;  %v4043_v12 = vmax.f32 %v461_v25, 0.0  ;;  %v516_v48 = vmax.f32 %v462_v1, 0.0  ;;  %v4067_v2 = vadd.f32 %v3499_v6, %v367_v17  ;;  %v3372_v20 = vld [vmem:[%s4917_s3 + $0x238] sm:$0xff]  ;;  %v715_v52 = vrot.slane %v4021_v57, 1  ;;  %2058 = vmatpush.bf16.msra.mxu2 %v3356_v0 }
  0x4d   : > { %891 = vmatmul.bf16.gmra.mxu0 %v4005_v49  ;;  %5029 = vst [vmem:[#allocation33_spill] sm:$0xff] %v4058_v38  ;;  %v4064_v4 = vsel %vm527_vm0, %v4964_v34, 0.0  ;;  %v716_v39 = vrot.slane %v4010_v8, 1  ;;  %v718_v13 = vrot.slane %v4025_v53, 1  ;;  %2255 = vmatpush.bf16.msra.mxu3 %v3364_v23  ;;  %v735_v25 = vrot.slane %v4037_v63, 1 }
  0x4e   : > { %5028 = vst [vmem:[#allocation32_spill] sm:$0xff] %v4043_v12  ;;  %v4077_v44 = vsel %vm538_vm1, %v516_v48, 0.0  ;;  %v425_v1 = vadd.f32 %v3499_v6, %v368_v5  ;;  %v426_v17 = vadd.f32 %v3499_v6, %v369_v43  ;;  %v4972_v34 = vmax.f32 %v4067_v2, 0.0  ;;  %1871 = vmatpush.bf16.msra.mxu1 %v3348_v27  ;;  %2449 = vmatpush.bf16.msra.mxu0 %v3372_v20 }
  0x4f   : > { %5030 = vst [vmem:[#allocation34_spill] sm:$0xff] %v4064_v4  ;;  %v736_v30 = vrot.slane %v4031_v35, 1  ;;  %v738_v33 = vrot.slane %v4058_v38, 1  ;;  %v755_v45 = vrot.slane %v4064_v4, 1  ;;  %v756_v48 = vrot.slane %v4043_v12, 1 }
  0x50   : > { %5031 = vst [vmem:[#allocation35_spill] sm:$0xff] %v4077_v44  ;;  %v758_v0 = vrot.slane %v4077_v44, 1  ;;  %v4088_v23 = vmax.f32 %v425_v1, 0.0  ;;  %v480_v21 = vmax.f32 %v426_v17, 0.0  ;;  %v4094_v6 = vsel %vm527_vm0, %v4972_v34, 0.0 }
  0x51   : > { %v695_v5 = vrot.slane %v4094_v6, 1  ;;  %v717_v43 = vsel %vm679_vm2, %v715_v52, %v716_v39  ;;  %v719_v1 = vsel %vm679_vm2, %v716_v39, %v718_v13  ;;  %v737_v17 = vsel %vm679_vm2, %v735_v25, %v736_v30  ;;  %v3371_v25 = vld [vmem:[%s4917_s3 + $0x230] sm:$0xff] }
  0x52   : > { %v4100_v27 = vsel %vm538_vm1, %v480_v21, 0.0  ;;  %v696_v20 = vrot.slane %v4088_v23, 1  ;;  %v739_v44 = vsel %vm679_vm2, %v736_v30, %v738_v33  ;;  %v757_v34 = vsel %vm679_vm2, %v755_v45, %v756_v48  ;;  %2450 = vmatpush.bf16.msra.mxu0 %v3371_v25 }
  0x53   : > { %v698_v4 = vrot.slane %v4100_v27, 1  ;;  %v759_v12 = vsel %vm679_vm2, %v756_v48, %v758_v0  ;;  %v4111_v21 = vpack.c.bf16 %v719_v1, %v717_v43  ;;  %v4113_v38 = vpack.c.bf16 %v739_v44, %v737_v17  ;;  %v3347_v44 = vld [vmem:[%s4917_s3 + $0x170] sm:$0xff] }
  0x54   : > { %v697_v52 = vsel %vm679_vm2, %v695_v5, %v696_v20  ;;  %v4115_v63 = vpack.c.bf16 %v759_v12, %v757_v34  ;;  %v5033_v33 = vmov 0.0   ;;  %v4978_v34 = vmov 0.0|0.0   ;;  %v3363_v12 = vld [vmem:[%s4917_s3 + $0x1f0] sm:$0xff]  ;;  %1872 = vmatpush.bf16.msra.mxu1 %v3347_v44 }
  0x55   : > { %v699_v10 = vsel %vm679_vm2, %v696_v20, %v698_v4  ;;  %5032 = vst [vmem:[#allocation36_spill] sm:$0xff] %v4111_v21  ;;  %v1100_v30 = vrot.slane %v5033_v33, 2  ;;  %v5035_v4 = vmax.f32 %v3726_v58, 0.0  ;;  %v3355_v58 = vld [vmem:[%s4917_s3 + $0x1b0] sm:$0xff]  ;;  %2256 = vmatpush.bf16.msra.mxu3 %v3363_v12  ;;  %v1106_v48 = vrot.slane %v3755_v56, 2  ;;  %v3370_v12 = vld [vmem:[%s4917_s3 + $0x228] sm:$0xff] }
  0x56   : > { %v4117_v39 = vpack.c.bf16 %v699_v10, %v697_v52  ;;  %2059 = vmatpush.bf16.msra.mxu2 %v3355_v58  ;;  %v1108_v0 = vrot.slane %v3776_v61, 2  ;;  %v5038_v1 = vmax.f32 %v3912_v32, 0.0  ;;  %v1110_v61 = vrot.slane %v3945_v54, 2  ;;  %v3362_v54 = vld [vmem:[%s4917_s3 + $0x1e8] sm:$0xff]  ;;  %2451 = vmatpush.bf16.msra.mxu0 %v3370_v12 }
  0x57   : > { %v4124_v45 = vpack.c.bf16 %v1100_v30, %v1100_v30  ;;  %v2824_v13 = vpack.c.bf16 %v3755_v56, %v5035_v4  ;;  %v1111_v56 = vrot.slane %v3934_v9, 2  ;;  %v5039_v30 = vmax.f32 %v4067_v2, 0.0 }
  0x58   : > { %v1109_v43 = vsel %vm1099_vm5, %v1106_v48, %v1108_v0  ;;  %v4162_v17 = vpack.c.bf16 %v3934_v9, %v5038_v1  ;;  %v3354_v9 = vld [vmem:[%s4917_s3 + $0x1a8] sm:$0xff]  ;;  %v1115_v2 = vrot.slane %v4094_v6, 2  ;;  %v1118_v58 = vrot.slane %v4100_v27, 2 }
  0x59   : > { %5034 = vst [vmem:[#allocation37_spill] sm:$0xff] %v4124_v45  ;;  %v1112_v32 = vsel %vm1099_vm5, %v1110_v61, %v1111_v56  ;;  %v4181_v4 = vpack.c.bf16 %v4088_v23, %v5039_v30  ;;  %2257 = vmatpush.bf16.msra.mxu3 %v3362_v54  ;;  %v1121_v27 = vrot.slane %v3535_v31, 2  ;;  %v5041_v61 = vmax.f32 %v3610_v15, 0.0 }
  0x5a   : > { %2060 = vmatpush.bf16.msra.mxu2 %v3354_v9  ;;  %v1125_v30 = vrot.slane %v3635_v36, 2  ;;  %v1126_v9 = vrot.slane %v3626_v28, 2  ;;  %v1128_v54 = vrot.slane %v3653_v55, 2  ;;  %v5044_v55 = vmax.f32 %v3767_v51, 0.0 }
  0x5b   : > { %916 = vmatmul.bf16.gmra.mxu1 %v4111_v21  ;;  %936 = vmatmul.bf16.gmra.mxu2 %v4113_v38 }
  0x5c   : > { %956 = vmatmul.bf16.gmra.mxu3 %v4115_v63 }
  0x5d   : > { %896 = vmatmul.bf16.gmra.mxu0 %v4117_v39 }
  0x6b   : > { %1018 = vmatmul.bf16.vlgmr.msrb.gmra.mxu1 %v4978_v34  ;;  %1301 = vmatmul.bf16.vlgmr.msrb.gmra.mxu2 %v4124_v45  ;;  %v5054_v45 = vmax.f32 %v3529_v26, 0.0 }
  0x6c   : > { %2966 = vmatmul.msk.bf16.vlgmr.msrb.gmra.mxu3 %vm4131_vm4, %v2824_v13 }
  0x6d   : > { %1685 = vmatmul.bf16.vlgmr.msrb.gmra.mxu0 %v3845_v19  ;;  %v1105_v19 = vrot.slane %v3764_v24, 2  ;;  %v1113_v24 = vrot.slane %v3958_v16, 2  ;;  %v3346_v16 = vld [vmem:[%s4917_s3 + $0x168] sm:$0xff] }
  0x6e   : > { %1873 = vmatpush.bf16.msra.mxu1 %v3346_v16 }
  0x6f   : > { %v1107_v5 = vsel %vm1099_vm5, %v1105_v19, %v1106_v48  ;;  %v1114_v52 = vsel %vm1099_vm5, %v1111_v56, %v1113_v24  ;;  %v5040_v48 = vmax.f32 %v3521_v22, 0.0  ;;  %v1123_v22 = vrot.slane %v3552_v41, 2 }
  0x70   : > { %v4157_v20 = vpack.c.bf16 %v1109_v43, %v1107_v5  ;;  %v4176_v33 = vpack.c.bf16 %v1114_v52, %v1112_v32  ;;  %v4235_v56 = vpack.c.bf16 %v3626_v28, %v5041_v61  ;;  %v3345_v32 = vld [vmem:[%s4917_s3 + $0x160] sm:$0xff] }
  0x71   : > { %v4213_v6 = vpack.c.bf16 %v3535_v31, %v5040_v48  ;;  %v1124_v5 = vsel %vm1099_vm5, %v1121_v27, %v1123_v22  ;;  %v3353_v31 = vld [vmem:[%s4917_s3 + $0x1a0] sm:$0xff]  ;;  %v1130_v22 = vrot.slane %v3825_v29, 2  ;;  %v5049_v29 = vmax.f32 %v3962_v50, 0.0  ;;  %v3352_v50 = vld [vmem:[%s4917_s3 + $0x198] sm:$0xff] }
  0x72   : > { %2061 = vmatpush.bf16.msra.mxu2 %v3353_v31  ;;  %1874 = vmatpush.bf16.msra.mxu1 %v3345_v32 }
  0x76   : > { %2062 = vmatpush.bf16.msra.mxu2 %v3352_v50 }
  0x7b   : > { %2825 = vmatmul.msk.bf16.gmra.mxu1 %vm4131_vm4, %v2824_v13  ;;  %1306 = vmatmul.bf16.gmra.mxu2 %v4157_v20  ;;  %v1116_v13 = vrot.slane %v4088_v23, 2  ;;  %v1120_v23 = vrot.slane %v3548_v40, 2  ;;  %v3361_v40 = vld [vmem:[%s4917_s3 + $0x1e0] sm:$0xff] }
  0x7c   : > { %2969 = vmatmul.msk.bf16.gmra.mxu3 %vm4131_vm4, %v4162_v17 }
  0x7d   : > { %1690 = vmatmul.bf16.gmra.mxu0 %v4005_v49  ;;  %v1117_v44 = vsel %vm1099_vm5, %v1115_v2, %v1116_v13  ;;  %v1119_v25 = vsel %vm1099_vm5, %v1116_v13, %v1118_v58  ;;  %v1122_v0 = vsel %vm1099_vm5, %v1120_v23, %v1121_v27  ;;  %2258 = vmatpush.bf16.msra.mxu3 %v3361_v40  ;;  %v3369_v2 = vld [vmem:[%s4917_s3 + $0x220] sm:$0xff] }
  0x7e   : > { %v4208_v19 = vpack.c.bf16 %v1119_v25, %v1117_v44  ;;  %v4228_v43 = vpack.c.bf16 %v1124_v5, %v1122_v0  ;;  %2452 = vmatpush.bf16.msra.mxu0 %v3369_v2  ;;  %v1127_v13 = vsel %vm1099_vm5, %v1125_v30, %v1126_v9  ;;  %v1129_v58 = vsel %vm1099_vm5, %v1126_v9, %v1128_v54  ;;  %v3360_v2 = vld [vmem:[%s4917_s3 + $0x1d8] sm:$0xff] }
  0x7f   : > { %v4276_v36 = vpack.c.bf16 %v1129_v58, %v1127_v13  ;;  %v4283_v25 = vpack.c.bf16 %v3804_v7, %v5044_v55  ;;  %v1131_v0 = vrot.slane %v3804_v7, 2  ;;  %v1133_v5 = vrot.slane %v3834_v18, 2 }
  0x80   : > { %v4319_v7 = vpack.c.bf16 %v4010_v8, %v5049_v29  ;;  %v3368_v29 = vld [vmem:[%s4917_s3 + $0x218] sm:$0xff] }
  0x81   : > { %5045 = vst [vmem:[#allocation40_spill] sm:$0xff] %v4283_v25  ;;  %v1132_v31 = vsel %vm1099_vm5, %v1130_v22, %v1131_v0  ;;  %v1134_v40 = vsel %vm1099_vm5, %v1131_v0, %v1133_v5  ;;  %2259 = vmatpush.bf16.msra.mxu3 %v3360_v2  ;;  %v1135_v22 = vrot.slane %v4021_v57, 2  ;;  %v1136_v0 = vrot.slane %v4010_v8, 2 }
  0x82   : > { %v4312_v9 = vpack.c.bf16 %v1134_v40, %v1132_v31  ;;  %5050 = vst [vmem:[#allocation44_spill] sm:$0xff] %v4319_v7  ;;  %v1138_v5 = vrot.slane %v4025_v53, 2  ;;  %v3344_v40 = vld [vmem:[%s4917_s3 + $0x158] sm:$0xff]  ;;  %2453 = vmatpush.bf16.msra.mxu0 %v3368_v29 }
  0x83   : > { %1875 = vmatpush.bf16.msra.mxu1 %v3344_v40  ;;  %v1137_v50 = vsel %vm1099_vm5, %v1135_v22, %v1136_v0  ;;  %v1143_v40 = vrot.slane %v3567_v47, 2 }
  0x84   : > { %5048 = vst [vmem:[#allocation43_spill] sm:$0xff] %v4312_v9  ;;  %v1139_v57 = vsel %vm1099_vm5, %v1136_v0, %v1138_v5  ;;  %v1140_v0 = vrot.slane %v3563_v46, 2  ;;  %v1141_v5 = vrot.slane %v3554_v42, 2  ;;  %v5062_v46 = vld [vmem:[#allocation11_spill] sm:$0xff] }
  0x85   : > { %v4360_v53 = vpack.c.bf16 %v1139_v57, %v1137_v50 }
  0x86   : > { %v1142_v50 = vsel %vm1099_vm5, %v1140_v0, %v1141_v5  ;;  %v1144_v57 = vsel %vm1099_vm5, %v1141_v5, %v1143_v40  ;;  %v5063_v0 = vld [vmem:[#allocation18_spill] sm:$0xff] }
  0x87   : > { %5053 = vst [vmem:[#allocation47_spill] sm:$0xff] %v4360_v53 }
  0x8b   : > { %2828 = vmatmul.msk.bf16.gmra.mxu1 %vm4131_vm4, %v4162_v17  ;;  %1311 = vmatmul.bf16.gmra.mxu2 %v4176_v33 }
  0x8c   : > { %2972 = vmatmul.msk.bf16.gmra.mxu3 %vm4131_vm4, %v4181_v4 }
  0x8d   : > { %1695 = vmatmul.bf16.gmra.mxu0 %v4117_v39 }
  0x9b   : > { %2831 = vmatmul.msk.bf16.gmra.mxu1 %vm4131_vm4, %v4181_v4  ;;  %1316 = vmatmul.bf16.gmra.mxu2 %v4208_v19 }
  0x9c   : > { %2975 = vmatmul.msk.bf16.gmra.mxu3 %vm4131_vm4, %v4213_v6 }
  0x9d   : > { %1700 = vmatmul.bf16.gmra.mxu0 %v3662_v59 }
  0xa8   : > { %v4230_v1 = vpop.f32.mrf.mxu1 }
  0xaa   : > { %v4237_v24 = vpop.f32.mrf.mxu0 }
  0xab   : > { %2834 = vmatmul.msk.bf16.gmra.mxu1 %vm4131_vm4, %v4213_v6  ;;  %1321 = vmatmul.bf16.gmra.mxu2 %v4228_v43 }
  0xac   : > { %2978 = vmatmul.msk.bf16.gmra.mxu3 %vm4131_vm4, %v4235_v56 }
  0xad   : > { %1705 = vmatmul.bf16.gmra.mxu0 %v3802_v14 }
  0xae   : > { %v4253_v41 = vpop.f32.mrf.mxu2 }
  0xaf   : > { %v4255_v15 = vpop.f32.mrf.mxu3 }
  0xb0   : > { %5042 = vst [vmem:[#allocation38_spill] sm:$0xff] %v4255_v15  ;;  %v4260_v52 = vpop.f32.mrf.mxu1 }
  0xb2   : > { %v4265_v16 = vpop.f32.mrf.mxu0 }
  0xb6   : > { %v4272_v12 = vpop.f32.mrf.mxu2 }
  0xb7   : > { %v4274_v44 = vpop.f32.mrf.mxu3 }
  0xb8   : > { %5043 = vst [vmem:[#allocation39_spill] sm:$0xff] %v4274_v44  ;;  %v4278_v28 = vpop.f32.mrf.mxu1 }
  0xba   : > { %v4285_v48 = vpop.f32.mrf.mxu0 }
  0xbb   : > { %2837 = vmatmul.msk.bf16.gmra.mxu1 %vm4131_vm4, %v4235_v56  ;;  %1326 = vmatmul.bf16.gmra.mxu2 %v4276_v36 }
  0xbc   : > { %2981 = vmatmul.msk.bf16.gmra.mxu3 %vm4131_vm4, %v4283_v25 }
  0xbd   : > { %1710 = vmatmul.bf16.gmra.mxu0 %v3994_v62  ;;  %v5068_v62 = vld [vmem:[#allocation22_spill] sm:$0xff] }
  0xbe   : > { %v4295_v23 = vpop.f32.mrf.mxu2 }
  0xbf   : > { %v4297_v51 = vpop.f32.mrf.mxu3 }
  0xc0   : > { %5046 = vst [vmem:[#allocation41_spill] sm:$0xff] %v4297_v51  ;;  %v4299_v27 = vpop.f32.mrf.mxu1  ;;  %v4396_v51 = vpack.c.bf16 %v1144_v57, %v1142_v50  ;;  %v5064_v50 = vld [vmem:[#allocation9_spill] sm:$0xff] }
  0xc1   : > { %v1145_v57 = vrot.slane %v5064_v50, 2 }
  0xc2   : > { %v4304_v61 = vpop.f32.mrf.mxu0  ;;  %5059 = vst [vmem:[#allocation52_spill] sm:$0xff] %v4396_v51 }
  0xc6   : > { %v4308_v32 = vpop.f32.mrf.mxu2 }
  0xc7   : > { %v4310_v30 = vpop.f32.mrf.mxu3 }
  0xc8   : > { %5047 = vst [vmem:[#allocation42_spill] sm:$0xff] %v4310_v30  ;;  %v4314_v54 = vpop.f32.mrf.mxu1 }
  0xca   : > { %v4321_v18 = vpop.f32.mrf.mxu0 }
  0xcb   : > { %2840 = vmatmul.msk.bf16.gmra.mxu1 %vm4131_vm4, %v4283_v25  ;;  %1331 = vmatmul.bf16.gmra.mxu2 %v4312_v9  ;;  %v3343_v9 = vld [vmem:[%s4917_s3 + $0x150] sm:$0xff] }
  0xcc   : > { %2984 = vmatmul.msk.bf16.gmra.mxu3 %vm4131_vm4, %v4319_v7  ;;  %1876 = vmatpush.bf16.msra.mxu1 %v3343_v9 }
  0xcd   : > { %1715 = vmatmul.bf16.gmra.mxu0 %v4111_v21 }
  0xce   : > { %v4337_v13 = vpop.f32.mrf.mxu2 }
  0xcf   : > { %v4339_v58 = vpop.f32.mrf.mxu3 }
  0xd0   : > { %5051 = vst [vmem:[#allocation45_spill] sm:$0xff] %v4339_v58  ;;  %v4341_v55 = vpop.f32.mrf.mxu1  ;;  %v4367_v58 = vpack.c.bf16 %v3554_v42, %v5054_v45 }
  0xd2   : > { %v4346_v31 = vpop.f32.mrf.mxu0  ;;  %5055 = vst [vmem:[#allocation48_spill] sm:$0xff] %v4367_v58 }
  0xd6   : > { %v4356_v2 = vpop.f32.mrf.mxu2 }
  0xd7   : > { %v4358_v8 = vpop.f32.mrf.mxu3 }
  0xd8   : > { %5052 = vst [vmem:[#allocation46_spill] sm:$0xff] %v4358_v8  ;;  %v4362_v34 = vpop.f32.mrf.mxu1 }
  0xda   : > { %v4369_v30 = vpop.f32.mrf.mxu0 }
  0xdb   : > { %2843 = vmatmul.msk.bf16.gmra.mxu1 %vm4131_vm4, %v4319_v7  ;;  %1336 = vmatmul.bf16.gmra.mxu2 %v4360_v53  ;;  %v5060_v53 = vld [vmem:[#allocation8_spill] sm:$0xff] }
  0xdc   : > { %2987 = vmatmul.msk.bf16.gmra.mxu3 %vm4131_vm4, %v4367_v58  ;;  %v5061_v21 = vmax.f32 %v5060_v53, 0.0 }
  0xdd   : > { %1720 = vmatmul.bf16.gmra.mxu0 %v3664_v60 }
  0xde   : > { %v4379_v22 = vpop.f32.mrf.mxu2  ;;  %v4401_v7 = vpack.c.bf16 %v5062_v46, %v5061_v21  ;;  %v3351_v21 = vld [vmem:[%s4917_s3 + $0x190] sm:$0xff] }
  0xdf   : > { %v4381_v26 = vpop.f32.mrf.mxu3  ;;  %2063 = vmatpush.bf16.msra.mxu2 %v3351_v21 }
  0xe0   : > { %5056 = vst [vmem:[#allocation49_spill] sm:$0xff] %v4381_v26  ;;  %v4383_v45 = vpop.f32.mrf.mxu1 }
  0xe2   : > { %v4388_v29 = vpop.f32.mrf.mxu0 }
  0xe6   : > { %v4392_v8 = vpop.f32.mrf.mxu2 }
  0xe7   : > { %5057 = vst [vmem:[#allocation50_spill] sm:$0xff] %v4392_v8  ;;  %v4394_v60 = vpop.f32.mrf.mxu3 }
  0xe8   : > { %5058 = vst [vmem:[#allocation51_spill] sm:$0xff] %v4394_v60  ;;  %v1019_v26 = vpop.f32.mrf.mxu1  ;;  %v1146_v60 = vrot.slane %v5062_v46, 2 }
  0xe9   : > { %v1020_v42 = vadd.f32 %v1019_v26, %v4237_v24  ;;  %v3359_v24 = vld [vmem:[%s4917_s3 + $0x1d0] sm:$0xff] }
  0xea   : > { %v1686_v47 = vpop.f32.mrf.mxu0  ;;  %2260 = vmatpush.bf16.msra.mxu3 %v3359_v24  ;;  %v1147_v46 = vsel %vm1099_vm5, %v1145_v57, %v1146_v60 }
  0xeb   : > { %2846 = vmatmul.msk.bf16.gmra.mxu1 %vm4131_vm4, %v4367_v58  ;;  %1341 = vmatmul.bf16.gmra.mxu2 %v4396_v51  ;;  %v5065_v51 = vld [vmem:[#allocation13_spill] sm:$0xff] }
  0xec   : > { %2990 = vmatmul.msk.bf16.gmra.mxu3 %vm4131_vm4, %v4401_v7 }
  0xed   : > { %1725 = vmatmul.bf16.gmra.mxu0 %v5063_v0  ;;  %v1148_v0 = vrot.slane %v5065_v51, 2 }
  0xee   : > { %v1302_v53 = vpop.f32.mrf.mxu2 }
  0xef   : > { %v1382_v26 = vadd.f32 %v1302_v53, %v1020_v42  ;;  %v1489_v5 = vpop.f32.mrf.mxu3  ;;  %v3367_v42 = vld [vmem:[%s4917_s3 + $0x210] sm:$0xff]  ;;  %v1149_v51 = vsel %vm1099_vm5, %v1146_v60, %v1148_v0 }
  0xf0   : > { %v1021_v40 = vpop.f32.mrf.mxu1  ;;  %2454 = vmatpush.bf16.msra.mxu0 %v3367_v42 }
  0xf1   : > { %v1569_v58 = vadd.f32 %v1489_v5, %v1382_v26  ;;  %v1022_v44 = vadd.f32 %v1021_v40, %v4265_v16  ;;  %v4432_v26 = vpack.c.bf16 %v1149_v51, %v1147_v46  ;;  %v5066_v40 = vld [vmem:[#allocation19_spill] sm:$0xff]  ;;  %v1151_v46 = vrot.slane %v5068_v62, 2  ;;  %v5071_v51 = vld [vmem:[#allocation24_spill] sm:$0xff] }
  0xf2   : > { %v1688_v15 = vpop.f32.mrf.mxu0  ;;  %v5067_v50 = vmax.f32 %v5066_v40, 0.0 }
  0xf3   : > { %v4428_v21 = vadd.f32 %v1686_v47, %v1569_v58 }
  0xf4   : > { %v4437_v25 = vpack.c.bf16 %v5068_v62, %v5067_v50  ;;  %v5073_v62 = vmax.f32 %v3979_v11, 0.0  ;;  %v3350_v11 = vld [vmem:[%s4917_s3 + $0x188] sm:$0xff] }
  0xf5   : > { %2064 = vmatpush.bf16.msra.mxu2 %v3350_v11 }
  0xf6   : > { %v1304_v24 = vpop.f32.mrf.mxu2 }
  0xf7   : > { %v1383_v53 = vadd.f32 %v1304_v24, %v1022_v44  ;;  %v1491_v16 = vpop.f32.mrf.mxu3  ;;  %v1153_v24 = vrot.slane %v5071_v51, 2  ;;  %v4463_v51 = vpack.c.bf16 %v4031_v35, %v5073_v62  ;;  %v3366_v62 = vld [vmem:[%s4917_s3 + $0x208] sm:$0xff] }
  0xf8   : > { %v1024_v5 = vpop.f32.mrf.mxu1  ;;  %2455 = vmatpush.bf16.msra.mxu0 %v3366_v62 }
  0xf9   : > { %v1570_v8 = vadd.f32 %v1491_v16, %v1383_v53  ;;  %v1025_v9 = vadd.f32 %v1024_v5, %v4285_v48  ;;  %v5070_v48 = vld [vmem:[#allocation23_spill] sm:$0xff]  ;;  %v1154_v40 = vsel %vm1099_vm5, %v1151_v46, %v1153_v24 }
  0xfa   : > { %v1691_v58 = vpop.f32.mrf.mxu0  ;;  %v1150_v42 = vrot.slane %v5070_v48, 2 }
  0xfb   : > { %2849 = vmatmul.msk.bf16.gmra.mxu1 %vm4131_vm4, %v4401_v7  ;;  %1346 = vmatmul.bf16.gmra.mxu2 %v4432_v26  ;;  %v4444_v60 = vadd.f32 %v1688_v15, %v1570_v8 }
  0xfc   : > { %2993 = vmatmul.msk.bf16.gmra.mxu3 %vm4131_vm4, %v4437_v25  ;;  %v1152_v5 = vsel %vm1099_vm5, %v1150_v42, %v1151_v46 }
  0xfd   : > { %5069 = vst [vmem:[#allocation8_spill] sm:$0xff] %v4444_v60  ;;  %1730 = vmatmul.bf16.gmra.mxu0 %v3998_v37  ;;  %v4458_v60 = vpack.c.bf16 %v1154_v40, %v1152_v5  ;;  %v5076_v5 = vld [vmem:[#allocation33_spill] sm:$0xff] }
  0xfe   : > { %v1307_v44 = vpop.f32.mrf.mxu2  ;;  %v1158_v40 = vrot.slane %v5076_v5, 2 }
  0xff   : > { %v1384_v47 = vadd.f32 %v1307_v44, %v1025_v9  ;;  %v1494_v0 = vpop.f32.mrf.mxu3 }
 0x100   : > { %v1026_v57 = vpop.f32.mrf.mxu1 }
 0x101   : > { %v1571_v53 = vadd.f32 %v1494_v0, %v1384_v47  ;;  %v1027_v15 = vadd.f32 %v1026_v57, %v4304_v61 }
 0x102   : > { %v1693_v8 = vpop.f32.mrf.mxu0 }
 0x103   : > { %v4454_v16 = vadd.f32 %v1691_v58, %v1571_v53  ;;  %v5075_v53 = vld [vmem:[#allocation31_spill] sm:$0xff] }
 0x105   : > { %5072 = vst [vmem:[#allocation11_spill] sm:$0xff] %v4454_v16  ;;  %v5088_v16 = vld [vmem:[#allocation15_spill] sm:$0xff] }
 0x106   : > { %v1309_v50 = vpop.f32.mrf.mxu2 }
 0x107   : > { %v1385_v9 = vadd.f32 %v1309_v50, %v1027_v15  ;;  %v1496_v44 = vpop.f32.mrf.mxu3  ;;  %v1155_v15 = vrot.slane %v5075_v53, 2  ;;  %v5080_v53 = vld [vmem:[#allocation5_spill] sm:$0xff] }
 0x108   : > { %v1029_v48 = vpop.f32.mrf.mxu1 }
 0x109   : > { %v1572_v47 = vadd.f32 %v1496_v44, %v1385_v9  ;;  %v1030_v61 = vadd.f32 %v1029_v48, %v4321_v18  ;;  %v3358_v18 = vld [vmem:[%s4917_s3 + $0x1c8] sm:$0xff] }
 0x10a   : > { %v1696_v58 = vpop.f32.mrf.mxu0  ;;  %2261 = vmatpush.bf16.msra.mxu3 %v3358_v18  ;;  %v3342_v48 = vld [vmem:[%s4917_s3 + $0x148] sm:$0xff] }
 0x10b   : > { %2852 = vmatmul.msk.bf16.gmra.mxu1 %vm4131_vm4, %v4437_v25  ;;  %1351 = vmatmul.bf16.gmra.mxu2 %v4458_v60  ;;  %v4470_v0 = vadd.f32 %v1693_v8, %v1572_v47  ;;  %v1156_v8 = vrot.slane %v4031_v35, 2 }
 0x10c   : > { %2996 = vmatmul.msk.bf16.gmra.mxu3 %vm4131_vm4, %v4463_v51  ;;  %1877 = vmatpush.bf16.msra.mxu1 %v3342_v48 }
 0x10d   : > { %5074 = vst [vmem:[#allocation9_spill] sm:$0xff] %v4470_v0  ;;  %1735 = vmatmul.bf16.gmra.mxu0 %v4113_v38  ;;  %v1157_v35 = vsel %vm1099_vm5, %v1155_v15, %v1156_v8 }
 0x10e   : > { %v1312_v57 = vpop.f32.mrf.mxu2 }
 0x10f   : > { %v1386_v42 = vadd.f32 %v1312_v57, %v1030_v61  ;;  %v1499_v46 = vpop.f32.mrf.mxu3  ;;  %v1159_v61 = vsel %vm1099_vm5, %v1156_v8, %v1158_v40  ;;  %v5082_v8 = vld [vmem:[#allocation12_spill] sm:$0xff] }
 0x110   : > { %v1031_v24 = vpop.f32.mrf.mxu1  ;;  %v4496_v57 = vpack.c.bf16 %v1159_v61, %v1157_v35  ;;  %v1161_v61 = vrot.slane %v5080_v53, 2 }
 0x111   : > { %v1573_v50 = vadd.f32 %v1499_v46, %v1386_v42  ;;  %v1032_v9 = vadd.f32 %v1031_v24, %v4346_v31  ;;  %v5078_v46 = vld [vmem:[#allocation3_spill] sm:$0xff] }
 0x112   : > { %v1698_v44 = vpop.f32.mrf.mxu0  ;;  %v5079_v24 = vmax.f32 %v5078_v46, 0.0 }
 0x113   : > { %v4492_v47 = vadd.f32 %v1696_v58, %v1573_v50 }
 0x114   : > { %v4501_v5 = vpack.c.bf16 %v5080_v53, %v5079_v24 }
 0x115   : > { %5077 = vst [vmem:[#allocation13_spill] sm:$0xff] %v4492_v47 }
 0x116   : > { %v1314_v11 = vpop.f32.mrf.mxu2 }
 0x117   : > { %v1387_v18 = vadd.f32 %v1314_v11, %v1032_v9  ;;  %v1501_v31 = vpop.f32.mrf.mxu3  ;;  %v5084_v11 = vld [vmem:[#allocation7_spill] sm:$0xff] }
 0x118   : > { %v1034_v42 = vpop.f32.mrf.mxu1 }
 0x119   : > { %v1574_v0 = vadd.f32 %v1501_v31, %v1387_v18  ;;  %v1035_v48 = vadd.f32 %v1034_v42, %v4369_v30  ;;  %v5083_v30 = vld [vmem:[#allocation6_spill] sm:$0xff]  ;;  %v1163_v18 = vrot.slane %v5084_v11, 2 }
 0x11a   : > { %v1701_v58 = vpop.f32.mrf.mxu0  ;;  %v1160_v35 = vrot.slane %v5083_v30, 2 }
 0x11b   : > { %2855 = vmatmul.msk.bf16.gmra.mxu1 %vm4131_vm4, %v4463_v51  ;;  %1356 = vmatmul.bf16.gmra.mxu2 %v4496_v57  ;;  %v4508_v15 = vadd.f32 %v1698_v44, %v1574_v0  ;;  %v1164_v24 = vsel %vm1099_vm5, %v1161_v61, %v1163_v18 }
 0x11c   : > { %2999 = vmatmul.msk.bf16.gmra.mxu3 %vm4131_vm4, %v4501_v5  ;;  %v1162_v46 = vsel %vm1099_vm5, %v1160_v35, %v1161_v61 }
 0x11d   : > { %5081 = vst [vmem:[#allocation19_spill] sm:$0xff] %v4508_v15  ;;  %1740 = vmatmul.bf16.gmra.mxu0 %v5082_v8  ;;  %v4522_v47 = vpack.c.bf16 %v1164_v24, %v1162_v46  ;;  %v5086_v8 = vld [vmem:[#allocation14_spill] sm:$0xff]  ;;  %v1166_v46 = vrot.slane %v5088_v16, 2  ;;  %v5093_v24 = vld [vmem:[#allocation17_spill] sm:$0xff] }
 0x11e   : > { %v1317_v40 = vpop.f32.mrf.mxu2  ;;  %v5087_v53 = vmax.f32 %v5086_v8, 0.0  ;;  %v3349_v8 = vld [vmem:[%s4917_s3 + $0x180] sm:$0xff] }
 0x11f   : > { %v1388_v50 = vadd.f32 %v1317_v40, %v1035_v48  ;;  %v1504_v9 = vpop.f32.mrf.mxu3  ;;  %2065 = vmatpush.bf16.msra.mxu2 %v3349_v8 }
 0x120   : > { %v1036_v62 = vpop.f32.mrf.mxu1  ;;  %v4527_v11 = vpack.c.bf16 %v5088_v16, %v5087_v53 }
 0x121   : > { %v1575_v31 = vadd.f32 %v1504_v9, %v1388_v50  ;;  %v1037_v0 = vadd.f32 %v1036_v62, %v4388_v29  ;;  %v3357_v9 = vld [vmem:[%s4917_s3 + $0x1c0] sm:$0xff] }
 0x122   : > { %v1703_v44 = vpop.f32.mrf.mxu0  ;;  %5089 = vst [vmem:[#allocation23_spill] sm:$0xff] %v4527_v11  ;;  %2262 = vmatpush.bf16.msra.mxu3 %v3357_v9 }
 0x123   : > { %v4518_v42 = vadd.f32 %v1701_v58, %v1575_v31 }
 0x125   : > { %5085 = vst [vmem:[#allocation22_spill] sm:$0xff] %v4518_v42 }
 0x126   : > { %v1319_v15 = vpop.f32.mrf.mxu2 }
 0x127   : > { %v1389_v48 = vadd.f32 %v1319_v15, %v1037_v0  ;;  %v1506_v40 = vpop.f32.mrf.mxu3  ;;  %v5091_v15 = vld [vmem:[#allocation20_spill] sm:$0xff] }
 0x128   : > { %v1039_v30 = vpop.f32.mrf.mxu1  ;;  %v5092_v0 = vld [vmem:[#allocation16_spill] sm:$0xff] }
 0x129   : > { %v1576_v50 = vadd.f32 %v1506_v40, %v1389_v48  ;;  %v1040_v62 = vadd.f32 %v1039_v30, %v4230_v1  ;;  %v1168_v48 = vrot.slane %v5093_v24, 2  ;;  %v3365_v1 = vld [vmem:[%s4917_s3 + $0x200] sm:$0xff]  ;;  %v5096_v24 = vld [vmem:[#allocation21_spill] sm:$0xff] }
 0x12a   : > { %v1706_v29 = vpop.f32.mrf.mxu0  ;;  %2456 = vmatpush.bf16.msra.mxu0 %v3365_v1 }
 0x12b   : > { %2858 = vmatmul.msk.bf16.gmra.mxu1 %vm4131_vm4, %v4501_v5  ;;  %1361 = vmatmul.bf16.gmra.mxu2 %v4522_v47  ;;  %v4533_v58 = vadd.f32 %v1703_v44, %v1576_v50  ;;  %v1165_v44 = vrot.slane %v5092_v0, 2  ;;  %v3341_v50 = vld [vmem:[%s4917_s3 + $0x140] sm:$0xff]  ;;  %v1169_v16 = vsel %vm1099_vm5, %v1166_v46, %v1168_v48 }
 0x12c   : > { %3002 = vmatmul.msk.bf16.gmra.mxu3 %vm4131_vm4, %v4527_v11  ;;  %1878 = vmatpush.bf16.msra.mxu1 %v3341_v50  ;;  %v5098_v50 = vld [vmem:[#allocation25_spill] sm:$0xff] }
 0x12d   : > { %5090 = vst [vmem:[#allocation24_spill] sm:$0xff] %v4533_v58  ;;  %1745 = vmatmul.bf16.gmra.mxu0 %v5091_v15  ;;  %v1167_v8 = vsel %vm1099_vm5, %v1165_v44, %v1166_v46  ;;  %v5097_v58 = vmax.f32 %v5096_v24, 0.0 }
 0x12e   : > { %v1322_v35 = vpop.f32.mrf.mxu2 }
 0x12f   : > { %v1390_v61 = vadd.f32 %v1322_v35, %v1040_v62  ;;  %v1509_v18 = vpop.f32.mrf.mxu3  ;;  %v4565_v1 = vpack.c.bf16 %v5098_v50, %v5097_v58 }
 0x130   : > { %v1041_v31 = vpop.f32.mrf.mxu1 }
 0x131   : > { %v1577_v40 = vadd.f32 %v1509_v18, %v1390_v61  ;;  %v1042_v9 = vadd.f32 %v1041_v31, %v4260_v52  ;;  %v4560_v18 = vpack.c.bf16 %v1169_v16, %v1167_v8  ;;  %v5100_v31 = vld [vmem:[#allocation29_spill] sm:$0xff]  ;;  %v347_v8 = vld [vmem:[%s3494_s12 + $0x180] sm:$0xff]  ;;  %v349_v16 = vld [vmem:[%s3494_s12 + $0x190] sm:$0x3] }
 0x132   : > { %v1708_v53 = vpop.f32.mrf.mxu0 }
 0x133   : > { %v4555_v30 = vadd.f32 %v1706_v29, %v1577_v40  ;;  %5095 = vst [vmem:[#allocation33_spill] sm:$0xff] %v4560_v18 }
 0x135   : > { %5094 = vst [vmem:[#allocation31_spill] sm:$0xff] %v4555_v30  ;;  %v348_v30 = vld [vmem:[%s3494_s12 + $0x188] sm:$0xff]  ;;  %s3299_s12 = sshll.u32 %s5152_s25, 8 }
 0x136   : > { %v1324_v62 = vpop.f32.mrf.mxu2  ;;  %s4766_s27 = scalar_lea.vmem %s4918_s4, %s3299_s12  ;;  %s4772_s25 = scalar_lea.vmem %s4921_s7, %s3299_s12 }
 0x137   : > { %v1391_v35 = vadd.f32 %v1324_v62, %v1042_v9  ;;  %v1511_v61 = vpop.f32.mrf.mxu3  ;;  %v5101_v62 = vld [vmem:[#allocation26_spill] sm:$0xff] }
 0x138   : > { %v1044_v0 = vpop.f32.mrf.mxu1 }
 0x139   : > { %v1578_v29 = vadd.f32 %v1511_v61, %v1391_v35  ;;  %v1045_v58 = vadd.f32 %v1044_v0, %v4278_v28  ;;  %v1170_v35 = vrot.slane %v5101_v62, 2  ;;  %v1171_v61 = vrot.slane %v5098_v50, 2 }
 0x13a   : > { %v1711_v40 = vpop.f32.mrf.mxu0 }
 0x13b   : > { %2861 = vmatmul.msk.bf16.gmra.mxu1 %vm4131_vm4, %v4527_v11  ;;  %1366 = vmatmul.bf16.gmra.mxu2 %v4560_v18  ;;  %v4571_v52 = vadd.f32 %v1708_v53, %v1578_v29  ;;  %v5102_v53 = vld [vmem:[#allocation27_spill] sm:$0xff] }
 0x13c   : > { %3005 = vmatmul.msk.bf16.gmra.mxu3 %vm4131_vm4, %v4565_v1  ;;  %v1173_v24 = vrot.slane %v5102_v53, 2 }
 0x13d   : > { %5099 = vst [vmem:[#allocation3_spill] sm:$0xff] %v4571_v52  ;;  %1750 = vmatmul.bf16.gmra.mxu0 %v5100_v31  ;;  %v3411_v31 = vld [vmem:[%s4915_s1] ss:$0 sm:$0xff] }
 0x13e   : > { %v1327_v44 = vpop.f32.mrf.mxu2  ;;  %v406_v28 = vmul.f32 %v3411_v31, %v347_v8  ;;  %v408_v0 = vmul.f32 %v3411_v31, %v349_v16  ;;  %v1174_v42 = vsel %vm1099_vm5, %v1171_v61, %v1173_v24  ;;  %v407_v50 = vmul.f32 %v3411_v31, %v348_v30  ;;  %v5104_v16 = vld [vmem:[#allocation30_spill] sm:$0xff] }
 0x13f   : > { %v1392_v46 = vadd.f32 %v1327_v44, %v1045_v58  ;;  %v1514_v48 = vpop.f32.mrf.mxu3  ;;  %v1172_v44 = vsel %vm1099_vm5, %v1170_v35, %v1171_v61  ;;  %v5106_v35 = vld [vmem:[#allocation32_spill] sm:$0xff] }
 0x140   : > { %v1046_v9 = vpop.f32.mrf.mxu1  ;;  %v4595_v8 = vpack.c.bf16 %v1174_v42, %v1172_v44 }
 0x141   : > { %v1579_v29 = vadd.f32 %v1514_v48, %v1392_v46  ;;  %v1047_v62 = vadd.f32 %v1046_v9, %v4299_v27  ;;  %v3412_v46 = vld [vmem:[%s4916_s2] ss:$0 sm:$0xff] }
 0x142   : > { %v1713_v52 = vpop.f32.mrf.mxu0  ;;  %v463_v48 = vadd.f32 %v3412_v46, %v406_v28  ;;  %v465_v53 = vadd.f32 %v3412_v46, %v408_v0  ;;  %v464_v30 = vadd.f32 %v3412_v46, %v407_v50  ;;  %v5110_v50 = vld [vmem:[#allocation34_spill] sm:$0xff] }
 0x143   : > { %v4587_v58 = vadd.f32 %v1711_v40, %v1579_v29  ;;  %v5105_v29 = vmax.f32 %v5104_v16, 0.0  ;;  %v1175_v46 = vrot.slane %v5110_v50, 2 }
 0x144   : > { %v517_v31 = vmax.f32 %v463_v48, 0.0  ;;  %v519_v9 = vmax.f32 %v465_v53, 0.0  ;;  %v1176_v48 = vrot.slane %v5106_v35, 2  ;;  %v5111_v53 = vld [vmem:[#allocation35_spill] sm:$0xff] }
 0x145   : > { %5103 = vst [vmem:[#allocation5_spill] sm:$0xff] %v4587_v58  ;;  %v4600_v58 = vpack.c.bf16 %v5106_v35, %v5105_v29 }
 0x146   : > { %v1329_v18 = vpop.f32.mrf.mxu2  ;;  %v4617_v24 = vsel %vm527_vm0, %v517_v31, 0.0  ;;  %v4621_v0 = vsel %vm538_vm1, %v519_v9, 0.0  ;;  %v1177_v9 = vsel %vm1099_vm5, %v1175_v46, %v1176_v48 }
 0x147   : > { %v1393_v15 = vadd.f32 %v1329_v18, %v1047_v62  ;;  %v1516_v11 = vpop.f32.mrf.mxu3  ;;  %5109 = vst [vmem:[#allocation7_spill] sm:$0xff] %v4621_v0  ;;  %v1604_v29 = vrot.slane %v4617_v24, 1 }
 0x148   : > { %v1049_v40 = vpop.f32.mrf.mxu1 }
 0x149   : > { %v1580_v61 = vadd.f32 %v1516_v11, %v1393_v15  ;;  %v1050_v42 = vadd.f32 %v1049_v40, %v4314_v54  ;;  %v4613_v11 = vmax.f32 %v464_v30, 0.0  ;;  %v1178_v54 = vrot.slane %v5111_v53, 2 }
 0x14a   : > { %v1716_v27 = vpop.f32.mrf.mxu0 }
 0x14b   : > { %2864 = vmatmul.msk.bf16.gmra.mxu1 %vm4131_vm4, %v4565_v1  ;;  %1371 = vmatmul.bf16.gmra.mxu2 %v4595_v8  ;;  %v4606_v18 = vadd.f32 %v1713_v52, %v1580_v61  ;;  %v1605_v3 = vrot.slane %v4613_v11, 1  ;;  %v1607_v61 = vrot.slane %v4621_v0, 1  ;;  %v4639_v0 = vpack.c.bf16 %v4613_v11, %v517_v31 }
 0x14c   : > { %3008 = vmatmul.msk.bf16.gmra.mxu3 %vm4131_vm4, %v4600_v58 }
 0x14d   : > { %5107 = vst [vmem:[#allocation6_spill] sm:$0xff] %v4606_v18  ;;  %1755 = vmatmul.bf16.gmra.mxu0 %v4115_v63  ;;  %v1606_v35 = vsel %vm679_vm2, %v1604_v29, %v1605_v3  ;;  %v1608_v28 = vsel %vm679_vm2, %v1605_v3, %v1607_v61 }
 0x14e   : > { %v1332_v15 = vpop.f32.mrf.mxu2 }
 0x14f   : > { %v1394_v52 = vadd.f32 %v1332_v15, %v1050_v42  ;;  %v1519_v44 = vpop.f32.mrf.mxu3  ;;  %v1179_v42 = vsel %vm1099_vm5, %v1176_v48, %v1178_v54 }
 0x150   : > { %v1051_v62 = vpop.f32.mrf.mxu1  ;;  %v4636_v53 = vpack.c.bf16 %v1179_v42, %v1177_v9 }
 0x151   : > { %v1581_v40 = vadd.f32 %v1519_v44, %v1394_v52  ;;  %v1052_v15 = vadd.f32 %v1051_v62, %v4341_v55 }
 0x152   : > { %v1718_v16 = vpop.f32.mrf.mxu0 }
 0x153   : > { %v4629_v30 = vadd.f32 %v1716_v27, %v1581_v40  ;;  %v4641_v27 = vpack.c.bf16 %v1608_v28, %v1606_v35 }
 0x156   : > { %v1334_v52 = vpop.f32.mrf.mxu2 }
 0x157   : > { %v1395_v44 = vadd.f32 %v1334_v52, %v1052_v15  ;;  %v1521_v50 = vpop.f32.mrf.mxu3 }
 0x158   : > { %v1054_v18 = vpop.f32.mrf.mxu1 }
 0x159   : > { %v1582_v46 = vadd.f32 %v1521_v50, %v1395_v44  ;;  %v1055_v31 = vadd.f32 %v1054_v18, %v4362_v34 }
 0x15a   : > { %v1721_v40 = vpop.f32.mrf.mxu0 }
 0x15b   : > { %2867 = vmatmul.msk.bf16.gmra.mxu1 %vm4131_vm4, %v4600_v58  ;;  %1376 = vmatmul.bf16.gmra.mxu2 %v4636_v53  ;;  %v4647_v55 = vadd.f32 %v1718_v16, %v1582_v46 }
 0x15c   : > { %3011 = vmatmul.msk.bf16.gmra.mxu3 %vm4131_vm4, %v4639_v0 }
 0x15d   : > { %1760 = vmatmul.bf16.gmra.mxu0 %v4641_v27 }
 0x15e   : > { %v1337_v62 = vpop.f32.mrf.mxu2 }
 0x15f   : > { %v1396_v48 = vadd.f32 %v1337_v62, %v1055_v31  ;;  %v1524_v54 = vpop.f32.mrf.mxu3 }
 0x160   : > { %v1056_v29 = vpop.f32.mrf.mxu1 }
 0x161   : > { %v1583_v3 = vadd.f32 %v1524_v54, %v1396_v48  ;;  %v1057_v42 = vadd.f32 %v1056_v29, %v4383_v45 }
 0x162   : > { %v1723_v61 = vpop.f32.mrf.mxu0 }
 0x163   : > { %v4654_v9 = vadd.f32 %v1721_v40, %v1583_v3 }
 0x166   : > { %v1339_v16 = vpop.f32.mrf.mxu2 }
 0x167   : > { %v1397_v15 = vadd.f32 %v1339_v16, %v1057_v42  ;;  %v1526_v35 = vpop.f32.mrf.mxu3 }
 0x168   : > { %v1059_v28 = vpop.f32.mrf.mxu1 }
 0x169   : > { %v1584_v52 = vadd.f32 %v1526_v35, %v1397_v15  ;;  %v1060_v45 = vadd.f32 %v1059_v28, %v4253_v41 }
 0x16a   : > { %v1726_v44 = vpop.f32.mrf.mxu0 }
 0x16b   : > { %1879 = vmatmul.bf16.vlgmr.msra.gmra.mxu1 %v4157_v20  ;;  %3158 = vmatmul.msk.bf16.vlgmr.msra.gmra.mxu2 %vm4131_vm4, %v4162_v17  ;;  %v4661_v34 = vadd.f32 %v1723_v61, %v1584_v52 }
 0x16c   : > { %2263 = vmatmul.bf16.vlgmr.msra.gmra.mxu3 %v4005_v49 }
 0x16d   : > { %2457 = vmatmul.bf16.vlgmr.msra.gmra.mxu0 %v4176_v33 }
 0x16e   : > { %v1342_v18 = vpop.f32.mrf.mxu2 }
 0x16f   : > { %v1398_v50 = vadd.f32 %v1342_v18, %v1060_v45  ;;  %v1529_v46 = vpop.f32.mrf.mxu3 }
 0x170   : > { %v1061_v40 = vpop.f32.mrf.mxu1 }
 0x171   : > { %v1585_v31 = vadd.f32 %v1529_v46, %v1398_v50  ;;  %v1062_v20 = vadd.f32 %v1061_v40, %v4272_v12 }
 0x172   : > { %v1728_v62 = vpop.f32.mrf.mxu0 }
 0x173   : > { %v4666_v48 = vadd.f32 %v1726_v44, %v1585_v31 }
 0x176   : > { %v1344_v54 = vpop.f32.mrf.mxu2 }
 0x177   : > { %v1399_v17 = vadd.f32 %v1344_v54, %v1062_v20  ;;  %v1531_v29 = vpop.f32.mrf.mxu3 }
 0x178   : > { %v1064_v3 = vpop.f32.mrf.mxu1 }
 0x179   : > { %v1586_v61 = vadd.f32 %v1531_v29, %v1399_v17  ;;  %v1065_v12 = vadd.f32 %v1064_v3, %v4295_v23 }
 0x17a   : > { %v1731_v49 = vpop.f32.mrf.mxu0 }
 0x17b   : > { %1884 = vmatmul.bf16.gmra.mxu1 %v4176_v33  ;;  %3161 = vmatmul.msk.bf16.gmra.mxu2 %vm4131_vm4, %v4181_v4  ;;  %v4673_v41 = vadd.f32 %v1728_v62, %v1586_v61 }
 0x17c   : > { %2268 = vmatmul.bf16.gmra.mxu3 %v4117_v39 }
 0x17d   : > { %2462 = vmatmul.bf16.gmra.mxu0 %v4208_v19 }
 0x17e   : > { %v1347_v42 = vpop.f32.mrf.mxu2 }
 0x17f   : > { %v1400_v16 = vadd.f32 %v1347_v42, %v1065_v12  ;;  %v1534_v15 = vpop.f32.mrf.mxu3 }
 0x180   : > { %v1066_v35 = vpop.f32.mrf.mxu1 }
 0x181   : > { %v1587_v28 = vadd.f32 %v1534_v15, %v1400_v16  ;;  %v1067_v33 = vadd.f32 %v1066_v35, %v4308_v32 }
 0x182   : > { %v1733_v52 = vpop.f32.mrf.mxu0 }
 0x183   : > { %v4678_v44 = vadd.f32 %v1731_v49, %v1587_v28 }
 0x186   : > { %v1349_v45 = vpop.f32.mrf.mxu2 }
 0x187   : > { %v1401_v4 = vadd.f32 %v1349_v45, %v1067_v33  ;;  %v1536_v18 = vpop.f32.mrf.mxu3 }
 0x188   : > { %v1069_v50 = vpop.f32.mrf.mxu1 }
 0x189   : > { %v1588_v46 = vadd.f32 %v1536_v18, %v1401_v4  ;;  %v1070_v32 = vadd.f32 %v1069_v50, %v4337_v13 }
 0x18a   : > { %v1736_v39 = vpop.f32.mrf.mxu0 }
 0x18b   : > { %1889 = vmatmul.bf16.gmra.mxu1 %v4208_v19  ;;  %3164 = vmatmul.msk.bf16.gmra.mxu2 %vm4131_vm4, %v4213_v6  ;;  %v4685_v23 = vadd.f32 %v1733_v52, %v1588_v46 }
 0x18c   : > { %2273 = vmatmul.bf16.gmra.mxu3 %v3662_v59 }
 0x18d   : > { %2467 = vmatmul.bf16.gmra.mxu0 %v4228_v43 }
 0x18e   : > { %v1352_v40 = vpop.f32.mrf.mxu2 }
 0x18f   : > { %v1402_v31 = vadd.f32 %v1352_v40, %v1070_v32  ;;  %v1539_v62 = vpop.f32.mrf.mxu3  ;;  %v5114_v32 = vld [vmem:[#allocation28_spill] sm:$0xff]  ;;  %v5115_v40 = vld [vmem:[#allocation43_spill] sm:$0xff] }
 0x190   : > { %v1071_v20 = vpop.f32.mrf.mxu1 }
 0x191   : > { %v1589_v54 = vadd.f32 %v1539_v62, %v1402_v31  ;;  %v1072_v19 = vadd.f32 %v1071_v20, %v4356_v2  ;;  %v5116_v31 = vld [vmem:[#allocation38_spill] sm:$0xff] }
 0x192   : > { %v1738_v17 = vpop.f32.mrf.mxu0 }
 0x193   : > { %v4690_v29 = vadd.f32 %v1736_v39, %v1589_v54  ;;  %v5113_v39 = vld [vmem:[#allocation40_spill] sm:$0xff] }
 0x196   : > { %v1354_v3 = vpop.f32.mrf.mxu2 }
 0x197   : > { %v1403_v6 = vadd.f32 %v1354_v3, %v1072_v19  ;;  %v1541_v61 = vpop.f32.mrf.mxu3 }
 0x198   : > { %v1074_v49 = vpop.f32.mrf.mxu1 }
 0x199   : > { %v1590_v12 = vadd.f32 %v1541_v61, %v1403_v6  ;;  %v1075_v2 = vadd.f32 %v1074_v49, %v4379_v22 }
 0x19a   : > { %v1741_v59 = vpop.f32.mrf.mxu0 }
 0x19b   : > { %1894 = vmatmul.bf16.gmra.mxu1 %v4228_v43  ;;  %3167 = vmatmul.msk.bf16.gmra.mxu2 %vm4131_vm4, %v4235_v56  ;;  %v4697_v13 = vadd.f32 %v1738_v17, %v1590_v12  ;;  %v5112_v43 = vld [vmem:[#allocation50_spill] sm:$0xff] }
 0x19c   : > { %2278 = vmatmul.bf16.gmra.mxu3 %v3802_v14 }
 0x19d   : > { %2472 = vmatmul.bf16.gmra.mxu0 %v4276_v36 }
 0x19e   : > { %v1357_v42 = vpop.f32.mrf.mxu2 }
 0x19f   : > { %v1404_v16 = vadd.f32 %v1357_v42, %v1075_v2  ;;  %v1544_v15 = vpop.f32.mrf.mxu3 }
 0x1a0   : > { %v1076_v35 = vpop.f32.mrf.mxu1 }
 0x1a1   : > { %v1591_v28 = vadd.f32 %v1544_v15, %v1404_v16  ;;  %v1077_v45 = vadd.f32 %v1076_v35, %v5112_v43  ;;  %v5118_v35 = vld [vmem:[#allocation44_spill] sm:$0xff]  ;;  %v5120_v43 = vld [vmem:[#allocation47_spill] sm:$0xff] }
 0x1a2   : > { %v1743_v52 = vpop.f32.mrf.mxu0 }
 0x1a3   : > { %v4702_v33 = vadd.f32 %v1741_v59, %v1591_v28 }
 0x1a6   : > { %v1359_v4 = vpop.f32.mrf.mxu2 }
 0x1a7   : > { %v1405_v56 = vadd.f32 %v1359_v4, %v1077_v45  ;;  %v1546_v18 = vpop.f32.mrf.mxu3  ;;  %v5121_v45 = vld [vmem:[#allocation41_spill] sm:$0xff] }
 0x1a8   : > { %v1079_v50 = vpop.f32.mrf.mxu1 }
 0x1a9   : > { %v1592_v46 = vadd.f32 %v1546_v18, %v1405_v56  ;;  %v1080_v62 = vadd.f32 %v1079_v50, %v5116_v31 }
 0x1aa   : > { %v1746_v14 = vpop.f32.mrf.mxu0 }
 0x1ab   : > { %1899 = vmatmul.bf16.gmra.mxu1 %v4276_v36  ;;  %3170 = vmatmul.msk.bf16.gmra.mxu2 %vm4131_vm4, %v5113_v39  ;;  %v4709_v22 = vadd.f32 %v1743_v52, %v1592_v46  ;;  %v5117_v36 = vld [vmem:[#allocation39_spill] sm:$0xff]  ;;  %v5119_v52 = vld [vmem:[#allocation36_spill] sm:$0xff] }
 0x1ac   : > { %2283 = vmatmul.bf16.gmra.mxu3 %v5114_v32 }
 0x1ad   : > { %2477 = vmatmul.bf16.gmra.mxu0 %v5115_v40 }
 0x1ae   : > { %v1362_v20 = vpop.f32.mrf.mxu2 }
 0x1af   : > { %v1406_v54 = vadd.f32 %v1362_v20, %v1080_v62  ;;  %v1549_v17 = vpop.f32.mrf.mxu3 }
 0x1b0   : > { %v1081_v19 = vpop.f32.mrf.mxu1 }
 0x1b1   : > { %v1593_v3 = vadd.f32 %v1549_v17, %v1406_v54  ;;  %v1082_v49 = vadd.f32 %v1081_v19, %v5117_v36 }
 0x1b2   : > { %v1748_v6 = vpop.f32.mrf.mxu0 }
 0x1b3   : > { %v4714_v61 = vadd.f32 %v1746_v14, %v1593_v3 }
 0x1b6   : > { %v1364_v12 = vpop.f32.mrf.mxu2 }
 0x1b7   : > { %v1407_v59 = vadd.f32 %v1364_v12, %v1082_v49  ;;  %v1551_v2 = vpop.f32.mrf.mxu3  ;;  %v5124_v49 = vld [vmem:[#allocation10_spill] sm:$0xff]  ;;  %v5125_v12 = vld [vmem:[#allocation52_spill] sm:$0xff] }
 0x1b8   : > { %v1084_v42 = vpop.f32.mrf.mxu1 }
 0x1b9   : > { %v1594_v16 = vadd.f32 %v1551_v2, %v1407_v59  ;;  %v1085_v4 = vadd.f32 %v1084_v42, %v5121_v45  ;;  %v5126_v59 = vld [vmem:[#allocation45_spill] sm:$0xff] }
 0x1ba   : > { %v1751_v15 = vpop.f32.mrf.mxu0 }
 0x1bb   : > { %1904 = vmatmul.bf16.gmra.mxu1 %v5115_v40  ;;  %3173 = vmatmul.msk.bf16.gmra.mxu2 %vm4131_vm4, %v5118_v35  ;;  %v4721_v28 = vadd.f32 %v1748_v6, %v1594_v16  ;;  %v5122_v40 = vld [vmem:[#allocation42_spill] sm:$0xff]  ;;  %v5123_v6 = vld [vmem:[#allocation48_spill] sm:$0xff] }
 0x1bc   : > { %2288 = vmatmul.bf16.gmra.mxu3 %v5119_v52 }
 0x1bd   : > { %2482 = vmatmul.bf16.gmra.mxu0 %v5120_v43 }
 0x1be   : > { %v1367_v56 = vpop.f32.mrf.mxu2 }
 0x1bf   : > { %v1408_v18 = vadd.f32 %v1367_v56, %v1085_v4  ;;  %v1554_v50 = vpop.f32.mrf.mxu3 }
 0x1c0   : > { %v1086_v46 = vpop.f32.mrf.mxu1 }
 0x1c1   : > { %v1595_v14 = vadd.f32 %v1554_v50, %v1408_v18  ;;  %v1087_v31 = vadd.f32 %v1086_v46, %v5122_v40 }
 0x1c2   : > { %v1753_v39 = vpop.f32.mrf.mxu0 }
 0x1c3   : > { %v4726_v32 = vadd.f32 %v1751_v15, %v1595_v14 }
 0x1c6   : > { %v1369_v62 = vpop.f32.mrf.mxu2 }
 0x1c7   : > { %v1409_v20 = vadd.f32 %v1369_v62, %v1087_v31  ;;  %v1556_v54 = vpop.f32.mrf.mxu3  ;;  %v5128_v62 = vld [vmem:[#allocation18_spill] sm:$0xff] }
 0x1c8   : > { %v1089_v17 = vpop.f32.mrf.mxu1 }
 0x1c9   : > { %v1596_v19 = vadd.f32 %v1556_v54, %v1409_v20  ;;  %v1090_v2 = vadd.f32 %v1089_v17, %v5126_v59  ;;  %v5129_v20 = vld [vmem:[#allocation49_spill] sm:$0xff] }
 0x1ca   : > { %v1756_v3 = vpop.f32.mrf.mxu0 }
 0x1cb   : > { %1909 = vmatmul.bf16.gmra.mxu1 %v5120_v43  ;;  %3176 = vmatmul.msk.bf16.gmra.mxu2 %vm4131_vm4, %v5123_v6  ;;  %v4733_v36 = vadd.f32 %v1753_v39, %v1596_v19  ;;  %v5127_v43 = vld [vmem:[#allocation46_spill] sm:$0xff] }
 0x1cc   : > { %2293 = vmatmul.bf16.gmra.mxu3 %v5124_v49 }
 0x1cd   : > { %2487 = vmatmul.bf16.gmra.mxu0 %v5125_v12 }
 0x1ce   : > { %v1372_v42 = vpop.f32.mrf.mxu2 }
 0x1cf   : > { %v1410_v16 = vadd.f32 %v1372_v42, %v1090_v2  ;;  %v1559_v15 = vpop.f32.mrf.mxu3  ;;  %v5130_v2 = vld [vmem:[#allocation51_spill] sm:$0xff] }
 0x1d0   : > { %v1091_v35 = vpop.f32.mrf.mxu1 }
 0x1d1   : > { %v1597_v52 = vadd.f32 %v1559_v15, %v1410_v16  ;;  %v1092_v56 = vadd.f32 %v1091_v35, %v5127_v43 }
 0x1d2   : > { %v1758_v45 = vpop.f32.mrf.mxu0 }
 0x1d3   : > { %v4738_v4 = vadd.f32 %v1756_v3, %v1597_v52 }
 0x1d6   : > { %v1374_v18 = vpop.f32.mrf.mxu2 }
 0x1d7   : > { %v1411_v50 = vadd.f32 %v1374_v18, %v1092_v56  ;;  %v1561_v46 = vpop.f32.mrf.mxu3 }
 0x1d8   : > { %v1094_v14 = vpop.f32.mrf.mxu1 }
 0x1d9   : > { %v1598_v39 = vadd.f32 %v1561_v46, %v1411_v50  ;;  %v1095_v54 = vadd.f32 %v1094_v14, %v5129_v20 }
 0x1da   : > { %v1761_v40 = vpop.f32.mrf.mxu0 }
 0x1db   : > { %1914 = vmatmul.bf16.gmra.mxu1 %v5125_v12  ;;  %3179 = vmatmul.msk.bf16.gmra.mxu2 %vm4131_vm4, %v4401_v7  ;;  %v4745_v31 = vadd.f32 %v1758_v45, %v1598_v39  ;;  %v2570_v39 = vld [vmem:[%s4766_s27] sm:$0xff] }
 0x1dc   : > { %2298 = vmatmul.bf16.gmra.mxu3 %v5128_v62 }
 0x1dd   : > { %2492 = vmatmul.bf16.gmra.mxu0 %v4432_v26 }
 0x1de   : > { %v1377_v17 = vpop.f32.mrf.mxu2 }
 0x1df   : > { %v1412_v19 = vadd.f32 %v1377_v17, %v1095_v54  ;;  %v1564_v3 = vpop.f32.mrf.mxu3 }
 0x1e0   : > { %v1096_v6 = vpop.f32.mrf.mxu1 }
 0x1e1   : > { %v1599_v49 = vadd.f32 %v1564_v3, %v1412_v19  ;;  %v1097_v42 = vadd.f32 %v1096_v6, %v5130_v2 }
 0x1e2   : > { %v1763_v59 = vpop.f32.mrf.mxu0 }
 0x1e3   : > { %v4750_v12 = vadd.f32 %v1761_v40, %v1599_v49  ;;  %v5131_v40 = vld [vmem:[#allocation8_spill] sm:$0xff]  ;;  %v2571_v49 = vld [vmem:[%s4766_s27 + $0x8] sm:$0xff] }
 0x1e6   : > { %v1379_v7 = vpop.f32.mrf.mxu2 }
 0x1e7   : > { %v1413_v16 = vadd.f32 %v1379_v7, %v1097_v42  ;;  %v1566_v15 = vpop.f32.mrf.mxu3  ;;  %v5132_v42 = vld [vmem:[#allocation11_spill] sm:$0xff] }
 0x1e8   : > { %v1880_v35 = vpop.f32.mrf.mxu1 }
 0x1e9   : > { %v1600_v52 = vadd.f32 %v1566_v15, %v1413_v16  ;;  %v1960_v56 = vadd.f32 %v1880_v35, %v4428_v21 }
 0x1ea   : > { %v2458_v45 = vpop.f32.mrf.mxu0 }
 0x1eb   : > { %1919 = vmatmul.bf16.gmra.mxu1 %v4432_v26  ;;  %3182 = vmatmul.msk.bf16.gmra.mxu2 %vm4131_vm4, %v4437_v25  ;;  %v4757_v43 = vadd.f32 %v1763_v59, %v1600_v52 }
 0x1ec   : > { %2303 = vmatmul.bf16.gmra.mxu3 %v3998_v37 }
 0x1ed   : > { %2497 = vmatmul.bf16.gmra.mxu0 %v4458_v60 }
 0x1ee   : > { %v2067_v18 = vpop.f32.mrf.mxu2 }
 0x1ef   : > { %v2147_v50 = vadd.f32 %v2067_v18, %v1960_v56  ;;  %v2264_v26 = vpop.f32.mrf.mxu3  ;;  %v2572_v56 = vld [vmem:[%s4766_s27 + $0x10] sm:$0xff] }
 0x1f0   : > { %v1882_v25 = vpop.f32.mrf.mxu1 }
 0x1f1   : > { %v2344_v46 = vadd.f32 %v2264_v26, %v2147_v50  ;;  %v1961_v62 = vadd.f32 %v1882_v25, %v5131_v40 }
 0x1f2   : > { %v2460_v14 = vpop.f32.mrf.mxu0 }
 0x1f3   : > { %v2538_v37 = vadd.f32 %v2458_v45, %v2344_v46 }
 0x1f5   : > { %v2602_v21 = vadd.f32 %v2570_v39, %v2538_v37 }
 0x1f6   : > { %v2069_v20 = vpop.f32.mrf.mxu2 }
 0x1f7   : > { %2634 = vst [vmem:[%s4772_s25] sm:$0xff] %v2602_v21  ;;  %v2148_v54 = vadd.f32 %v2069_v20, %v1961_v62  ;;  %v2266_v17 = vpop.f32.mrf.mxu3  ;;  %v2573_v21 = vld [vmem:[%s4766_s27 + $0x18] sm:$0xff]  ;;  %v5134_v62 = vld [vmem:[#allocation12_spill] sm:$0xff] }
 0x1f8   : > { %v1885_v19 = vpop.f32.mrf.mxu1 }
 0x1f9   : > { %v2345_v3 = vadd.f32 %v2266_v17, %v2148_v54  ;;  %v1962_v7 = vadd.f32 %v1885_v19, %v5132_v42  ;;  %v5135_v54 = vld [vmem:[#allocation13_spill] sm:$0xff] }
 0x1fa   : > { %v2463_v6 = vpop.f32.mrf.mxu0 }
 0x1fb   : > { %v2539_v59 = vadd.f32 %v2460_v14, %v2345_v3  ;;  %1924 = vmatmul.bf16.gmra.mxu1 %v4458_v60  ;;  %3185 = vmatmul.msk.bf16.gmra.mxu2 %vm4131_vm4, %v4463_v51  ;;  %v5133_v51 = vld [vmem:[#allocation9_spill] sm:$0xff] }
 0x1fc   : > { %2308 = vmatmul.bf16.gmra.mxu3 %v4113_v38 }
 0x1fd   : > { %2502 = vmatmul.bf16.gmra.mxu0 %v4496_v57  ;;  %v2603_v2 = vadd.f32 %v2571_v49, %v2539_v59 }
 0x1fe   : > { %v2072_v16 = vpop.f32.mrf.mxu2 }
 0x1ff   : > { %2635 = vst [vmem:[%s4772_s25 + $0x8] sm:$0xff] %v2603_v2  ;;  %v2149_v15 = vadd.f32 %v2072_v16, %v1962_v7  ;;  %v2269_v35 = vpop.f32.mrf.mxu3  ;;  %v2574_v2 = vld [vmem:[%s4766_s27 + $0x20] sm:$0xff] }
 0x200   : > { %v1887_v52 = vpop.f32.mrf.mxu1 }
 0x201   : > { %v2346_v45 = vadd.f32 %v2269_v35, %v2149_v15  ;;  %v1963_v26 = vadd.f32 %v1887_v52, %v5133_v51  ;;  %v5137_v51 = vld [vmem:[#allocation23_spill] sm:$0xff] }
 0x202   : > { %v2465_v60 = vpop.f32.mrf.mxu0 }
 0x203   : > { %v2540_v18 = vadd.f32 %v2463_v6, %v2346_v45 }
 0x205   : > { %v2604_v50 = vadd.f32 %v2572_v56, %v2540_v18  ;;  %v2575_v18 = vld [vmem:[%s4766_s27 + $0x28] sm:$0xff] }
 0x206   : > { %v2074_v38 = vpop.f32.mrf.mxu2 }
 0x207   : > { %2636 = vst [vmem:[%s4772_s25 + $0x10] sm:$0xff] %v2604_v50  ;;  %v2150_v25 = vadd.f32 %v2074_v38, %v1963_v26  ;;  %v2271_v46 = vpop.f32.mrf.mxu3  ;;  %v5138_v26 = vld [vmem:[#allocation20_spill] sm:$0xff]  ;;  %v5139_v38 = vld [vmem:[#allocation33_spill] sm:$0xff] }
 0x208   : > { %v1890_v14 = vpop.f32.mrf.mxu1 }
 0x209   : > { %v2347_v39 = vadd.f32 %v2271_v46, %v2150_v25  ;;  %v1964_v17 = vadd.f32 %v1890_v14, %v5135_v54  ;;  %v5140_v46 = vld [vmem:[#allocation22_spill] sm:$0xff] }
 0x20a   : > { %v2468_v37 = vpop.f32.mrf.mxu0 }
 0x20b   : > { %v2541_v40 = vadd.f32 %v2465_v60, %v2347_v39  ;;  %1929 = vmatmul.bf16.gmra.mxu1 %v4496_v57  ;;  %3188 = vmatmul.msk.bf16.gmra.mxu2 %vm4131_vm4, %v4501_v5  ;;  %v5136_v5 = vld [vmem:[#allocation19_spill] sm:$0xff] }
 0x20c   : > { %2313 = vmatmul.bf16.gmra.mxu3 %v5134_v62 }
 0x20d   : > { %2507 = vmatmul.bf16.gmra.mxu0 %v4522_v47  ;;  %v2605_v20 = vadd.f32 %v2573_v21, %v2541_v40 }
 0x20e   : > { %v2077_v19 = vpop.f32.mrf.mxu2 }
 0x20f   : > { %2637 = vst [vmem:[%s4772_s25 + $0x18] sm:$0xff] %v2605_v20  ;;  %v2151_v3 = vadd.f32 %v2077_v19, %v1964_v17  ;;  %v2274_v6 = vpop.f32.mrf.mxu3  ;;  %v2576_v20 = vld [vmem:[%s4766_s27 + $0x30] sm:$0xff] }
 0x210   : > { %v1892_v49 = vpop.f32.mrf.mxu1  ;;  %v5141_v19 = vld [vmem:[#allocation24_spill] sm:$0xff] }
 0x211   : > { %v2348_v59 = vadd.f32 %v2274_v6, %v2151_v3  ;;  %v1965_v16 = vadd.f32 %v1892_v49, %v5136_v5 }
 0x212   : > { %v2470_v57 = vpop.f32.mrf.mxu0 }
 0x213   : > { %v2542_v42 = vadd.f32 %v2468_v37, %v2348_v59 }
 0x215   : > { %v2606_v7 = vadd.f32 %v2574_v2, %v2542_v42 }
 0x216   : > { %v2079_v15 = vpop.f32.mrf.mxu2 }
 0x217   : > { %2638 = vst [vmem:[%s4772_s25 + $0x20] sm:$0xff] %v2606_v7  ;;  %v2152_v35 = vadd.f32 %v2079_v15, %v1965_v16  ;;  %v2276_v52 = vpop.f32.mrf.mxu3  ;;  %v2577_v7 = vld [vmem:[%s4766_s27 + $0x38] sm:$0xff] }
 0x218   : > { %v1895_v45 = vpop.f32.mrf.mxu1  ;;  %v5142_v16 = vld [vmem:[#allocation29_spill] sm:$0xff] }
 0x219   : > { %v2349_v60 = vadd.f32 %v2276_v52, %v2152_v35  ;;  %v1966_v14 = vadd.f32 %v1895_v45, %v5140_v46  ;;  %v5143_v35 = vld [vmem:[#allocation31_spill] sm:$0xff] }
 0x21a   : > { %v2473_v56 = vpop.f32.mrf.mxu0 }
 0x21b   : > { %v2543_v50 = vadd.f32 %v2470_v57, %v2349_v60  ;;  %1934 = vmatmul.bf16.gmra.mxu1 %v4522_v47  ;;  %3191 = vmatmul.msk.bf16.gmra.mxu2 %vm4131_vm4, %v5137_v51 }
 0x21c   : > { %2318 = vmatmul.bf16.gmra.mxu3 %v5138_v26  ;;  %v2578_v26 = vld [vmem:[%s4766_s27 + $0x40] sm:$0xff] }
 0x21d   : > { %2512 = vmatmul.bf16.gmra.mxu0 %v5139_v38  ;;  %v2607_v25 = vadd.f32 %v2575_v18, %v2543_v50 }
 0x21e   : > { %v2082_v39 = vpop.f32.mrf.mxu2 }
 0x21f   : > { %2639 = vst [vmem:[%s4772_s25 + $0x28] sm:$0xff] %v2607_v25  ;;  %v2153_v37 = vadd.f32 %v2082_v39, %v1966_v14  ;;  %v2279_v21 = vpop.f32.mrf.mxu3 }
 0x220   : > { %v1897_v40 = vpop.f32.mrf.mxu1 }
 0x221   : > { %v2350_v62 = vadd.f32 %v2279_v21, %v2153_v37  ;;  %v1967_v3 = vadd.f32 %v1897_v40, %v5141_v19 }
 0x222   : > { %v2475_v47 = vpop.f32.mrf.mxu0 }
 0x223   : > { %v2544_v54 = vadd.f32 %v2473_v56, %v2350_v62 }
 0x225   : > { %v2608_v17 = vadd.f32 %v2576_v20, %v2544_v54 }
 0x226   : > { %v2084_v6 = vpop.f32.mrf.mxu2 }
 0x227   : > { %2640 = vst [vmem:[%s4772_s25 + $0x30] sm:$0xff] %v2608_v17  ;;  %v2154_v49 = vadd.f32 %v2084_v6, %v1967_v3  ;;  %v2281_v59 = vpop.f32.mrf.mxu3  ;;  %v5145_v17 = vld [vmem:[#allocation5_spill] sm:$0xff] }
 0x228   : > { %v1900_v57 = vpop.f32.mrf.mxu1 }
 0x229   : > { %v2351_v2 = vadd.f32 %v2281_v59, %v2154_v49  ;;  %v1968_v52 = vadd.f32 %v1900_v57, %v5143_v35 }
 0x22a   : > { %v2478_v42 = vpop.f32.mrf.mxu0 }
 0x22b   : > { %v2545_v5 = vadd.f32 %v2475_v47, %v2351_v2  ;;  %1939 = vmatmul.bf16.gmra.mxu1 %v5139_v38  ;;  %3194 = vmatmul.msk.bf16.gmra.mxu2 %vm4131_vm4, %v4565_v1  ;;  %v5144_v1 = vld [vmem:[#allocation3_spill] sm:$0xff]  ;;  %v1798_v2 = vrot.slane %v4617_v24, 2 }
 0x22c   : > { %2323 = vmatmul.bf16.gmra.mxu3 %v5142_v16  ;;  %v2579_v47 = vld [vmem:[%s4766_s27 + $0x48] sm:$0xff] }
 0x22d   : > { %2517 = vmatmul.bf16.gmra.mxu0 %v4595_v8  ;;  %v2609_v15 = vadd.f32 %v2577_v7, %v2545_v5  ;;  %v2580_v7 = vld [vmem:[%s4766_s27 + $0x50] sm:$0xff] }
 0x22e   : > { %v2087_v45 = vpop.f32.mrf.mxu2 }
 0x22f   : > { %2641 = vst [vmem:[%s4772_s25 + $0x38] sm:$0xff] %v2609_v15  ;;  %v2155_v60 = vadd.f32 %v2087_v45, %v1968_v52  ;;  %v2284_v56 = vpop.f32.mrf.mxu3  ;;  %v5147_v15 = vld [vmem:[#allocation6_spill] sm:$0xff] }
 0x230   : > { %v1902_v18 = vpop.f32.mrf.mxu1 }
 0x231   : > { %v2352_v50 = vadd.f32 %v2284_v56, %v2155_v60  ;;  %v1969_v46 = vadd.f32 %v1902_v18, %v5144_v1 }
 0x232   : > { %v2480_v51 = vpop.f32.mrf.mxu0 }
 0x233   : > { %v2546_v38 = vadd.f32 %v2478_v42, %v2352_v50  ;;  %v1799_v42 = vrot.slane %v4613_v11, 2 }
 0x235   : > { %v2610_v25 = vadd.f32 %v2578_v26, %v2546_v38  ;;  %v1800_v52 = vsel %vm1099_vm5, %v1798_v2, %v1799_v42  ;;  %v2581_v26 = vld [vmem:[%s4766_s27 + $0x58] sm:$0xff] }
 0x236   : > { %v2089_v14 = vpop.f32.mrf.mxu2 }
 0x237   : > { %2642 = vst [vmem:[%s4772_s25 + $0x40] sm:$0xff] %v2610_v25  ;;  %v2156_v39 = vadd.f32 %v2089_v14, %v1969_v46  ;;  %v2286_v37 = vpop.f32.mrf.mxu3 }
 0x238   : > { %v1905_v21 = vpop.f32.mrf.mxu1 }
 0x239   : > { %v2353_v40 = vadd.f32 %v2286_v37, %v2156_v39  ;;  %v1970_v19 = vadd.f32 %v1905_v21, %v5145_v17 }
 0x23a   : > { %v2483_v62 = vpop.f32.mrf.mxu0 }
 0x23b   : > { %v2547_v20 = vadd.f32 %v2480_v51, %v2353_v40  ;;  %1944 = vmatmul.bf16.gmra.mxu1 %v4595_v8  ;;  %3197 = vmatmul.msk.bf16.gmra.mxu2 %vm4131_vm4, %v4600_v58  ;;  %v5146_v58 = vld [vmem:[#allocation7_spill] sm:$0xff] }
 0x23c   : > { %2328 = vmatmul.bf16.gmra.mxu3 %v4115_v63  ;;  %v1801_v63 = vrot.slane %v5146_v58, 2 }
 0x23d   : > { %2522 = vmatmul.bf16.gmra.mxu0 %v4636_v53  ;;  %v2611_v54 = vadd.f32 %v2579_v47, %v2547_v20 }
 0x23e   : > { %v2092_v3 = vpop.f32.mrf.mxu2  ;;  %v1802_v45 = vsel %vm1099_vm5, %v1799_v42, %v1801_v63 }
 0x23f   : > { %2643 = vst [vmem:[%s4772_s25 + $0x48] sm:$0xff] %v2611_v54  ;;  %v2157_v6 = vadd.f32 %v2092_v3, %v1970_v19  ;;  %v2289_v49 = vpop.f32.mrf.mxu3  ;;  %v1805_v50 = vpack.c.bf16 %v1802_v45, %v1800_v52  ;;  %v2583_v19 = vld [vmem:[%s4766_s27 + $0x68] sm:$0xff] }
 0x240   : > { %v1907_v59 = vpop.f32.mrf.mxu1 }
 0x241   : > { %v2354_v57 = vadd.f32 %v2289_v49, %v2157_v6  ;;  %v1971_v35 = vadd.f32 %v1907_v59, %v5147_v15  ;;  %v5148_v6 = vmov 0.0|0.0   ;;  %v5149_v49 = vld [vmem:[#allocation4_spill] sm:$0xff]  ;;  %v5150_v59 = vld [vmem:[#allocation37_spill] sm:$0xff] }
 0x242   : > { %v2485_v8 = vpop.f32.mrf.mxu0 }
 0x243   : > { %v2548_v5 = vadd.f32 %v2483_v62, %v2354_v57 }
 0x245   : > { %v2612_v16 = vadd.f32 %v2580_v7, %v2548_v5  ;;  %v2584_v5 = vld [vmem:[%s4766_s27 + $0x70] sm:$0xff] }
 0x246   : > { %v2094_v60 = vpop.f32.mrf.mxu2 }
 0x247   : > { %2644 = vst [vmem:[%s4772_s25 + $0x50] sm:$0xff] %v2612_v16  ;;  %v2158_v56 = vadd.f32 %v2094_v60, %v1971_v35  ;;  %v2291_v18 = vpop.f32.mrf.mxu3 }
 0x248   : > { %v1910_v24 = vpop.f32.mrf.mxu1 }
 0x249   : > { %v2355_v11 = vadd.f32 %v2291_v18, %v2158_v56  ;;  %v1972_v1 = vadd.f32 %v1910_v24, %v4629_v30  ;;  %v2585_v24 = vld [vmem:[%s4766_s27 + $0x78] sm:$0xff] }
 0x24a   : > { %v2488_v51 = vpop.f32.mrf.mxu0 }
 0x24b   : > { %v2549_v38 = vadd.f32 %v2485_v8, %v2355_v11  ;;  %1949 = vmatmul.bf16.gmra.mxu1 %v4636_v53  ;;  %3200 = vmatmul.msk.bf16.gmra.mxu2 %vm4131_vm4, %v4639_v0  ;;  %v2582_v53 = vld [vmem:[%s4766_s27 + $0x60] sm:$0xff] }
 0x24c   : > { %2333 = vmatmul.bf16.gmra.mxu3 %v4641_v27 }
 0x24d   : > { %2527 = vmatmul.bf16.gmra.mxu0 %v1805_v50  ;;  %v2613_v25 = vadd.f32 %v2581_v26, %v2549_v38 }
 0x24e   : > { %v2097_v46 = vpop.f32.mrf.mxu2 }
 0x24f   : > { %2645 = vst [vmem:[%s4772_s25 + $0x58] sm:$0xff] %v2613_v25  ;;  %v2159_v14 = vadd.f32 %v2097_v46, %v1972_v1  ;;  %v2294_v39 = vpop.f32.mrf.mxu3 }
 0x250   : > { %v1912_v37 = vpop.f32.mrf.mxu1 }
 0x251   : > { %v2356_v21 = vadd.f32 %v2294_v39, %v2159_v14  ;;  %v1973_v10 = vadd.f32 %v1912_v37, %v4647_v55  ;;  %v2586_v14 = vld [vmem:[%s4766_s27 + $0x80] sm:$0xff] }
 0x252   : > { %v2490_v40 = vpop.f32.mrf.mxu0 }
 0x253   : > { %v2550_v62 = vadd.f32 %v2488_v51, %v2356_v21 }
 0x255   : > { %v2614_v47 = vadd.f32 %v2582_v53, %v2550_v62 }
 0x256   : > { %v2099_v0 = vpop.f32.mrf.mxu2 }
 0x257   : > { %2646 = vst [vmem:[%s4772_s25 + $0x60] sm:$0xff] %v2614_v47  ;;  %v2160_v27 = vadd.f32 %v2099_v0, %v1973_v10  ;;  %v2296_v20 = vpop.f32.mrf.mxu3  ;;  %v2587_v0 = vld [vmem:[%s4766_s27 + $0x88] sm:$0xff] }
 0x258   : > { %v1915_v54 = vpop.f32.mrf.mxu1 }
 0x259   : > { %v2357_v30 = vadd.f32 %v2296_v20, %v2160_v27  ;;  %v1974_v57 = vadd.f32 %v1915_v54, %v4654_v9 }
 0x25a   : > { %v2493_v17 = vpop.f32.mrf.mxu0 }
 0x25b   : > { %v2551_v3 = vadd.f32 %v2490_v40, %v2357_v30  ;;  %1954 = vmatmul.bf16.gmra.mxu1 %v1805_v50  ;;  %2141 = vmatmul.bf16.gmra.mxu2 %v5148_v6 }
 0x25c   : > { %2338 = vmatmul.bf16.gmra.mxu3 %v5149_v49  ;;  %v2588_v49 = vld [vmem:[%s4766_s27 + $0x90] sm:$0xff] }
 0x25d   : > { %2532 = vmatmul.bf16.gmra.mxu0 %v5150_v59  ;;  %v2615_v55 = vadd.f32 %v2583_v19, %v2551_v3 }
 0x25e   : > { %v2102_v8 = vpop.f32.mrf.mxu2 }
 0x25f   : > { %2647 = vst [vmem:[%s4772_s25 + $0x68] sm:$0xff] %v2615_v55  ;;  %v2161_v2 = vadd.f32 %v2102_v8, %v1974_v57  ;;  %v2299_v42 = vpop.f32.mrf.mxu3 }
 0x260   : > { %v1917_v58 = vpop.f32.mrf.mxu1 }
 0x261   : > { %v2358_v63 = vadd.f32 %v2299_v42, %v2161_v2  ;;  %v1975_v35 = vadd.f32 %v1917_v58, %v4661_v34 }
 0x262   : > { %v2495_v7 = vpop.f32.mrf.mxu0 }
 0x263   : > { %v2552_v16 = vadd.f32 %v2493_v17, %v2358_v63 }
 0x265   : > { %v2616_v15 = vadd.f32 %v2584_v5, %v2552_v16 }
 0x266   : > { %v2104_v52 = vpop.f32.mrf.mxu2 }
 0x267   : > { %2648 = vst [vmem:[%s4772_s25 + $0x70] sm:$0xff] %v2616_v15  ;;  %v2162_v45 = vadd.f32 %v2104_v52, %v1975_v35  ;;  %v2301_v60 = vpop.f32.mrf.mxu3 }
 0x268   : > { %v1920_v9 = vpop.f32.mrf.mxu1 }
 0x269   : > { %v2359_v56 = vadd.f32 %v2301_v60, %v2162_v45  ;;  %v1976_v51 = vadd.f32 %v1920_v9, %v4666_v48 }
 0x26a   : > { %v2498_v18 = vpop.f32.mrf.mxu0 }
 0x26b   : > { %v2553_v50 = vadd.f32 %v2495_v7, %v2359_v56  ;;  %v2589_v7 = vld [vmem:[%s4766_s27 + $0x98] sm:$0xff]  ;;  %v2590_v56 = vld [vmem:[%s4766_s27 + $0xa0] sm:$0xff] }
 0x26d   : > { %v2617_v11 = vadd.f32 %v2585_v24, %v2553_v50 }
 0x26e   : > { %v2107_v26 = vpop.f32.mrf.mxu2 }
 0x26f   : > { %2649 = vst [vmem:[%s4772_s25 + $0x78] sm:$0xff] %v2617_v11  ;;  %v2163_v38 = vadd.f32 %v2107_v26, %v1976_v51  ;;  %v2304_v25 = vpop.f32.mrf.mxu3 }
 0x270   : > { %v1922_v34 = vpop.f32.mrf.mxu1 }
 0x271   : > { %v2360_v1 = vadd.f32 %v2304_v25, %v2163_v38  ;;  %v1977_v21 = vadd.f32 %v1922_v34, %v4673_v41  ;;  %v2591_v34 = vld [vmem:[%s4766_s27 + $0xa8] sm:$0xff] }
 0x272   : > { %v2500_v46 = vpop.f32.mrf.mxu0 }
 0x273   : > { %v2554_v39 = vadd.f32 %v2498_v18, %v2360_v1 }
 0x275   : > { %v2618_v37 = vadd.f32 %v2586_v14, %v2554_v39 }
 0x276   : > { %v2109_v40 = vpop.f32.mrf.mxu2 }
 0x277   : > { %2650 = vst [vmem:[%s4772_s25 + $0x80] sm:$0xff] %v2618_v37  ;;  %v2164_v53 = vadd.f32 %v2109_v40, %v1977_v21  ;;  %v2306_v62 = vpop.f32.mrf.mxu3 }
 0x278   : > { %v1925_v48 = vpop.f32.mrf.mxu1 }
 0x279   : > { %v2361_v47 = vadd.f32 %v2306_v62, %v2164_v53  ;;  %v1978_v54 = vadd.f32 %v1925_v48, %v4678_v44  ;;  %v2592_v62 = vld [vmem:[%s4766_s27 + $0xb0] sm:$0xff] }
 0x27a   : > { %v2503_v10 = vpop.f32.mrf.mxu0 }
 0x27b   : > { %v2555_v27 = vadd.f32 %v2500_v46, %v2361_v47 }
 0x27d   : > { %v2619_v20 = vadd.f32 %v2587_v0, %v2555_v27 }
 0x27e   : > { %v2112_v30 = vpop.f32.mrf.mxu2 }
 0x27f   : > { %2651 = vst [vmem:[%s4772_s25 + $0x88] sm:$0xff] %v2619_v20  ;;  %v2165_v17 = vadd.f32 %v2112_v30, %v1978_v54  ;;  %v2309_v19 = vpop.f32.mrf.mxu3 }
 0x280   : > { %v1927_v41 = vpop.f32.mrf.mxu1 }
 0x281   : > { %v2362_v3 = vadd.f32 %v2309_v19, %v2165_v17  ;;  %v1979_v57 = vadd.f32 %v1927_v41, %v4685_v23  ;;  %v2593_v17 = vld [vmem:[%s4766_s27 + $0xb8] sm:$0xff] }
 0x282   : > { %v2505_v6 = vpop.f32.mrf.mxu0 }
 0x283   : > { %v2556_v59 = vadd.f32 %v2503_v10, %v2362_v3 }
 0x285   : > { %v2620_v55 = vadd.f32 %v2588_v49, %v2556_v59 }
 0x286   : > { %v2114_v8 = vpop.f32.mrf.mxu2 }
 0x287   : > { %2652 = vst [vmem:[%s4772_s25 + $0x90] sm:$0xff] %v2620_v55  ;;  %v2166_v2 = vadd.f32 %v2114_v8, %v1979_v57  ;;  %v2311_v42 = vpop.f32.mrf.mxu3  ;;  %v2594_v8 = vld [vmem:[%s4766_s27 + $0xc0] sm:$0xff] }
 0x288   : > { %v1930_v44 = vpop.f32.mrf.mxu1 }
 0x289   : > { %v2363_v58 = vadd.f32 %v2311_v42, %v2166_v2  ;;  %v1980_v15 = vadd.f32 %v1930_v44, %v4690_v29 }
 0x28a   : > { %v2508_v63 = vpop.f32.mrf.mxu0 }
 0x28b   : > { %v2557_v5 = vadd.f32 %v2505_v6, %v2363_v58 }
 0x28d   : > { %v2621_v16 = vadd.f32 %v2589_v7, %v2557_v5 }
 0x28e   : > { %v2117_v35 = vpop.f32.mrf.mxu2 }
 0x28f   : > { %2653 = vst [vmem:[%s4772_s25 + $0x98] sm:$0xff] %v2621_v16  ;;  %v2167_v52 = vadd.f32 %v2117_v35, %v1980_v15  ;;  %v2314_v45 = vpop.f32.mrf.mxu3  ;;  %v2595_v15 = vld [vmem:[%s4766_s27 + $0xc8] sm:$0xff] }
 0x290   : > { %v1932_v23 = vpop.f32.mrf.mxu1 }
 0x291   : > { %v2364_v60 = vadd.f32 %v2314_v45, %v2167_v52  ;;  %v1981_v50 = vadd.f32 %v1932_v23, %v4697_v13 }
 0x292   : > { %v2510_v9 = vpop.f32.mrf.mxu0 }
 0x293   : > { %v2558_v18 = vadd.f32 %v2508_v63, %v2364_v60 }
 0x295   : > { %v2622_v24 = vadd.f32 %v2590_v56, %v2558_v18  ;;  %v2596_v18 = vld [vmem:[%s4766_s27 + $0xd0] sm:$0xff] }
 0x296   : > { %v2119_v11 = vpop.f32.mrf.mxu2 }
 0x297   : > { %2654 = vst [vmem:[%s4772_s25 + $0xa0] sm:$0xff] %v2622_v24  ;;  %v2168_v51 = vadd.f32 %v2119_v11, %v1981_v50  ;;  %v2316_v26 = vpop.f32.mrf.mxu3 }
 0x298   : > { %v1935_v29 = vpop.f32.mrf.mxu1 }
 0x299   : > { %v2365_v38 = vadd.f32 %v2316_v26, %v2168_v51  ;;  %v1982_v14 = vadd.f32 %v1935_v29, %v4702_v33 }
 0x29a   : > { %v2513_v25 = vpop.f32.mrf.mxu0 }
 0x29b   : > { %v2559_v1 = vadd.f32 %v2510_v9, %v2365_v38 }
 0x29d   : > { %v2623_v46 = vadd.f32 %v2591_v34, %v2559_v1  ;;  %v2597_v34 = vld [vmem:[%s4766_s27 + $0xd8] sm:$0xff] }
 0x29e   : > { %v2122_v39 = vpop.f32.mrf.mxu2 }
 0x29f   : > { %2655 = vst [vmem:[%s4772_s25 + $0xa8] sm:$0xff] %v2623_v46  ;;  %v2169_v37 = vadd.f32 %v2122_v39, %v1982_v14  ;;  %v2319_v21 = vpop.f32.mrf.mxu3 }
 0x2a0   : > { %v1937_v13 = vpop.f32.mrf.mxu1 }
 0x2a1   : > { %v2366_v40 = vadd.f32 %v2319_v21, %v2169_v37  ;;  %v1983_v10 = vadd.f32 %v1937_v13, %v4709_v22 }
 0x2a2   : > { %v2515_v53 = vpop.f32.mrf.mxu0 }
 0x2a3   : > { %v2560_v48 = vadd.f32 %v2513_v25, %v2366_v40 }
 0x2a5   : > { %v2624_v47 = vadd.f32 %v2592_v62, %v2560_v48 }
 0x2a6   : > { %v2124_v0 = vpop.f32.mrf.mxu2 }
 0x2a7   : > { %2656 = vst [vmem:[%s4772_s25 + $0xb0] sm:$0xff] %v2624_v47  ;;  %v2170_v27 = vadd.f32 %v2124_v0, %v1983_v10  ;;  %v2321_v20 = vpop.f32.mrf.mxu3 }
 0x2a8   : > { %v1940_v33 = vpop.f32.mrf.mxu1 }
 0x2a9   : > { %v2367_v54 = vadd.f32 %v2321_v20, %v2170_v27  ;;  %v1984_v3 = vadd.f32 %v1940_v33, %v4714_v61 }
 0x2aa   : > { %v2518_v30 = vpop.f32.mrf.mxu0 }
 0x2ab   : > { %v2561_v19 = vadd.f32 %v2515_v53, %v2367_v54  ;;  %v2598_v53 = vld [vmem:[%s4766_s27 + $0xe0] sm:$0xff]  ;;  %v2599_v54 = vld [vmem:[%s4766_s27 + $0xe8] sm:$0xff] }
 0x2ad   : > { %v2625_v41 = vadd.f32 %v2593_v17, %v2561_v19 }
 0x2ae   : > { %v2127_v6 = vpop.f32.mrf.mxu2 }
 0x2af   : > { %2657 = vst [vmem:[%s4772_s25 + $0xb8] sm:$0xff] %v2625_v41  ;;  %v2171_v49 = vadd.f32 %v2127_v6, %v1984_v3  ;;  %v2324_v59 = vpop.f32.mrf.mxu3 }
 0x2b0   : > { %v1942_v22 = vpop.f32.mrf.mxu1 }
 0x2b1   : > { %v2368_v55 = vadd.f32 %v2324_v59, %v2171_v49  ;;  %v1985_v44 = vadd.f32 %v1942_v22, %v4721_v28  ;;  %v2600_v59 = vld [vmem:[%s4766_s27 + $0xf0] sm:$0xff] }
 0x2b2   : > { %v2520_v57 = vpop.f32.mrf.mxu0 }
 0x2b3   : > { %v2562_v2 = vadd.f32 %v2518_v30, %v2368_v55 }
 0x2b5   : > { %v2626_v42 = vadd.f32 %v2594_v8, %v2562_v2 }
 0x2b6   : > { %v2129_v58 = vpop.f32.mrf.mxu2 }
 0x2b7   : > { %2658 = vst [vmem:[%s4772_s25 + $0xc0] sm:$0xff] %v2626_v42  ;;  %v2172_v63 = vadd.f32 %v2129_v58, %v1985_v44  ;;  %v2326_v7 = vpop.f32.mrf.mxu3 }
 0x2b8   : > { %v1945_v61 = vpop.f32.mrf.mxu1 }
 0x2b9   : > { %v2369_v5 = vadd.f32 %v2326_v7, %v2172_v63  ;;  %v1986_v45 = vadd.f32 %v1945_v61, %v4726_v32  ;;  %v2601_v63 = vld [vmem:[%s4766_s27 + $0xf8] sm:$0xff] }
 0x2ba   : > { %v2523_v16 = vpop.f32.mrf.mxu0 }
 0x2bb   : > { %v2563_v35 = vadd.f32 %v2520_v57, %v2369_v5 }
 0x2bd   : > { %v2627_v52 = vadd.f32 %v2595_v15, %v2563_v35 }
 0x2be   : > { %v2132_v23 = vpop.f32.mrf.mxu2 }
 0x2bf   : > { %2659 = vst [vmem:[%s4772_s25 + $0xc8] sm:$0xff] %v2627_v52  ;;  %v2173_v60 = vadd.f32 %v2132_v23, %v1986_v45  ;;  %v2329_v9 = vpop.f32.mrf.mxu3 }
 0x2c0   : > { %v1947_v28 = vpop.f32.mrf.mxu1 }
 0x2c1   : > { %v2370_v56 = vadd.f32 %v2329_v9, %v2173_v60  ;;  %v1987_v51 = vadd.f32 %v1947_v28, %v4733_v36 }
 0x2c2   : > { %v2525_v24 = vpop.f32.mrf.mxu0 }
 0x2c3   : > { %v2564_v50 = vadd.f32 %v2523_v16, %v2370_v56 }
 0x2c5   : > { %v2628_v11 = vadd.f32 %v2596_v18, %v2564_v50 }
 0x2c6   : > { %v2134_v26 = vpop.f32.mrf.mxu2 }
 0x2c7   : > { %2660 = vst [vmem:[%s4772_s25 + $0xd0] sm:$0xff] %v2628_v11  ;;  %v2174_v29 = vadd.f32 %v2134_v26, %v1987_v51  ;;  %v2331_v38 = vpop.f32.mrf.mxu3 }
 0x2c8   : > { %v1950_v32 = vpop.f32.mrf.mxu1 }
 0x2c9   : > { %v2371_v25 = vadd.f32 %v2331_v38, %v2174_v29  ;;  %v1988_v39 = vadd.f32 %v1950_v32, %v4738_v4 }
 0x2ca   : > { %v2528_v46 = vpop.f32.mrf.mxu0 }
 0x2cb   : > { %v2565_v1 = vadd.f32 %v2525_v24, %v2371_v25 }
 0x2cd   : > { %v2629_v14 = vadd.f32 %v2597_v34, %v2565_v1 }
 0x2ce   : > { %v2137_v37 = vpop.f32.mrf.mxu2 }
 0x2cf   : > { %2661 = vst [vmem:[%s4772_s25 + $0xd8] sm:$0xff] %v2629_v14  ;;  %v2175_v21 = vadd.f32 %v2137_v37, %v1988_v39  ;;  %v2334_v13 = vpop.f32.mrf.mxu3 }
 0x2d0   : > { %v1952_v36 = vpop.f32.mrf.mxu1 }
 0x2d1   : > { %v2372_v40 = vadd.f32 %v2334_v13, %v2175_v21  ;;  %v1989_v47 = vadd.f32 %v1952_v36, %v4745_v31 }
 0x2d2   : > { %v2530_v10 = vpop.f32.mrf.mxu0 }
 0x2d3   : > { %v2566_v62 = vadd.f32 %v2528_v46, %v2372_v40 }
 0x2d5   : > { %v2630_v48 = vadd.f32 %v2598_v53, %v2566_v62 }
 0x2d6   : > { %v2139_v0 = vpop.f32.mrf.mxu2 }
 0x2d7   : > { %2662 = vst [vmem:[%s4772_s25 + $0xe0] sm:$0xff] %v2630_v48  ;;  %v2176_v27 = vadd.f32 %v2139_v0, %v1989_v47  ;;  %v2336_v20 = vpop.f32.mrf.mxu3 }
 0x2d8   : > { %v1955_v4 = vpop.f32.mrf.mxu1 }
 0x2d9   : > { %v2373_v33 = vadd.f32 %v2336_v20, %v2176_v27  ;;  %v1990_v19 = vadd.f32 %v1955_v4, %v4750_v12 }
 0x2da   : > { %v2533_v31 = vpop.f32.mrf.mxu0 }
 0x2db   : > { %v2567_v30 = vadd.f32 %v2530_v10, %v2373_v33 }
 0x2dd   : > { %v2631_v17 = vadd.f32 %v2599_v54, %v2567_v30 }
 0x2de   : > { %v2142_v41 = vpop.f32.mrf.mxu2 }
 0x2df   : > { %2663 = vst [vmem:[%s4772_s25 + $0xe8] sm:$0xff] %v2631_v17  ;;  %v2177_v3 = vadd.f32 %v2142_v41, %v1990_v19  ;;  %v2339_v6 = vpop.f32.mrf.mxu3 }
 0x2e0   : > { %v1957_v22 = vpop.f32.mrf.mxu1 }
 0x2e1   : > { %v2374_v49 = vadd.f32 %v2339_v6, %v2177_v3  ;;  %v1991_v8 = vadd.f32 %v1957_v22, %v4757_v43 }
 0x2e2   : > { %v2535_v12 = vpop.f32.mrf.mxu0 }
 0x2e3   : > { %v2568_v55 = vadd.f32 %v2533_v31, %v2374_v49 }
 0x2e5   : > { %v2632_v57 = vadd.f32 %v2600_v59, %v2568_v55 }
 0x2e6   : > { %v2144_v2 = vpop.f32.mrf.mxu2 }
 0x2e7   : > { %2664 = vst [vmem:[%s4772_s25 + $0xf0] sm:$0xff] %v2632_v57  ;;  %v2178_v42 = vadd.f32 %v2144_v2, %v1991_v8  ;;  %v2341_v44 = vpop.f32.mrf.mxu3 }
 0x2e9   : > { %v2375_v58 = vadd.f32 %v2341_v44, %v2178_v42 }
 0x2eb   : > { %v2569_v7 = vadd.f32 %v2535_v12, %v2375_v58 }
 0x2ed   : > { %v2633_v61 = vadd.f32 %v2601_v63, %v2569_v7 }
 0x2ef   : > { %2665 = vst [vmem:[%s4772_s25 + $0xf8] sm:$0xff] %v2633_v61 }
 0x2f0 PF: > { %s17_s24 = sadd.s32 1, %s3419_s24  }
 0x2f1   : > { %p14_p4 = scmp.ge.s32.totalorder %s17_s24, 4  }
 0x2f3   :  { %16 = sbr.rel (!%p14_p4) target bundleno = 1 (0x1), region = 89 }

// kernel: preact_block_forward.4
= control target key start
LH: loop header
LB: loop body
LE: loop exit
PB: predicated region body
PF: predicated region fallthrough
CT: control target
= control target key end

     0   :  { %s3424_s18 = smov 0   ;;  %s4832_s0 = inlined_call_operand.vmem [shape: f32[2,18,18,128], index: 0, kind: input, shape index: {}]   ;;  %s4833_s1 = inlined_call_operand.vmem [shape: f32[1,128], index: 1, kind: input, shape index: {}]   ;;  %s4834_s2 = inlined_call_operand.vmem [shape: f32[1,128], index: 2, kind: input, shape index: {}]   ;;  %s4835_s3 = inlined_call_operand.vmem [shape: bf16[9,128,128], index: 3, kind: input, shape index: {}]   ;;  %s4836_s4 = inlined_call_operand.vmem [shape: f32[2,16,16,128], index: 4, kind: output, shape index: {0}]   ;;  %s4837_s5 = inlined_call_operand.vmem [shape: f32[2,128], index: 5, kind: output, shape index: {1}]  }
   0x1 LB: > { %s2703_s19 = sadd.s32 4294967295, %s3388_s18   ;;  %p2707_p0 = scmp.ge.s32.totalorder %s3388_s18, 1  ;;  %s3388_s18 = sphi %s3424_s18, %s16_s18  }
   0x2   : > { %p185_p1 = scmp.lt.s32.totalorder %s3388_s18, 3 }
   0x4   : > { %p186_p2 = pnand %p2707_p0, %p185_p1 }
   0x6   : > { %189 = sbr.rel (%p186_p2) target bundleno = 779 (0x30b), region = 36 }
   0xb   : > { %p213_p3 = scmp.lt.s32.totalorder %s2703_s19, 1  ;;  %p2711_p4 = scmp.ne.s32.totalorder %s2703_s19, 0 }
   0xd   : > { %s214_s20 = scalar_select %p213_p3, %s2703_s19, 1 }
   0xe   : > { %226 = sbr.rel (%p2711_p4) target bundleno = 21 (0x15), region = 40 }
   0xf   : > { %s3365_s21 = smul.u32 432, %s214_s20  ;;  %s3268_s22 = sshll.u32 %s214_s20, 8 }
  0x10   : > { %s3435_s25 = scalar_lea.vmem %s4836_s4, %s3268_s22 }
  0x11   : > { %s3440_s28 = scalar_lea.vmem %s4832_s0, %s3365_s21 }
  0x13   : > { %v3390_v0 = vmov 0.0  }
  0x14   : > { %227 = vst [vmem:[%s4837_s5] sm:$0x3] %v3390_v0 }
  0x15 PF: > { %v3284_v1 = vld [vmem:[%s4835_s3 + $0x78] sm:$0xff]  ;;  %v452_v2 = vlaneseq  ;;  %v3283_v3 = vld [vmem:[%s4835_s3 + $0x70] sm:$0xff]  ;;  %v240_v4 = vld [vmem:[%s3440_s28 + $0x60] sm:$0xff]  ;;  %vm608_vm2 = vcmask 1046528   ;;  %v4845_v48 = vmov 0.0   ;;  %vm3392_vm3 = vmmov 1  }
  0x16   : > { %3341 = vmatpush.bf16.msra.mxu1 %v3284_v1  ;;  %3342 = vmatpush.bf16.msra.mxu2 %v3284_v1  ;;  %v241_v6 = vld [vmem:[%s3440_s28 + $0x68] sm:$0xff]  ;;  %v242_v7 = vld [vmem:[%s3440_s28 + $0x70] sm:$0x3]  ;;  %v3459_v8 = vld [vmem:[%s4833_s1] ss:$0 sm:$0xff]  ;;  %v609_v49 = vrot.slane %v4845_v48, 1 }
  0x17   : > { %v3452_v5 = vshrl.u32 %v452_v2, 7  ;;  %3343 = vmatpush.bf16.msra.mxu3 %v3284_v1  ;;  %802 = vmatpush.bf16.msra.mxu0 %v3284_v1  ;;  %v3464_v9 = vld [vmem:[%s4834_s2] ss:$0 sm:$0xff]  ;;  %v253_v11 = vld [vmem:[%s3440_s28 + $0xc8] sm:$0xff]  ;;  %v254_v12 = vld [vmem:[%s3440_s28 + $0xd0] sm:$0x3]  ;;  %v299_v14 = vmul.f32 %v3459_v8, %v240_v4  ;;  %v300_v15 = vmul.f32 %v3459_v8, %v241_v6  ;;  %v301_v16 = vmul.f32 %v3459_v8, %v242_v7 }
  0x18   : > { %v252_v10 = vld [vmem:[%s3440_s28 + $0xc0] sm:$0xff]  ;;  %v3282_v13 = vld [vmem:[%s4835_s3 + $0x68] sm:$0xff]  ;;  %v312_v21 = vmul.f32 %v3459_v8, %v253_v11  ;;  %v313_v22 = vmul.f32 %v3459_v8, %v254_v12  ;;  %v266_v23 = vld [vmem:[%s3440_s28 + $0x130] sm:$0x3]  ;;  %vm1028_vm5 = vcmask 1045504   ;;  %vm2638_vm6 = vcmask 1040384  }
  0x19   : > { %v3476_v17 = vadd.s32 16, %v3452_v5  ;;  %v264_v18 = vld [vmem:[%s3440_s28 + $0x120] sm:$0xff]  ;;  %v265_v19 = vld [vmem:[%s3440_s28 + $0x128] sm:$0xff]  ;;  %vm456_vm0 = vcmp.ge.s32.totalorder %v3452_v5, 1  ;;  %v311_v20 = vmul.f32 %v3459_v8, %v252_v10  ;;  %v3486_v24 = vadd.f32 %v3464_v9, %v299_v14  ;;  %v3280_v45 = vld [vmem:[%s4835_s3 + $0x58] sm:$0xff] }
  0x1a   : > { %3344 = vmatpush.bf16.msra.mxu1 %v3283_v3  ;;  %3345 = vmatpush.bf16.msra.mxu2 %v3283_v3  ;;  %v357_v25 = vadd.f32 %v3464_v9, %v300_v15  ;;  %v358_v26 = vadd.f32 %v3464_v9, %v301_v16  ;;  %v323_v27 = vmul.f32 %v3459_v8, %v264_v18  ;;  %v3281_v32 = vld [vmem:[%s4835_s3 + $0x60] sm:$0xff]  ;;  %v243_v50 = vld [vmem:[%s3440_s28 + $0x78] sm:$0xff]  ;;  %v245_v56 = vld [vmem:[%s3440_s28 + $0x88] sm:$0x3] }
  0x1b   : > { %4912 = vst [vmem:[#allocation2_spill] sm:$0xff] %v3476_v17  ;;  %3346 = vmatpush.bf16.msra.mxu3 %v3283_v3  ;;  %803 = vmatpush.bf16.msra.mxu0 %v3283_v3  ;;  %v3492_v28 = vadd.f32 %v3464_v9, %v311_v20  ;;  %v369_v29 = vadd.f32 %v3464_v9, %v312_v21  ;;  %v4843_v33 = vmax.f32 %v3486_v24, 0.0  ;;  %vm467_vm1 = vcmp.le.s32.totalorder %v3476_v17, 16  ;;  %v244_v51 = vld [vmem:[%s3440_s28 + $0x80] sm:$0xff]  ;;  %v255_v61 = vld [vmem:[%s3440_s28 + $0xd8] sm:$0xff]  ;;  %v3279_v4 = vld [vmem:[%s4835_s3 + $0x50] sm:$0xff] }
  0x1c   : > { %v370_v30 = vadd.f32 %v3464_v9, %v313_v22  ;;  %v324_v31 = vmul.f32 %v3459_v8, %v265_v19  ;;  %v412_v34 = vmax.f32 %v358_v26, 0.0  ;;  %v325_v35 = vmul.f32 %v3459_v8, %v266_v23  ;;  %v256_v62 = vld [vmem:[%s3440_s28 + $0xe0] sm:$0xff]  ;;  %v257_v3 = vld [vmem:[%s3440_s28 + $0xe8] sm:$0x3]  ;;  %v267_v21 = vld [vmem:[%s3440_s28 + $0x138] sm:$0xff] }
  0x1d   : > { %v3503_v36 = vmax.f32 %v357_v25, 0.0  ;;  %v4841_v37 = vmax.f32 %v3492_v28, 0.0  ;;  %v3507_v39 = vadd.f32 %v3464_v9, %v323_v27  ;;  %v3513_v40 = vsel %vm456_vm0, %v4843_v33, 0.0  ;;  %v3278_v27 = vld [vmem:[%s4835_s3 + $0x48] sm:$0xff]  ;;  %v270_v33 = vld [vmem:[%s3440_s28 + $0x150] sm:$0xff]  ;;  %v271_v48 = vld [vmem:[%s3440_s28 + $0x158] sm:$0xff] }
  0x1e   : > { %3347 = vmatpush.bf16.msra.mxu1 %v3282_v13  ;;  %3348 = vmatpush.bf16.msra.mxu2 %v3282_v13  ;;  %v424_v38 = vmax.f32 %v370_v30, 0.0  ;;  %v3515_v41 = vmax.f32 %v369_v29, 0.0  ;;  %v381_v42 = vadd.f32 %v3464_v9, %v324_v31  ;;  %v3520_v43 = vsel %vm467_vm1, %v412_v34, 0.0  ;;  %v268_v34 = vld [vmem:[%s3440_s28 + $0x140] sm:$0xff]  ;;  %vm4086_vm4 = vmpackc.low %vm3392_vm3, %vm456_vm0 }
  0x1f   : > { %3349 = vmatpush.bf16.msra.mxu3 %v3282_v13  ;;  %804 = vmatpush.bf16.msra.mxu0 %v3282_v13  ;;  %4913 = vst [vmem:[#allocation3_spill] sm:$0xff] %v3507_v39  ;;  %v3526_v44 = vsel %vm456_vm0, %v4841_v37, 0.0  ;;  %v382_v47 = vadd.f32 %v3464_v9, %v325_v35  ;;  %v629_v52 = vrot.slane %v3513_v40, 1  ;;  %v630_v53 = vrot.slane %v3503_v36, 1  ;;  %v3274_v37 = vld [vmem:[%s4835_s3 + $0x28] sm:$0xff] }
  0x20   : > { %v3533_v46 = vsel %vm467_vm1, %v424_v38, 0.0  ;;  %v4839_v54 = vmax.f32 %v3507_v39, 0.0  ;;  %v3542_v55 = vmax.f32 %v381_v42, 0.0  ;;  %v632_v57 = vrot.slane %v3520_v43, 1  ;;  %v263_v39 = vld [vmem:[%s3440_s28 + $0x118] sm:$0x3] }
  0x21   : > { %v649_v58 = vrot.slane %v3526_v44, 1  ;;  %v650_v59 = vrot.slane %v3515_v41, 1  ;;  %v436_v60 = vmax.f32 %v382_v47, 0.0  ;;  %v652_v63 = vrot.slane %v3533_v46, 1 }
  0x22   : > { %3350 = vmatpush.bf16.msra.mxu1 %v3281_v32  ;;  %3351 = vmatpush.bf16.msra.mxu2 %v3281_v32  ;;  %4914 = vst [vmem:[#allocation4_spill] sm:$0xff] %v3542_v55  ;;  %v3555_v0 = vsel %vm456_vm0, %v4839_v54, 0.0  ;;  %v670_v1 = vrot.slane %v3542_v55, 1  ;;  %v302_v2 = vmul.f32 %v3459_v8, %v243_v50  ;;  %v303_v10 = vmul.f32 %v3459_v8, %v244_v51  ;;  %v260_v54 = vld [vmem:[%s3440_s28 + $0x100] sm:$0x3] }
  0x23   : > { %3352 = vmatpush.bf16.msra.mxu3 %v3281_v32  ;;  %805 = vmatpush.bf16.msra.mxu0 %v3281_v32  ;;  %4915 = vst [vmem:[#allocation5_spill] sm:$0xff] %v3555_v0  ;;  %v3565_v6 = vsel %vm467_vm1, %v436_v60, 0.0  ;;  %v669_v7 = vrot.slane %v3555_v0, 1  ;;  %v304_v11 = vmul.f32 %v3459_v8, %v245_v56  ;;  %v314_v14 = vmul.f32 %v3459_v8, %v255_v61  ;;  %v3277_v60 = vld [vmem:[%s4835_s3 + $0x40] sm:$0xff]  ;;  %v251_v0 = vld [vmem:[%s3440_s28 + $0xb8] sm:$0x3] }
  0x24   : > { %4916 = vst [vmem:[#allocation6_spill] sm:$0xff] %v3565_v6  ;;  %v672_v12 = vrot.slane %v3565_v6, 1  ;;  %v3572_v13 = vadd.f32 %v3464_v9, %v302_v2  ;;  %v315_v15 = vmul.f32 %v3459_v8, %v256_v62  ;;  %v631_v16 = vsel %vm608_vm2, %v629_v52, %v630_v53 }
  0x25   : > { %v360_v18 = vadd.f32 %v3464_v9, %v303_v10  ;;  %v361_v19 = vadd.f32 %v3464_v9, %v304_v11  ;;  %v316_v20 = vmul.f32 %v3459_v8, %v257_v3  ;;  %v633_v22 = vsel %vm608_vm2, %v630_v53, %v632_v57  ;;  %v233_v10 = vld [vmem:[%s3440_s28 + $0x28] sm:$0x3]  ;;  %v3292_v11 = vld [vmem:[%s4835_s3 + $0xb8] sm:$0xff] }
  0x26   : > { %3353 = vmatpush.bf16.msra.mxu1 %v3280_v45  ;;  %3354 = vmatpush.bf16.msra.mxu2 %v3280_v45  ;;  %v4842_v23 = vmax.f32 %v3572_v13, 0.0  ;;  %v3584_v25 = vadd.f32 %v3464_v9, %v314_v14  ;;  %v372_v26 = vadd.f32 %v3464_v9, %v315_v15  ;;  %v651_v29 = vsel %vm608_vm2, %v649_v58, %v650_v59 }
  0x27   : > { %3355 = vmatpush.bf16.msra.mxu3 %v3280_v45  ;;  %806 = vmatpush.bf16.msra.mxu0 %v3280_v45  ;;  %v653_v30 = vsel %vm608_vm2, %v650_v59, %v652_v63  ;;  %v415_v31 = vmax.f32 %v361_v19, 0.0  ;;  %v373_v32 = vadd.f32 %v3464_v9, %v316_v20  ;;  %v671_v35 = vsel %vm608_vm2, %v669_v7, %v670_v1  ;;  %v269_v45 = vld [vmem:[%s3440_s28 + $0x148] sm:$0x3]  ;;  %v231_v59 = vld [vmem:[%s3440_s28 + $0x18] sm:$0xff]  ;;  %v246_v19 = vld [vmem:[%s3440_s28 + $0x90] sm:$0xff] }
  0x28   : > { %v673_v38 = vsel %vm608_vm2, %v670_v1, %v672_v12  ;;  %v4840_v42 = vmax.f32 %v3584_v25, 0.0  ;;  %v326_v47 = vmul.f32 %v3459_v8, %v267_v21  ;;  %v3599_v50 = vmax.f32 %v360_v18, 0.0  ;;  %v232_v1 = vld [vmem:[%s3440_s28 + $0x20] sm:$0xff]  ;;  %v3300_v12 = vld [vmem:[%s4835_s3 + $0xf8] sm:$0xff] }
  0x29   : > { %v3605_v51 = vsel %vm456_vm0, %v4842_v23, 0.0  ;;  %v427_v52 = vmax.f32 %v373_v32, 0.0  ;;  %v3607_v53 = vpack.c.bf16 %v633_v22, %v631_v16  ;;  %v3609_v56 = vpack.c.bf16 %v609_v49, %v609_v49  ;;  %v248_v32 = vld [vmem:[%s3440_s28 + $0xa0] sm:$0x3] }
  0x2a   : > { %3356 = vmatpush.bf16.msra.mxu1 %v3279_v4  ;;  %3357 = vmatpush.bf16.msra.mxu2 %v3279_v4  ;;  %v3611_v57 = vmax.f32 %v372_v26, 0.0  ;;  %v327_v58 = vmul.f32 %v3459_v8, %v268_v34  ;;  %v3618_v61 = vpack.c.bf16 %v653_v30, %v651_v29  ;;  %v3620_v62 = vpack.c.bf16 %v673_v38, %v671_v35  ;;  %v3276_v34 = vld [vmem:[%s4835_s3 + $0x38] sm:$0xff] }
  0x2b   : > { %3358 = vmatpush.bf16.msra.mxu3 %v3279_v4  ;;  %807 = vmatpush.bf16.msra.mxu0 %v3279_v4  ;;  %4917 = vst [vmem:[#allocation7_spill] sm:$0xff] %v3609_v56  ;;  %v3624_v49 = vsel %vm467_vm1, %v415_v31, 0.0  ;;  %v328_v63 = vmul.f32 %v3459_v8, %v269_v45  ;;  %v634_v2 = vrot.slane %v3605_v51, 1  ;;  %v3633_v3 = vsel %vm456_vm0, %v4840_v42, 0.0  ;;  %v3308_v35 = vld [vmem:[%s4835_s3 + $0x138] sm:$0xff] }
  0x2c   : > { %4918 = vst [vmem:[#allocation8_spill] sm:$0xff] %v3611_v57  ;;  %v3636_v4 = vadd.f32 %v3464_v9, %v326_v47  ;;  %v384_v7 = vadd.f32 %v3464_v9, %v327_v58  ;;  %v635_v14 = vrot.slane %v3599_v50, 1  ;;  %v3649_v15 = vsel %vm467_vm1, %v427_v52, 0.0  ;;  %v3291_v58 = vld [vmem:[%s4835_s3 + $0xb0] sm:$0xff] }
  0x2d   : > { %4919 = vst [vmem:[#allocation9_spill] sm:$0xff] %v3618_v61  ;;  %v385_v16 = vadd.f32 %v3464_v9, %v328_v63  ;;  %v290_v18 = vmul.f32 %v3459_v8, %v231_v59  ;;  %v637_v20 = vrot.slane %v3624_v49, 1  ;;  %v655_v21 = vrot.slane %v3611_v57, 1  ;;  %v3299_v59 = vld [vmem:[%s4835_s3 + $0xf0] sm:$0xff] }
  0x2e   : > { %3359 = vmatpush.bf16.msra.mxu1 %v3278_v27  ;;  %3360 = vmatpush.bf16.msra.mxu2 %v3278_v27  ;;  %4920 = vst [vmem:[#allocation10_spill] sm:$0xff] %v3620_v62  ;;  %v4838_v22 = vmax.f32 %v3636_v4, 0.0  ;;  %v291_v26 = vmul.f32 %v3459_v8, %v232_v1  ;;  %v292_v30 = vmul.f32 %v3459_v8, %v233_v10  ;;  %v657_v38 = vrot.slane %v3649_v15, 1  ;;  %v247_v10 = vld [vmem:[%s3440_s28 + $0x98] sm:$0xff] }
  0x2f   : > { %3361 = vmatpush.bf16.msra.mxu3 %v3278_v27  ;;  %808 = vmatpush.bf16.msra.mxu0 %v3278_v27  ;;  %4921 = vst [vmem:[#allocation11_spill] sm:$0xff] %v3633_v3  ;;  %v654_v27 = vrot.slane %v3633_v3, 1  ;;  %v439_v29 = vmax.f32 %v385_v16, 0.0  ;;  %v3661_v31 = vadd.f32 %v3464_v9, %v290_v18  ;;  %v3671_v45 = vmax.f32 %v384_v7, 0.0  ;;  %v3275_v18 = vld [vmem:[%s4835_s3 + $0x30] sm:$0xff] }
  0x30   : > { %4922 = vst [vmem:[#allocation12_spill] sm:$0xff] %v3636_v4  ;;  %v348_v47 = vadd.f32 %v3464_v9, %v291_v26  ;;  %v305_v52 = vmul.f32 %v3459_v8, %v246_v19  ;;  %v3686_v63 = vsel %vm456_vm0, %v4838_v22, 0.0  ;;  %v349_v1 = vadd.f32 %v3464_v9, %v292_v30  ;;  %v259_v22 = vld [vmem:[%s3440_s28 + $0xf8] sm:$0xff] }
  0x31   : > { %4923 = vst [vmem:[#allocation13_spill] sm:$0xff] %v3649_v15  ;;  %v4844_v7 = vmax.f32 %v3661_v31, 0.0  ;;  %v307_v16 = vmul.f32 %v3459_v8, %v248_v32  ;;  %v658_v30 = vsel %vm608_vm2, %v655_v21, %v657_v38  ;;  %v674_v32 = vrot.slane %v3686_v63, 1  ;;  %v3298_v38 = vld [vmem:[%s4835_s3 + $0xe8] sm:$0xff] }
  0x32   : > { %3362 = vmatpush.bf16.msra.mxu1 %v3277_v60  ;;  %3363 = vmatpush.bf16.msra.mxu2 %v3277_v60  ;;  %4924 = vst [vmem:[#allocation14_spill] sm:$0xff] %v3671_v45  ;;  %v403_v19 = vmax.f32 %v349_v1, 0.0  ;;  %v3714_v26 = vadd.f32 %v3464_v9, %v305_v52  ;;  %v306_v1 = vmul.f32 %v3459_v8, %v247_v10  ;;  %v272_v10 = vld [vmem:[%s3440_s28 + $0x160] sm:$0x3] }
  0x33   : > { %3364 = vmatpush.bf16.msra.mxu3 %v3277_v60  ;;  %809 = vmatpush.bf16.msra.mxu0 %v3277_v60  ;;  %v636_v60 = vsel %vm608_vm2, %v634_v2, %v635_v14  ;;  %4925 = vst [vmem:[#allocation15_spill] sm:$0xff] %v3686_v63  ;;  %v3696_v2 = vsel %vm467_vm1, %v439_v29, 0.0  ;;  %v258_v29 = vld [vmem:[%s3440_s28 + $0xf0] sm:$0xff]  ;;  %v319_v23 = vmul.f32 %v3459_v8, %v260_v54  ;;  %v3289_v54 = vld [vmem:[%s4835_s3 + $0xa0] sm:$0xff] }
  0x34   : > { %4926 = vst [vmem:[#allocation16_spill] sm:$0xff] %v3696_v2 }
  0x35   : > { %830 = vmatmul.bf16.vlgmr.msra.gmra.mxu1 %v3607_v53  ;;  %850 = vmatmul.bf16.vlgmr.msra.gmra.mxu2 %v3618_v61 }
  0x36   : > { %1222 = vmatpush.bf16.msrb.mxu2 %v3292_v11  ;;  %v638_v11 = vsel %vm608_vm2, %v635_v14, %v637_v20  ;;  %870 = vmatmul.bf16.vlgmr.msra.gmra.mxu3 %v3620_v62  ;;  %v656_v14 = vsel %vm608_vm2, %v654_v27, %v655_v21  ;;  %v3711_v20 = vsel %vm456_vm0, %v4844_v7, 0.0  ;;  %v3307_v27 = vld [vmem:[%s4835_s3 + $0x130] sm:$0xff]  ;;  %v3290_v21 = vld [vmem:[%s4835_s3 + $0xa8] sm:$0xff] }
  0x37   : > { %1409 = vmatpush.bf16.msrb.mxu3 %v3300_v12  ;;  %v3698_v12 = vmax.f32 %v348_v47, 0.0  ;;  %810 = vmatmul.bf16.vlgmr.msra.gmra.mxu0 %v3609_v56  ;;  %v675_v47 = vrot.slane %v3671_v45, 1  ;;  %v3726_v52 = vpack.c.bf16 %v638_v11, %v636_v60  ;;  %v317_v11 = vmul.f32 %v3459_v8, %v258_v29 }
  0x38   : > { %939 = vmatpush.bf16.msrb.mxu1 %v3276_v34  ;;  %1606 = vmatpush.bf16.msrb.mxu0 %v3308_v35  ;;  %v677_v34 = vrot.slane %v3696_v2, 1  ;;  %v3734_v35 = vsel %vm467_vm1, %v403_v19, 0.0  ;;  %v3744_v42 = vpack.c.bf16 %v658_v30, %v656_v14  ;;  %v3306_v14 = vld [vmem:[%s4835_s3 + $0x128] sm:$0xff]  ;;  %v363_v29 = vadd.f32 %v3464_v9, %v306_v1 }
  0x39   : > { %v615_v60 = vrot.slane %v3698_v12, 1  ;;  %v617_v19 = vrot.slane %v3734_v35, 1  ;;  %v676_v7 = vsel %vm608_vm2, %v674_v32, %v675_v47  ;;  %v3759_v30 = vadd.f32 %v3464_v9, %v317_v11  ;;  %v234_v11 = vld [vmem:[%s3440_s28 + $0x30] sm:$0xff] }
  0x3a   : > { %1223 = vmatpush.bf16.msrb.mxu2 %v3291_v58  ;;  %v364_v58 = vadd.f32 %v3464_v9, %v307_v16  ;;  %4927 = vst [vmem:[#allocation17_spill] sm:$0xff] %v3744_v42  ;;  %v318_v16 = vmul.f32 %v3459_v8, %v259_v22  ;;  %v678_v22 = vsel %vm608_vm2, %v675_v47, %v677_v34  ;;  %v4929_v34 = vmax.f32 %v3714_v26, 0.0 }
  0x3b   : > { %1410 = vmatpush.bf16.msrb.mxu3 %v3299_v59  ;;  %v614_v59 = vrot.slane %v3711_v20, 1  ;;  %4928 = vst [vmem:[#allocation18_spill] sm:$0xff] %v3759_v30  ;;  %v376_v1 = vadd.f32 %v3464_v9, %v319_v23  ;;  %v329_v56 = vmul.f32 %v3459_v8, %v270_v33  ;;  %v3273_v23 = vld [vmem:[%s4835_s3 + $0x20] sm:$0xff]  ;;  %v330_v2 = vmul.f32 %v3459_v8, %v271_v48  ;;  %v235_v33 = vld [vmem:[%s3440_s28 + $0x38] sm:$0xff] }
  0x3c   : > { %940 = vmatpush.bf16.msrb.mxu1 %v3275_v18  ;;  %1607 = vmatpush.bf16.msrb.mxu0 %v3307_v27  ;;  %v3297_v18 = vld [vmem:[%s4835_s3 + $0xe0] sm:$0xff]  ;;  %v418_v32 = vmax.f32 %v364_v58, 0.0  ;;  %v375_v27 = vadd.f32 %v3464_v9, %v318_v16  ;;  %v618_v58 = vsel %vm608_vm2, %v615_v60, %v617_v19  ;;  %v3788_v63 = vpack.c.bf16 %v678_v22, %v676_v7 }
  0x3d   : > { %v616_v47 = vsel %vm608_vm2, %v614_v59, %v615_v60  ;;  %v430_v16 = vmax.f32 %v376_v1, 0.0  ;;  %v331_v59 = vmul.f32 %v3459_v8, %v272_v10  ;;  %v236_v60 = vld [vmem:[%s3440_s28 + $0x40] sm:$0x3]  ;;  %v293_v19 = vmul.f32 %v3459_v8, %v234_v11 }
  0x3e   : > { %1224 = vmatpush.bf16.msrb.mxu2 %v3290_v21  ;;  %v3778_v21 = vsel %vm456_vm0, %v4929_v34, 0.0  ;;  %4930 = vst [vmem:[#allocation19_spill] sm:$0xff] %v3788_v63  ;;  %v3790_v34 = vmax.f32 %v363_v29, 0.0  ;;  %v3305_v1 = vld [vmem:[%s4835_s3 + $0x120] sm:$0xff]  ;;  %v3803_v48 = vsel %vm467_vm1, %v418_v32, 0.0  ;;  %v3806_v7 = vmax.f32 %v375_v27, 0.0 }
  0x3f   : > { %1411 = vmatpush.bf16.msrb.mxu3 %v3298_v38  ;;  %v3793_v38 = vadd.f32 %v3464_v9, %v329_v56  ;;  %v4933_v56 = vmax.f32 %v3759_v30, 0.0  ;;  %v3296_v29 = vld [vmem:[%s4835_s3 + $0xd8] sm:$0xff]  ;;  %v3820_v22 = vpack.c.bf16 %v618_v58, %v616_v47  ;;  %v3827_v27 = vsel %vm467_vm1, %v430_v16, 0.0  ;;  %v273_v30 = vld [vmem:[%s3440_s28 + $0x168] sm:$0xff] }
  0x40   : > { %941 = vmatpush.bf16.msrb.mxu1 %v3274_v37  ;;  %1608 = vmatpush.bf16.msrb.mxu0 %v3306_v14  ;;  %v639_v37 = vrot.slane %v3778_v21, 1  ;;  %4932 = vst [vmem:[#allocation21_spill] sm:$0xff] %v3806_v7  ;;  %v3288_v14 = vld [vmem:[%s4835_s3 + $0x98] sm:$0xff]  ;;  %v294_v11 = vmul.f32 %v3459_v8, %v235_v33  ;;  %v3832_v45 = vadd.f32 %v3464_v9, %v293_v19  ;;  %v640_v47 = vrot.slane %v3790_v34, 1 }
  0x41   : > { %4931 = vst [vmem:[#allocation20_spill] sm:$0xff] %v3793_v38  ;;  %v3812_v10 = vsel %vm456_vm0, %v4933_v56, 0.0  ;;  %v295_v56 = vmul.f32 %v3459_v8, %v236_v60  ;;  %v3272_v16 = vld [vmem:[%s4835_s3 + $0x18] sm:$0xff]  ;;  %v660_v60 = vrot.slane %v3806_v7, 1  ;;  %v332_v3 = vmul.f32 %v3459_v8, %v273_v30 }
  0x42   : > { %1225 = vmatpush.bf16.msrb.mxu2 %v3289_v54  ;;  %4934 = vst [vmem:[#allocation22_spill] sm:$0xff] %v3812_v10  ;;  %v387_v54 = vadd.f32 %v3464_v9, %v330_v2  ;;  %v642_v2 = vrot.slane %v3803_v48, 1  ;;  %v659_v58 = vrot.slane %v3812_v10, 1  ;;  %v3304_v33 = vld [vmem:[%s4835_s3 + $0x118] sm:$0xff]  ;;  %v641_v62 = vsel %vm608_vm2, %v639_v37, %v640_v47  ;;  %v262_v10 = vld [vmem:[%s3440_s28 + $0x110] sm:$0xff] }
  0x43   : > { %1412 = vmatpush.bf16.msrb.mxu3 %v3297_v18  ;;  %v388_v18 = vadd.f32 %v3464_v9, %v331_v59  ;;  %4935 = vst [vmem:[#allocation23_spill] sm:$0xff] %v3827_v27  ;;  %v352_v32 = vadd.f32 %v3464_v9, %v295_v56  ;;  %v3271_v56 = vld [vmem:[%s4835_s3 + $0x10] sm:$0xff]  ;;  %v4940_v55 = vmax.f32 %v3832_v45, 0.0 }
  0x44   : > { %942 = vmatpush.bf16.msrb.mxu1 %v3273_v23  ;;  %1609 = vmatpush.bf16.msrb.mxu0 %v3305_v1  ;;  %v3844_v19 = vmax.f32 %v387_v54, 0.0  ;;  %v351_v23 = vadd.f32 %v3464_v9, %v294_v11  ;;  %v3287_v1 = vld [vmem:[%s4835_s3 + $0x90] sm:$0xff]  ;;  %v4937_v54 = vmax.f32 %v3793_v38, 0.0  ;;  %v643_v11 = vsel %vm608_vm2, %v640_v47, %v642_v2  ;;  %v3286_v2 = vld [vmem:[%s4835_s3 + $0x88] sm:$0xff] }
  0x45   : > { %v442_v59 = vmax.f32 %v388_v18, 0.0  ;;  %v3295_v18 = vld [vmem:[%s4835_s3 + $0xd0] sm:$0xff]  ;;  %835 = vmatmul.bf16.gmra.mxu1 %v3726_v52  ;;  %855 = vmatmul.bf16.gmra.mxu2 %v3744_v42  ;;  %v406_v6 = vmax.f32 %v352_v32, 0.0  ;;  %v3914_v15 = vpack.c.bf16 %v643_v11, %v641_v62  ;;  %v275_v11 = vld [vmem:[%s3440_s28 + $0x178] sm:$0x3] }
  0x46   : > { %4936 = vst [vmem:[#allocation24_spill] sm:$0xff] %v3844_v19  ;;  %1226 = vmatpush.bf16.msrb.mxu2 %v3288_v14  ;;  %v662_v14 = vrot.slane %v3827_v27, 1  ;;  %875 = vmatmul.bf16.gmra.mxu3 %v3788_v63  ;;  %v3873_v38 = vmax.f32 %v351_v23, 0.0  ;;  %v3883_v63 = vsel %vm456_vm0, %v4940_v55, 0.0  ;;  %v3303_v32 = vld [vmem:[%s4835_s3 + $0x110] sm:$0xff]  ;;  %v661_v23 = vsel %vm608_vm2, %v659_v58, %v660_v60  ;;  %v3294_v58 = vld [vmem:[%s4835_s3 + $0xc8] sm:$0xff] }
  0x47   : > { %1413 = vmatpush.bf16.msrb.mxu3 %v3296_v29  ;;  %v3861_v29 = vsel %vm456_vm0, %v4937_v54, 0.0  ;;  %815 = vmatmul.bf16.gmra.mxu0 %v3820_v22  ;;  %v3871_v4 = vsel %vm467_vm1, %v442_v59, 0.0  ;;  %v249_v54 = vld [vmem:[%s3440_s28 + $0xa8] sm:$0xff]  ;;  %v680_v47 = vrot.slane %v3844_v19, 1  ;;  %v3895_v55 = vsel %vm467_vm1, %v406_v6, 0.0  ;;  %4941 = vst [vmem:[#allocation27_spill] sm:$0xff] %v3914_v15 }
  0x48   : > { %4938 = vst [vmem:[#allocation25_spill] sm:$0xff] %v3861_v29  ;;  %943 = vmatpush.bf16.msrb.mxu1 %v3272_v16  ;;  %1610 = vmatpush.bf16.msrb.mxu0 %v3304_v33  ;;  %v261_v59 = vld [vmem:[%s3440_s28 + $0x108] sm:$0xff]  ;;  %v679_v37 = vrot.slane %v3861_v29, 1  ;;  %v663_v16 = vsel %vm608_vm2, %v660_v60, %v662_v14  ;;  %v682_v33 = vrot.slane %v3871_v4, 1  ;;  %v250_v29 = vld [vmem:[%s3440_s28 + $0xb0] sm:$0xff]  ;;  %v308_v19 = vmul.f32 %v3459_v8, %v249_v54 }
  0x49   : > { %4939 = vst [vmem:[#allocation26_spill] sm:$0xff] %v3871_v4  ;;  %v310_v6 = vmul.f32 %v3459_v8, %v251_v0  ;;  %v622_v27 = vrot.slane %v3895_v55, 1  ;;  %v320_v7 = vmul.f32 %v3459_v8, %v261_v59  ;;  %v322_v60 = vmul.f32 %v3459_v8, %v263_v39  ;;  %v274_v14 = vld [vmem:[%s3440_s28 + $0x170] sm:$0xff]  ;;  %v3270_v0 = vld [vmem:[%s4835_s3 + $0x8] sm:$0xff]  ;;  %v3285_v39 = vld [vmem:[%s4835_s3 + $0x80] sm:$0xff] }
  0x4a   : > { %1227 = vmatpush.bf16.msrb.mxu2 %v3287_v1  ;;  %v619_v1 = vrot.slane %v3883_v63, 1  ;;  %v3302_v54 = vld [vmem:[%s4835_s3 + $0x108] sm:$0xff]  ;;  %v3924_v4 = vpack.c.bf16 %v663_v16, %v661_v23  ;;  %v681_v59 = vsel %vm608_vm2, %v679_v37, %v680_v47  ;;  %v309_v62 = vmul.f32 %v3459_v8, %v250_v29 }
  0x4b   : > { %1414 = vmatpush.bf16.msrb.mxu3 %v3295_v18  ;;  %v620_v18 = vrot.slane %v3873_v38, 1  ;;  %v3937_v23 = vadd.f32 %v3464_v9, %v308_v19  ;;  %v367_v37 = vadd.f32 %v3464_v9, %v310_v6  ;;  %v321_v29 = vmul.f32 %v3459_v8, %v262_v10  ;;  %v237_v6 = vld [vmem:[%s3440_s28 + $0x48] sm:$0xff]  ;;  %v3269_v10 = vld [vmem:[%s4835_s3] sm:$0xff] }
  0x4c   : > { %944 = vmatpush.bf16.msrb.mxu1 %v3271_v56  ;;  %1611 = vmatpush.bf16.msrb.mxu0 %v3303_v32  ;;  %4942 = vst [vmem:[#allocation28_spill] sm:$0xff] %v3924_v4  ;;  %v3293_v56 = vld [vmem:[%s4835_s3 + $0xc0] sm:$0xff]  ;;  %v683_v32 = vsel %vm608_vm2, %v680_v47, %v682_v33  ;;  %v3944_v16 = vadd.f32 %v3464_v9, %v320_v7 }
  0x4d   : > { %v379_v47 = vadd.f32 %v3464_v9, %v322_v60  ;;  %v333_v19 = vmul.f32 %v3459_v8, %v274_v14  ;;  %v334_v33 = vmul.f32 %v3459_v8, %v275_v11  ;;  %v3301_v7 = vld [vmem:[%s4835_s3 + $0x100] sm:$0xff]  ;;  %v366_v30 = vadd.f32 %v3464_v9, %v309_v62  ;;  %v239_v60 = vld [vmem:[%s3440_s28 + $0x58] sm:$0x3] }
  0x4e   : > { %1228 = vmatpush.bf16.msrb.mxu2 %v3286_v2  ;;  %v621_v2 = vsel %vm608_vm2, %v619_v1, %v620_v18  ;;  %4943 = vst [vmem:[#allocation29_spill] sm:$0xff] %v3944_v16  ;;  %v3961_v1 = vadd.f32 %v3464_v9, %v332_v3  ;;  %v378_v11 = vadd.f32 %v3464_v9, %v321_v29  ;;  %v4878_v42 = vmax.f32 %v3944_v16, 0.0 }
  0x4f   : > { %1415 = vmatpush.bf16.msrb.mxu3 %v3294_v58  ;;  %v623_v58 = vsel %vm608_vm2, %v620_v18, %v622_v27  ;;  %v3957_v27 = vpack.c.bf16 %v683_v32, %v681_v59  ;;  %v238_v18 = vld [vmem:[%s3440_s28 + $0x50] sm:$0xff]  ;;  %v390_v59 = vadd.f32 %v3464_v9, %v333_v19  ;;  %v391_v62 = vadd.f32 %v3464_v9, %v334_v33 }
  0x50   : > { %945 = vmatpush.bf16.msrb.mxu1 %v3270_v0  ;;  %1612 = vmatpush.bf16.msrb.mxu0 %v3302_v54  ;;  %4945 = vst [vmem:[#allocation31_spill] sm:$0xff] %v3961_v1  ;;  %v3965_v14 = vpack.c.bf16 %v623_v58, %v621_v2  ;;  %v4879_v0 = vmax.f32 %v3937_v23, 0.0  ;;  %v421_v54 = vmax.f32 %v367_v37, 0.0  ;;  %v296_v3 = vmul.f32 %v3459_v8, %v237_v6 }
  0x51   : > { %4944 = vst [vmem:[#allocation30_spill] sm:$0xff] %v3957_v27  ;;  %v433_v32 = vmax.f32 %v379_v47, 0.0  ;;  %v4877_v57 = vmax.f32 %v3961_v1, 0.0  ;;  %v3976_v37 = vmax.f32 %v366_v30, 0.0  ;;  %v445_v29 = vmax.f32 %v391_v62, 0.0  ;;  %v3324_v30 = vld [vmem:[%s4835_s3 + $0x1b8] sm:$0xff] }
  0x52   : > { %1229 = vmatpush.bf16.msrb.mxu2 %v3285_v39  ;;  %v297_v39 = vmul.f32 %v3459_v8, %v238_v18  ;;  %v3979_v2 = vadd.f32 %v3464_v9, %v296_v3  ;;  %v3987_v58 = vsel %vm456_vm0, %v4879_v0, 0.0  ;;  %v3993_v47 = vmax.f32 %v378_v11, 0.0  ;;  %v3332_v18 = vld [vmem:[%s4835_s3 + $0x1f8] sm:$0xff] }
  0x53   : > { %1416 = vmatpush.bf16.msrb.mxu3 %v3293_v56  ;;  %v298_v56 = vmul.f32 %v3459_v8, %v239_v60  ;;  %v3991_v8 = vsel %vm467_vm1, %v421_v54, 0.0  ;;  %v4002_v33 = vsel %vm456_vm0, %v4878_v42, 0.0  ;;  %v4004_v6 = vmax.f32 %v390_v59, 0.0  ;;  %v3316_v60 = vld [vmem:[%s4835_s3 + $0x178] sm:$0xff] }
  0x54   : > { %946 = vmatpush.bf16.msrb.mxu1 %v3269_v10  ;;  %1613 = vmatpush.bf16.msrb.mxu0 %v3301_v7  ;;  %4946 = vst [vmem:[#allocation32_spill] sm:$0xff] %v3993_v47  ;;  %v354_v19 = vadd.f32 %v3464_v9, %v297_v39  ;;  %v4880_v7 = vmax.f32 %v3979_v2, 0.0  ;;  %v4019_v54 = vsel %vm467_vm1, %v433_v32, 0.0  ;;  %v3340_v59 = vld [vmem:[%s4835_s3 + $0x238] sm:$0xff]  ;;  %v644_v62 = vrot.slane %v3987_v58, 1 }
  0x55   : > { %840 = vmatmul.bf16.gmra.mxu1 %v3914_v15  ;;  %860 = vmatmul.bf16.gmra.mxu2 %v3924_v4  ;;  %4947 = vst [vmem:[#allocation33_spill] sm:$0xff] %v4002_v33  ;;  %v355_v10 = vadd.f32 %v3464_v9, %v298_v56  ;;  %v4025_v9 = vsel %vm456_vm0, %v4877_v57, 0.0  ;;  %v4035_v3 = vsel %vm467_vm1, %v445_v29, 0.0  ;;  %v645_v56 = vrot.slane %v3976_v37, 1 }
  0x56   : > { %880 = vmatmul.bf16.gmra.mxu3 %v3957_v27  ;;  %4948 = vst [vmem:[#allocation34_spill] sm:$0xff] %v4004_v6  ;;  %v4027_v11 = vmax.f32 %v354_v19, 0.0  ;;  %v4041_v39 = vsel %vm456_vm0, %v4880_v7, 0.0  ;;  %1987 = vmatpush.bf16.msra.mxu2 %v3324_v30  ;;  %v647_v19 = vrot.slane %v3991_v8, 1  ;;  %v664_v57 = vrot.slane %v4002_v33, 1 }
  0x57   : > { %820 = vmatmul.bf16.gmra.mxu0 %v3965_v14  ;;  %4949 = vst [vmem:[#allocation35_spill] sm:$0xff] %v4019_v54  ;;  %v409_v32 = vmax.f32 %v355_v10, 0.0  ;;  %2184 = vmatpush.bf16.msra.mxu3 %v3332_v18  ;;  %v665_v42 = vrot.slane %v3993_v47, 1  ;;  %v667_v29 = vrot.slane %v4019_v54, 1  ;;  %v684_v10 = vrot.slane %v4025_v9, 1 }
  0x58   : > { %4950 = vst [vmem:[#allocation36_spill] sm:$0xff] %v4025_v9  ;;  %1800 = vmatpush.bf16.msra.mxu1 %v3316_v60  ;;  %2378 = vmatpush.bf16.msra.mxu0 %v3340_v59  ;;  %v685_v0 = vrot.slane %v4004_v6, 1  ;;  %v687_v18 = vrot.slane %v4035_v3, 1  ;;  %v624_v7 = vrot.slane %v4041_v39, 1  ;;  %v625_v1 = vrot.slane %v4027_v11, 1 }
  0x59   : > { %4951 = vst [vmem:[#allocation37_spill] sm:$0xff] %v4035_v3  ;;  %v4052_v30 = vsel %vm467_vm1, %v409_v32, 0.0  ;;  %v646_v60 = vsel %vm608_vm2, %v644_v62, %v645_v56  ;;  %v648_v59 = vsel %vm608_vm2, %v645_v56, %v647_v19  ;;  %v666_v9 = vsel %vm608_vm2, %v664_v57, %v665_v42 }
  0x5a   : > { %v627_v27 = vrot.slane %v4052_v30, 1  ;;  %v668_v6 = vsel %vm608_vm2, %v665_v42, %v667_v29  ;;  %v686_v17 = vsel %vm608_vm2, %v684_v10, %v685_v0  ;;  %v688_v32 = vsel %vm608_vm2, %v685_v0, %v687_v18 }
  0x5b   : > { %v626_v3 = vsel %vm608_vm2, %v624_v7, %v625_v1  ;;  %v4066_v33 = vpack.c.bf16 %v648_v59, %v646_v60  ;;  %v4068_v47 = vpack.c.bf16 %v668_v6, %v666_v9  ;;  %v4070_v16 = vpack.c.bf16 %v688_v32, %v686_v17  ;;  %v3331_v7 = vld [vmem:[%s4835_s3 + $0x1f0] sm:$0xff] }
  0x5c   : > { %v628_v54 = vsel %vm608_vm2, %v625_v1, %v627_v27  ;;  %v4953_v42 = vmov 0.0   ;;  %v4955_v27 = vmax.f32 %v3661_v31, 0.0  ;;  %v4894_v6 = vmov 0.0|0.0   ;;  %v3323_v31 = vld [vmem:[%s4835_s3 + $0x1b0] sm:$0xff]  ;;  %2185 = vmatpush.bf16.msra.mxu3 %v3331_v7 }
  0x5d   : > { %4952 = vst [vmem:[#allocation38_spill] sm:$0xff] %v4066_v33  ;;  %v4072_v62 = vpack.c.bf16 %v628_v54, %v626_v3  ;;  %v1029_v57 = vrot.slane %v4953_v42, 2  ;;  %v3315_v54 = vld [vmem:[%s4835_s3 + $0x170] sm:$0xff]  ;;  %1988 = vmatpush.bf16.msra.mxu2 %v3323_v31  ;;  %v1035_v3 = vrot.slane %v3698_v12, 2  ;;  %v1037_v56 = vrot.slane %v3734_v35, 2  ;;  %v3338_v31 = vld [vmem:[%s4835_s3 + $0x228] sm:$0xff] }
  0x5e   : > { %v2793_v1 = vpack.c.bf16 %v3698_v12, %v4955_v27  ;;  %v3339_v9 = vld [vmem:[%s4835_s3 + $0x230] sm:$0xff]  ;;  %1801 = vmatpush.bf16.msra.mxu1 %v3315_v54  ;;  %v4958_v18 = vmax.f32 %v3832_v45, 0.0  ;;  %v1039_v12 = vrot.slane %v3883_v63, 2  ;;  %v1042_v45 = vrot.slane %v3895_v55, 2  ;;  %v3322_v63 = vld [vmem:[%s4835_s3 + $0x1a8] sm:$0xff] }
  0x5f   : > { %v4079_v0 = vpack.c.bf16 %v1029_v57, %v1029_v57  ;;  %2379 = vmatpush.bf16.msra.mxu0 %v3339_v9  ;;  %v1038_v29 = vsel %vm1028_vm5, %v1035_v3, %v1037_v56  ;;  %v4959_v42 = vmax.f32 %v3979_v2, 0.0  ;;  %v3314_v55 = vld [vmem:[%s4835_s3 + $0x168] sm:$0xff]  ;;  %v1044_v2 = vrot.slane %v4041_v39, 2 }
  0x60   : > { %v4117_v60 = vpack.c.bf16 %v3873_v38, %v4958_v18  ;;  %v1045_v27 = vrot.slane %v4027_v11, 2  ;;  %v4961_v18 = vmax.f32 %v3572_v13, 0.0 }
  0x61   : > { %4954 = vst [vmem:[#allocation39_spill] sm:$0xff] %v4079_v0  ;;  %v4136_v57 = vpack.c.bf16 %v4027_v11, %v4959_v42  ;;  %1989 = vmatpush.bf16.msra.mxu2 %v3322_v63  ;;  %v1049_v11 = vrot.slane %v3513_v40, 2  ;;  %v3329_v40 = vld [vmem:[%s4835_s3 + $0x1e0] sm:$0xff]  ;;  %v1055_v42 = vrot.slane %v3599_v50, 2  ;;  %v1057_v63 = vrot.slane %v3624_v49, 2 }
  0x62   : > { %1802 = vmatpush.bf16.msra.mxu1 %v3314_v55  ;;  %v1046_v7 = vsel %vm1028_vm5, %v1044_v2, %v1045_v27  ;;  %v3337_v55 = vld [vmem:[%s4835_s3 + $0x220] sm:$0xff]  ;;  %v4964_v49 = vmax.f32 %v3714_v26, 0.0 }
  0x63   : > { %2380 = vmatpush.bf16.msra.mxu0 %v3338_v31 }
  0x65   : > { %845 = vmatmul.bf16.gmra.mxu1 %v4066_v33  ;;  %865 = vmatmul.bf16.gmra.mxu2 %v4068_v47 }
  0x66   : > { %885 = vmatmul.bf16.gmra.mxu3 %v4070_v16 }
  0x67   : > { %825 = vmatmul.bf16.gmra.mxu0 %v4072_v62 }
  0x68   : > { %2381 = vmatpush.bf16.msra.mxu0 %v3337_v55 }
  0x75   : > { %947 = vmatmul.bf16.vlgmr.msrb.gmra.mxu1 %v4894_v6  ;;  %1230 = vmatmul.bf16.vlgmr.msrb.gmra.mxu2 %v4079_v0  ;;  %v4973_v6 = vmax.f32 %v3492_v28, 0.0 }
  0x76   : > { %2935 = vmatmul.msk.bf16.vlgmr.msrb.gmra.mxu3 %vm4086_vm4, %v2793_v1 }
  0x77   : > { %1614 = vmatmul.bf16.vlgmr.msrb.gmra.mxu0 %v3820_v22  ;;  %v1034_v22 = vrot.slane %v3711_v20, 2  ;;  %v1040_v20 = vrot.slane %v3873_v38, 2  ;;  %v3330_v38 = vld [vmem:[%s4835_s3 + $0x1e8] sm:$0xff]  ;;  %v4322_v0 = vpack.c.bf16 %v3515_v41, %v4973_v6 }
  0x78   : > { %2186 = vmatpush.bf16.msra.mxu3 %v3330_v38 }
  0x79   : > { %v1036_v19 = vsel %vm1028_vm5, %v1034_v22, %v1035_v3  ;;  %v1041_v35 = vsel %vm1028_vm5, %v1039_v12, %v1040_v20  ;;  %v1043_v59 = vsel %vm1028_vm5, %v1040_v20, %v1042_v45  ;;  %v4960_v22 = vmax.f32 %v3486_v24, 0.0  ;;  %v3313_v45 = vld [vmem:[%s4835_s3 + $0x160] sm:$0xff]  ;;  %4974 = vst [vmem:[#allocation49_spill] sm:$0xff] %v4322_v0 }
  0x7a   : > { %v4112_v10 = vpack.c.bf16 %v1038_v29, %v1036_v19  ;;  %v4131_v32 = vpack.c.bf16 %v1043_v59, %v1041_v35  ;;  %v1052_v24 = vrot.slane %v3520_v43, 2  ;;  %v4190_v12 = vpack.c.bf16 %v3599_v50, %v4961_v18  ;;  %1803 = vmatpush.bf16.msra.mxu1 %v3313_v45 }
  0x7b   : > { %v4168_v39 = vpack.c.bf16 %v3503_v36, %v4960_v22  ;;  %v1054_v59 = vrot.slane %v3605_v51, 2 }
  0x7c   : > { %2187 = vmatpush.bf16.msra.mxu3 %v3329_v40 }
  0x7d   : > { %v1056_v2 = vsel %vm1028_vm5, %v1054_v59, %v1055_v42 }
  0x85   : > { %2794 = vmatmul.msk.bf16.gmra.mxu1 %vm4086_vm4, %v2793_v1  ;;  %1235 = vmatmul.bf16.gmra.mxu2 %v4112_v10  ;;  %v1047_v1 = vrot.slane %v4052_v30, 2  ;;  %v1050_v30 = vrot.slane %v3503_v36, 2  ;;  %v3321_v36 = vld [vmem:[%s4835_s3 + $0x1a0] sm:$0xff] }
  0x86   : > { %2938 = vmatmul.msk.bf16.gmra.mxu3 %vm4086_vm4, %v4117_v60  ;;  %1990 = vmatpush.bf16.msra.mxu2 %v3321_v36 }
  0x87   : > { %1619 = vmatmul.bf16.gmra.mxu0 %v3965_v14  ;;  %v1048_v54 = vsel %vm1028_vm5, %v1045_v27, %v1047_v1  ;;  %v1051_v3 = vsel %vm1028_vm5, %v1049_v11, %v1050_v30  ;;  %v1053_v56 = vsel %vm1028_vm5, %v1050_v30, %v1052_v24  ;;  %v1058_v27 = vsel %vm1028_vm5, %v1055_v42, %v1057_v63  ;;  %v3328_v63 = vld [vmem:[%s4835_s3 + $0x1d8] sm:$0xff] }
  0x88   : > { %v4163_v9 = vpack.c.bf16 %v1048_v54, %v1046_v7  ;;  %v4183_v19 = vpack.c.bf16 %v1053_v56, %v1051_v3  ;;  %v4231_v51 = vpack.c.bf16 %v1058_v27, %v1056_v2  ;;  %v4238_v7 = vpack.c.bf16 %v3790_v34, %v4964_v49  ;;  %2188 = vmatpush.bf16.msra.mxu3 %v3328_v63 }
  0x89   : > { %v1059_v30 = vrot.slane %v3778_v21, 2  ;;  %v1060_v24 = vrot.slane %v3790_v34, 2  ;;  %v1062_v3 = vrot.slane %v3803_v48, 2  ;;  %v4968_v21 = vmax.f32 %v3937_v23, 0.0  ;;  %v3320_v23 = vld [vmem:[%s4835_s3 + $0x198] sm:$0xff] }
  0x8a   : > { %1991 = vmatpush.bf16.msra.mxu2 %v3320_v23  ;;  %v1064_v49 = vrot.slane %v3987_v58, 2 }
  0x8b   : > { %v1061_v18 = vsel %vm1028_vm5, %v1059_v30, %v1060_v24  ;;  %v1063_v36 = vsel %vm1028_vm5, %v1060_v24, %v1062_v3  ;;  %v4274_v34 = vpack.c.bf16 %v3976_v37, %v4968_v21  ;;  %v1065_v30 = vrot.slane %v3976_v37, 2 }
  0x8c   : > { %v4267_v59 = vpack.c.bf16 %v1063_v36, %v1061_v18  ;;  %v1067_v24 = vrot.slane %v3991_v8, 2  ;;  %v3312_v18 = vld [vmem:[%s4835_s3 + $0x158] sm:$0xff] }
  0x8d   : > { %4969 = vst [vmem:[#allocation45_spill] sm:$0xff] %v4274_v34  ;;  %v3336_v36 = vld [vmem:[%s4835_s3 + $0x218] sm:$0xff]  ;;  %1804 = vmatpush.bf16.msra.mxu1 %v3312_v18  ;;  %v1066_v21 = vsel %vm1028_vm5, %v1064_v49, %v1065_v30  ;;  %v1072_v18 = vrot.slane %v3533_v46, 2 }
  0x8e   : > { %4967 = vst [vmem:[#allocation44_spill] sm:$0xff] %v4267_v59  ;;  %2382 = vmatpush.bf16.msra.mxu0 %v3336_v36  ;;  %v1068_v58 = vsel %vm1028_vm5, %v1065_v30, %v1067_v24  ;;  %v1069_v30 = vrot.slane %v3526_v44, 2  ;;  %v1070_v24 = vrot.slane %v3515_v41, 2  ;;  %v4979_v44 = vld [vmem:[#allocation8_spill] sm:$0xff] }
  0x8f   : > { %v4315_v8 = vpack.c.bf16 %v1068_v58, %v1066_v21 }
  0x90   : > { %v1071_v21 = vsel %vm1028_vm5, %v1069_v30, %v1070_v24  ;;  %v1073_v58 = vsel %vm1028_vm5, %v1070_v24, %v1072_v18  ;;  %v4980_v30 = vld [vmem:[#allocation17_spill] sm:$0xff] }
  0x91   : > { %4972 = vst [vmem:[#allocation48_spill] sm:$0xff] %v4315_v8 }
  0x95   : > { %2797 = vmatmul.msk.bf16.gmra.mxu1 %vm4086_vm4, %v4117_v60  ;;  %1240 = vmatmul.bf16.gmra.mxu2 %v4131_v32 }
  0x96   : > { %2941 = vmatmul.msk.bf16.gmra.mxu3 %vm4086_vm4, %v4136_v57 }
  0x97   : > { %1624 = vmatmul.bf16.gmra.mxu0 %v4072_v62 }
  0xa5   : > { %2800 = vmatmul.msk.bf16.gmra.mxu1 %vm4086_vm4, %v4136_v57  ;;  %1245 = vmatmul.bf16.gmra.mxu2 %v4163_v9 }
  0xa6   : > { %2944 = vmatmul.msk.bf16.gmra.mxu3 %vm4086_vm4, %v4168_v39 }
  0xa7   : > { %1629 = vmatmul.bf16.gmra.mxu0 %v3607_v53 }
  0xb2   : > { %v4185_v29 = vpop.f32.mrf.mxu1 }
  0xb4   : > { %v4192_v20 = vpop.f32.mrf.mxu0 }
  0xb5   : > { %2803 = vmatmul.msk.bf16.gmra.mxu1 %vm4086_vm4, %v4168_v39  ;;  %1250 = vmatmul.bf16.gmra.mxu2 %v4183_v19 }
  0xb6   : > { %2947 = vmatmul.msk.bf16.gmra.mxu3 %vm4086_vm4, %v4190_v12 }
  0xb7   : > { %1634 = vmatmul.bf16.gmra.mxu0 %v3726_v52 }
  0xb8   : > { %v4208_v43 = vpop.f32.mrf.mxu2 }
  0xb9   : > { %v4210_v13 = vpop.f32.mrf.mxu3 }
  0xba   : > { %4962 = vst [vmem:[#allocation40_spill] sm:$0xff] %v4210_v13  ;;  %v4215_v35 = vpop.f32.mrf.mxu1  ;;  %v4986_v13 = vld [vmem:[#allocation21_spill] sm:$0xff] }
  0xbc   : > { %v4220_v38 = vpop.f32.mrf.mxu0 }
  0xc0   : > { %v4227_v1 = vpop.f32.mrf.mxu2 }
  0xc1   : > { %v4229_v31 = vpop.f32.mrf.mxu3 }
  0xc2   : > { %4963 = vst [vmem:[#allocation41_spill] sm:$0xff] %v4229_v31  ;;  %v4233_v50 = vpop.f32.mrf.mxu1  ;;  %v3311_v31 = vld [vmem:[%s4835_s3 + $0x150] sm:$0xff] }
  0xc3   : > { %1805 = vmatpush.bf16.msra.mxu1 %v3311_v31 }
  0xc4   : > { %v4240_v54 = vpop.f32.mrf.mxu0 }
  0xc5   : > { %2806 = vmatmul.msk.bf16.gmra.mxu1 %vm4086_vm4, %v4190_v12  ;;  %1255 = vmatmul.bf16.gmra.mxu2 %v4231_v51 }
  0xc6   : > { %2950 = vmatmul.msk.bf16.gmra.mxu3 %vm4086_vm4, %v4238_v7 }
  0xc7   : > { %1639 = vmatmul.bf16.gmra.mxu0 %v3914_v15 }
  0xc8   : > { %v4250_v22 = vpop.f32.mrf.mxu2 }
  0xc9   : > { %v4252_v26 = vpop.f32.mrf.mxu3 }
  0xca   : > { %4965 = vst [vmem:[#allocation42_spill] sm:$0xff] %v4252_v26  ;;  %v4254_v11 = vpop.f32.mrf.mxu1  ;;  %v4978_v26 = vmax.f32 %v3584_v25, 0.0  ;;  %v3319_v25 = vld [vmem:[%s4835_s3 + $0x190] sm:$0xff] }
  0xcb   : > { %1992 = vmatpush.bf16.msra.mxu2 %v3319_v25 }
  0xcc   : > { %v4259_v56 = vpop.f32.mrf.mxu0 }
  0xd0   : > { %v4263_v40 = vpop.f32.mrf.mxu2 }
  0xd1   : > { %v4265_v45 = vpop.f32.mrf.mxu3 }
  0xd2   : > { %4966 = vst [vmem:[#allocation43_spill] sm:$0xff] %v4265_v45  ;;  %v4269_v42 = vpop.f32.mrf.mxu1  ;;  %v4351_v45 = vpack.c.bf16 %v1073_v58, %v1071_v21  ;;  %v4981_v21 = vld [vmem:[#allocation11_spill] sm:$0xff] }
  0xd3   : > { %v1074_v58 = vrot.slane %v4981_v21, 2 }
  0xd4   : > { %v4276_v48 = vpop.f32.mrf.mxu0  ;;  %4977 = vst [vmem:[#allocation52_spill] sm:$0xff] %v4351_v45 }
  0xd5   : > { %2809 = vmatmul.msk.bf16.gmra.mxu1 %vm4086_vm4, %v4238_v7  ;;  %1260 = vmatmul.bf16.gmra.mxu2 %v4267_v59 }
  0xd6   : > { %2953 = vmatmul.msk.bf16.gmra.mxu3 %vm4086_vm4, %v4274_v34 }
  0xd7   : > { %1644 = vmatmul.bf16.gmra.mxu0 %v4066_v33 }
  0xd8   : > { %v4292_v55 = vpop.f32.mrf.mxu2 }
  0xd9   : > { %v4294_v2 = vpop.f32.mrf.mxu3 }
  0xda   : > { %4970 = vst [vmem:[#allocation46_spill] sm:$0xff] %v4294_v2  ;;  %v4296_v27 = vpop.f32.mrf.mxu1 }
  0xdc   : > { %v4301_v3 = vpop.f32.mrf.mxu0 }
  0xe0   : > { %v4311_v23 = vpop.f32.mrf.mxu2 }
  0xe1   : > { %v4313_v37 = vpop.f32.mrf.mxu3 }
  0xe2   : > { %4971 = vst [vmem:[#allocation47_spill] sm:$0xff] %v4313_v37  ;;  %v4317_v63 = vpop.f32.mrf.mxu1 }
  0xe4   : > { %v4324_v2 = vpop.f32.mrf.mxu0 }
  0xe5   : > { %2812 = vmatmul.msk.bf16.gmra.mxu1 %vm4086_vm4, %v4274_v34  ;;  %1265 = vmatmul.bf16.gmra.mxu2 %v4315_v8  ;;  %v4356_v8 = vpack.c.bf16 %v4979_v44, %v4978_v26 }
  0xe6   : > { %2956 = vmatmul.msk.bf16.gmra.mxu3 %vm4086_vm4, %v4322_v0 }
  0xe7   : > { %1649 = vmatmul.bf16.gmra.mxu0 %v3618_v61 }
  0xe8   : > { %v4334_v49 = vpop.f32.mrf.mxu2 }
  0xe9   : > { %v4336_v28 = vpop.f32.mrf.mxu3 }
  0xea   : > { %4975 = vst [vmem:[#allocation50_spill] sm:$0xff] %v4336_v28  ;;  %v4338_v6 = vpop.f32.mrf.mxu1 }
  0xec   : > { %v4343_v36 = vpop.f32.mrf.mxu0 }
  0xf0   : > { %v4347_v37 = vpop.f32.mrf.mxu2 }
  0xf1   : > { %v4349_v61 = vpop.f32.mrf.mxu3 }
  0xf2   : > { %4976 = vst [vmem:[#allocation51_spill] sm:$0xff] %v4349_v61  ;;  %v948_v28 = vpop.f32.mrf.mxu1  ;;  %v1075_v61 = vrot.slane %v4979_v44, 2 }
  0xf3   : > { %v949_v41 = vadd.f32 %v948_v28, %v4192_v20  ;;  %v3327_v20 = vld [vmem:[%s4835_s3 + $0x1d0] sm:$0xff] }
  0xf4   : > { %v1615_v46 = vpop.f32.mrf.mxu0  ;;  %2189 = vmatpush.bf16.msra.mxu3 %v3327_v20  ;;  %v1076_v44 = vsel %vm1028_vm5, %v1074_v58, %v1075_v61 }
  0xf5   : > { %2815 = vmatmul.msk.bf16.gmra.mxu1 %vm4086_vm4, %v4322_v0  ;;  %1270 = vmatmul.bf16.gmra.mxu2 %v4351_v45  ;;  %v4982_v45 = vld [vmem:[#allocation13_spill] sm:$0xff] }
  0xf6   : > { %2959 = vmatmul.msk.bf16.gmra.mxu3 %vm4086_vm4, %v4356_v8 }
  0xf7   : > { %1654 = vmatmul.bf16.gmra.mxu0 %v4980_v30  ;;  %v1077_v30 = vrot.slane %v4982_v45, 2 }
  0xf8   : > { %v1231_v26 = vpop.f32.mrf.mxu2 }
  0xf9   : > { %v1311_v28 = vadd.f32 %v1231_v26, %v949_v41  ;;  %v1418_v24 = vpop.f32.mrf.mxu3  ;;  %v3335_v41 = vld [vmem:[%s4835_s3 + $0x210] sm:$0xff]  ;;  %v1078_v45 = vsel %vm1028_vm5, %v1075_v61, %v1077_v30 }
  0xfa   : > { %v950_v18 = vpop.f32.mrf.mxu1  ;;  %2383 = vmatpush.bf16.msra.mxu0 %v3335_v41 }
  0xfb   : > { %v1498_v0 = vadd.f32 %v1418_v24, %v1311_v28  ;;  %v951_v33 = vadd.f32 %v950_v18, %v4220_v38  ;;  %v4387_v28 = vpack.c.bf16 %v1078_v45, %v1076_v44  ;;  %v4984_v18 = vld [vmem:[#allocation18_spill] sm:$0xff]  ;;  %v1080_v44 = vrot.slane %v4986_v13, 2  ;;  %v4989_v45 = vld [vmem:[#allocation23_spill] sm:$0xff] }
  0xfc   : > { %v1617_v34 = vpop.f32.mrf.mxu0  ;;  %v4985_v21 = vmax.f32 %v4984_v18, 0.0 }
  0xfd   : > { %v4383_v25 = vadd.f32 %v1615_v46, %v1498_v0 }
  0xfe   : > { %v4392_v59 = vpack.c.bf16 %v4986_v13, %v4985_v21 }
  0xff   : > { %4983 = vst [vmem:[#allocation8_spill] sm:$0xff] %v4383_v25  ;;  %v4991_v25 = vld [vmem:[#allocation29_spill] sm:$0xff] }
 0x100   : > { %v1233_v20 = vpop.f32.mrf.mxu2  ;;  %v4992_v13 = vmax.f32 %v4991_v25, 0.0  ;;  %v3318_v25 = vld [vmem:[%s4835_s3 + $0x188] sm:$0xff] }
 0x101   : > { %v1312_v26 = vadd.f32 %v1233_v20, %v951_v33  ;;  %v1420_v38 = vpop.f32.mrf.mxu3  ;;  %v1082_v20 = vrot.slane %v4989_v45, 2  ;;  %1993 = vmatpush.bf16.msra.mxu2 %v3318_v25 }
 0x102   : > { %v953_v24 = vpop.f32.mrf.mxu1 }
 0x103   : > { %v1499_v15 = vadd.f32 %v1420_v38, %v1312_v26  ;;  %v954_v31 = vadd.f32 %v953_v24, %v4240_v54  ;;  %v4988_v54 = vld [vmem:[#allocation22_spill] sm:$0xff]  ;;  %v1083_v18 = vsel %vm1028_vm5, %v1080_v44, %v1082_v20 }
 0x104   : > { %v1620_v0 = vpop.f32.mrf.mxu0  ;;  %v1079_v41 = vrot.slane %v4988_v54, 2 }
 0x105   : > { %2818 = vmatmul.msk.bf16.gmra.mxu1 %vm4086_vm4, %v4356_v8  ;;  %1275 = vmatmul.bf16.gmra.mxu2 %v4387_v28  ;;  %v4399_v61 = vadd.f32 %v1617_v34, %v1499_v15 }
 0x106   : > { %2962 = vmatmul.msk.bf16.gmra.mxu3 %vm4086_vm4, %v4392_v59  ;;  %v1081_v24 = vsel %vm1028_vm5, %v1079_v41, %v1080_v44 }
 0x107   : > { %4987 = vst [vmem:[#allocation11_spill] sm:$0xff] %v4399_v61  ;;  %1659 = vmatmul.bf16.gmra.mxu0 %v3924_v4  ;;  %v4413_v61 = vpack.c.bf16 %v1083_v18, %v1081_v24  ;;  %v4993_v4 = vld [vmem:[#allocation32_spill] sm:$0xff]  ;;  %v4996_v24 = vld [vmem:[#allocation35_spill] sm:$0xff] }
 0x108   : > { %v1236_v33 = vpop.f32.mrf.mxu2  ;;  %v4418_v45 = vpack.c.bf16 %v4993_v4, %v4992_v13  ;;  %v1087_v18 = vrot.slane %v4996_v24, 2  ;;  %v3334_v13 = vld [vmem:[%s4835_s3 + $0x208] sm:$0xff] }
 0x109   : > { %v1313_v46 = vadd.f32 %v1236_v33, %v954_v31  ;;  %v1423_v30 = vpop.f32.mrf.mxu3  ;;  %2384 = vmatpush.bf16.msra.mxu0 %v3334_v13 }
 0x10a   : > { %v955_v58 = vpop.f32.mrf.mxu1 }
 0x10b   : > { %v1500_v26 = vadd.f32 %v1423_v30, %v1313_v46  ;;  %v956_v15 = vadd.f32 %v955_v58, %v4259_v56 }
 0x10c   : > { %v1622_v34 = vpop.f32.mrf.mxu0 }
 0x10d   : > { %v4409_v38 = vadd.f32 %v1620_v0, %v1500_v26  ;;  %v4995_v26 = vld [vmem:[#allocation33_spill] sm:$0xff] }
 0x10f   : > { %4990 = vst [vmem:[#allocation13_spill] sm:$0xff] %v4409_v38  ;;  %v5008_v38 = vld [vmem:[#allocation14_spill] sm:$0xff] }
 0x110   : > { %v1238_v21 = vpop.f32.mrf.mxu2 }
 0x111   : > { %v1314_v31 = vadd.f32 %v1238_v21, %v956_v15  ;;  %v1425_v33 = vpop.f32.mrf.mxu3  ;;  %v1084_v15 = vrot.slane %v4995_v26, 2  ;;  %v5000_v26 = vld [vmem:[#allocation4_spill] sm:$0xff] }
 0x112   : > { %v958_v54 = vpop.f32.mrf.mxu1 }
 0x113   : > { %v1501_v46 = vadd.f32 %v1425_v33, %v1314_v31  ;;  %v959_v56 = vadd.f32 %v958_v54, %v4276_v48  ;;  %v3326_v48 = vld [vmem:[%s4835_s3 + $0x1c8] sm:$0xff] }
 0x114   : > { %v1625_v0 = vpop.f32.mrf.mxu0  ;;  %2190 = vmatpush.bf16.msra.mxu3 %v3326_v48  ;;  %v3310_v54 = vld [vmem:[%s4835_s3 + $0x148] sm:$0xff] }
 0x115   : > { %2821 = vmatmul.msk.bf16.gmra.mxu1 %vm4086_vm4, %v4392_v59  ;;  %1280 = vmatmul.bf16.gmra.mxu2 %v4413_v61  ;;  %v4425_v30 = vadd.f32 %v1622_v34, %v1501_v46  ;;  %v1085_v34 = vrot.slane %v4993_v4, 2 }
 0x116   : > { %2965 = vmatmul.msk.bf16.gmra.mxu3 %vm4086_vm4, %v4418_v45  ;;  %1806 = vmatpush.bf16.msra.mxu1 %v3310_v54 }
 0x117   : > { %4994 = vst [vmem:[#allocation18_spill] sm:$0xff] %v4425_v30  ;;  %1664 = vmatmul.bf16.gmra.mxu0 %v4068_v47  ;;  %v1086_v4 = vsel %vm1028_vm5, %v1084_v15, %v1085_v34 }
 0x118   : > { %v1241_v58 = vpop.f32.mrf.mxu2 }
 0x119   : > { %v1315_v41 = vadd.f32 %v1241_v58, %v959_v56  ;;  %v1428_v44 = vpop.f32.mrf.mxu3  ;;  %v1088_v56 = vsel %vm1028_vm5, %v1085_v34, %v1087_v18  ;;  %v5002_v34 = vld [vmem:[#allocation10_spill] sm:$0xff] }
 0x11a   : > { %v960_v20 = vpop.f32.mrf.mxu1  ;;  %v4451_v58 = vpack.c.bf16 %v1088_v56, %v1086_v4  ;;  %v1090_v56 = vrot.slane %v5000_v26, 2 }
 0x11b   : > { %v1502_v21 = vadd.f32 %v1428_v44, %v1315_v41  ;;  %v961_v31 = vadd.f32 %v960_v20, %v4301_v3  ;;  %v4998_v44 = vld [vmem:[#allocation3_spill] sm:$0xff] }
 0x11c   : > { %v1627_v33 = vpop.f32.mrf.mxu0  ;;  %v4999_v20 = vmax.f32 %v4998_v44, 0.0 }
 0x11d   : > { %v4447_v46 = vadd.f32 %v1625_v0, %v1502_v21 }
 0x11e   : > { %v4456_v24 = vpack.c.bf16 %v5000_v26, %v4999_v20 }
 0x11f   : > { %4997 = vst [vmem:[#allocation21_spill] sm:$0xff] %v4447_v46 }
 0x120   : > { %v1243_v25 = vpop.f32.mrf.mxu2 }
 0x121   : > { %v1316_v48 = vadd.f32 %v1243_v25, %v961_v31  ;;  %v1430_v3 = vpop.f32.mrf.mxu3  ;;  %v5004_v25 = vld [vmem:[#allocation6_spill] sm:$0xff] }
 0x122   : > { %v963_v41 = vpop.f32.mrf.mxu1 }
 0x123   : > { %v1503_v30 = vadd.f32 %v1430_v3, %v1316_v48  ;;  %v964_v54 = vadd.f32 %v963_v41, %v4324_v2  ;;  %v5003_v2 = vld [vmem:[#allocation5_spill] sm:$0xff]  ;;  %v1092_v48 = vrot.slane %v5004_v25, 2 }
 0x124   : > { %v1630_v0 = vpop.f32.mrf.mxu0  ;;  %v1089_v4 = vrot.slane %v5003_v2, 2 }
 0x125   : > { %2824 = vmatmul.msk.bf16.gmra.mxu1 %vm4086_vm4, %v4418_v45  ;;  %1285 = vmatmul.bf16.gmra.mxu2 %v4451_v58  ;;  %v4463_v15 = vadd.f32 %v1627_v33, %v1503_v30  ;;  %v1093_v20 = vsel %vm1028_vm5, %v1090_v56, %v1092_v48 }
 0x126   : > { %2968 = vmatmul.msk.bf16.gmra.mxu3 %vm4086_vm4, %v4456_v24  ;;  %v1091_v44 = vsel %vm1028_vm5, %v1089_v4, %v1090_v56 }
 0x127   : > { %5001 = vst [vmem:[#allocation22_spill] sm:$0xff] %v4463_v15  ;;  %1669 = vmatmul.bf16.gmra.mxu0 %v5002_v34  ;;  %v4477_v46 = vpack.c.bf16 %v1093_v20, %v1091_v44  ;;  %v5006_v34 = vld [vmem:[#allocation12_spill] sm:$0xff]  ;;  %v1095_v44 = vrot.slane %v5008_v38, 2 }
 0x128   : > { %v1246_v18 = vpop.f32.mrf.mxu2  ;;  %v5007_v26 = vmax.f32 %v5006_v34, 0.0  ;;  %v3317_v34 = vld [vmem:[%s4835_s3 + $0x180] sm:$0xff]  ;;  %v5013_v20 = vld [vmem:[#allocation16_spill] sm:$0xff] }
 0x129   : > { %v1317_v21 = vadd.f32 %v1246_v18, %v964_v54  ;;  %v1433_v31 = vpop.f32.mrf.mxu3  ;;  %1994 = vmatpush.bf16.msra.mxu2 %v3317_v34 }
 0x12a   : > { %v965_v13 = vpop.f32.mrf.mxu1  ;;  %v4482_v25 = vpack.c.bf16 %v5008_v38, %v5007_v26 }
 0x12b   : > { %v1504_v3 = vadd.f32 %v1433_v31, %v1317_v21  ;;  %v966_v30 = vadd.f32 %v965_v13, %v4343_v36  ;;  %v3325_v31 = vld [vmem:[%s4835_s3 + $0x1c0] sm:$0xff] }
 0x12c   : > { %v1632_v33 = vpop.f32.mrf.mxu0  ;;  %5009 = vst [vmem:[#allocation29_spill] sm:$0xff] %v4482_v25  ;;  %2191 = vmatpush.bf16.msra.mxu3 %v3325_v31 }
 0x12d   : > { %v4473_v41 = vadd.f32 %v1630_v0, %v1504_v3 }
 0x12f   : > { %5005 = vst [vmem:[#allocation23_spill] sm:$0xff] %v4473_v41 }
 0x130   : > { %v1248_v15 = vpop.f32.mrf.mxu2 }
 0x131   : > { %v1318_v54 = vadd.f32 %v1248_v15, %v966_v30  ;;  %v1435_v18 = vpop.f32.mrf.mxu3  ;;  %v5011_v15 = vld [vmem:[#allocation19_spill] sm:$0xff] }
 0x132   : > { %v968_v2 = vpop.f32.mrf.mxu1  ;;  %v5012_v30 = vld [vmem:[#allocation15_spill] sm:$0xff] }
 0x133   : > { %v1505_v21 = vadd.f32 %v1435_v18, %v1318_v54  ;;  %v969_v13 = vadd.f32 %v968_v2, %v4185_v29  ;;  %v1097_v54 = vrot.slane %v5013_v20, 2  ;;  %v3333_v29 = vld [vmem:[%s4835_s3 + $0x200] sm:$0xff]  ;;  %v5016_v20 = vld [vmem:[#allocation20_spill] sm:$0xff] }
 0x134   : > { %v1635_v36 = vpop.f32.mrf.mxu0  ;;  %2385 = vmatpush.bf16.msra.mxu0 %v3333_v29 }
 0x135   : > { %2827 = vmatmul.msk.bf16.gmra.mxu1 %vm4086_vm4, %v4456_v24  ;;  %1290 = vmatmul.bf16.gmra.mxu2 %v4477_v46  ;;  %v4488_v0 = vadd.f32 %v1632_v33, %v1505_v21  ;;  %v1094_v33 = vrot.slane %v5012_v30, 2  ;;  %v3309_v21 = vld [vmem:[%s4835_s3 + $0x140] sm:$0xff]  ;;  %v1098_v38 = vsel %vm1028_vm5, %v1095_v44, %v1097_v54 }
 0x136   : > { %2971 = vmatmul.msk.bf16.gmra.mxu3 %vm4086_vm4, %v4482_v25  ;;  %1807 = vmatpush.bf16.msra.mxu1 %v3309_v21  ;;  %v5018_v21 = vld [vmem:[#allocation24_spill] sm:$0xff] }
 0x137   : > { %5010 = vst [vmem:[#allocation32_spill] sm:$0xff] %v4488_v0  ;;  %1674 = vmatmul.bf16.gmra.mxu0 %v5011_v15  ;;  %v1096_v34 = vsel %vm1028_vm5, %v1094_v33, %v1095_v44  ;;  %v5017_v0 = vmax.f32 %v5016_v20, 0.0 }
 0x138   : > { %v1251_v4 = vpop.f32.mrf.mxu2 }
 0x139   : > { %v1319_v56 = vadd.f32 %v1251_v4, %v969_v13  ;;  %v1438_v48 = vpop.f32.mrf.mxu3  ;;  %v4520_v29 = vpack.c.bf16 %v5018_v21, %v5017_v0 }
 0x13a   : > { %v970_v3 = vpop.f32.mrf.mxu1 }
 0x13b   : > { %v1506_v18 = vadd.f32 %v1438_v48, %v1319_v56  ;;  %v971_v31 = vadd.f32 %v970_v3, %v4215_v35  ;;  %v4515_v48 = vpack.c.bf16 %v1098_v38, %v1096_v34  ;;  %v5020_v3 = vld [vmem:[#allocation30_spill] sm:$0xff]  ;;  %v278_v38 = vld [vmem:[%s3440_s28 + $0x190] sm:$0x3] }
 0x13c   : > { %v1637_v26 = vpop.f32.mrf.mxu0  ;;  %v276_v34 = vld [vmem:[%s3440_s28 + $0x180] sm:$0xff] }
 0x13d   : > { %v4510_v2 = vadd.f32 %v1635_v36, %v1506_v18  ;;  %5015 = vst [vmem:[#allocation35_spill] sm:$0xff] %v4515_v48 }
 0x13f   : > { %5014 = vst [vmem:[#allocation33_spill] sm:$0xff] %v4510_v2  ;;  %v277_v2 = vld [vmem:[%s3440_s28 + $0x188] sm:$0xff] }
 0x140   : > { %v1253_v13 = vpop.f32.mrf.mxu2 }
 0x141   : > { %v1320_v4 = vadd.f32 %v1253_v13, %v971_v31  ;;  %v1440_v56 = vpop.f32.mrf.mxu3  ;;  %v5021_v13 = vld [vmem:[#allocation25_spill] sm:$0xff] }
 0x142   : > { %v973_v30 = vpop.f32.mrf.mxu1 }
 0x143   : > { %v1507_v36 = vadd.f32 %v1440_v56, %v1320_v4  ;;  %v974_v0 = vadd.f32 %v973_v30, %v4233_v50  ;;  %v1099_v4 = vrot.slane %v5021_v13, 2  ;;  %v1100_v56 = vrot.slane %v5018_v21, 2 }
 0x144   : > { %v1640_v18 = vpop.f32.mrf.mxu0 }
 0x145   : > { %2830 = vmatmul.msk.bf16.gmra.mxu1 %vm4086_vm4, %v4482_v25  ;;  %1295 = vmatmul.bf16.gmra.mxu2 %v4515_v48  ;;  %v4526_v35 = vadd.f32 %v1637_v26, %v1507_v36  ;;  %v5022_v26 = vld [vmem:[#allocation26_spill] sm:$0xff] }
 0x146   : > { %2974 = vmatmul.msk.bf16.gmra.mxu3 %vm4086_vm4, %v4520_v29  ;;  %v1102_v20 = vrot.slane %v5022_v26, 2 }
 0x147   : > { %5019 = vst [vmem:[#allocation3_spill] sm:$0xff] %v4526_v35  ;;  %1679 = vmatmul.bf16.gmra.mxu0 %v5020_v3  ;;  %v3380_v3 = vld [vmem:[%s4833_s1] ss:$0 sm:$0xff] }
 0x148   : > { %v1256_v33 = vpop.f32.mrf.mxu2  ;;  %v335_v50 = vmul.f32 %v3380_v3, %v276_v34  ;;  %v337_v30 = vmul.f32 %v3380_v3, %v278_v38  ;;  %v1103_v41 = vsel %vm1028_vm5, %v1100_v56, %v1102_v20  ;;  %v336_v21 = vmul.f32 %v3380_v3, %v277_v2  ;;  %v5024_v38 = vld [vmem:[#allocation31_spill] sm:$0xff] }
 0x149   : > { %v1321_v44 = vadd.f32 %v1256_v33, %v974_v0  ;;  %v1443_v54 = vpop.f32.mrf.mxu3  ;;  %v1101_v33 = vsel %vm1028_vm5, %v1099_v4, %v1100_v56  ;;  %v5026_v4 = vld [vmem:[#allocation34_spill] sm:$0xff] }
 0x14a   : > { %v975_v31 = vpop.f32.mrf.mxu1  ;;  %v4550_v34 = vpack.c.bf16 %v1103_v41, %v1101_v33 }
 0x14b   : > { %v1508_v36 = vadd.f32 %v1443_v54, %v1321_v44  ;;  %v976_v13 = vadd.f32 %v975_v31, %v4254_v11  ;;  %v3381_v44 = vld [vmem:[%s4834_s2] ss:$0 sm:$0xff] }
 0x14c   : > { %v1642_v35 = vpop.f32.mrf.mxu0  ;;  %v392_v54 = vadd.f32 %v3381_v44, %v335_v50  ;;  %v394_v26 = vadd.f32 %v3381_v44, %v337_v30  ;;  %v393_v2 = vadd.f32 %v3381_v44, %v336_v21  ;;  %v5030_v21 = vld [vmem:[#allocation36_spill] sm:$0xff] }
 0x14d   : > { %v4542_v0 = vadd.f32 %v1640_v18, %v1508_v36  ;;  %v5025_v36 = vmax.f32 %v5024_v38, 0.0  ;;  %v1104_v44 = vrot.slane %v5030_v21, 2 }
 0x14e   : > { %v446_v3 = vmax.f32 %v392_v54, 0.0  ;;  %v448_v31 = vmax.f32 %v394_v26, 0.0  ;;  %v1105_v54 = vrot.slane %v5026_v4, 2  ;;  %v5031_v26 = vld [vmem:[#allocation37_spill] sm:$0xff] }
 0x14f   : > { %5023 = vst [vmem:[#allocation4_spill] sm:$0xff] %v4542_v0  ;;  %v4555_v0 = vpack.c.bf16 %v5026_v4, %v5025_v36 }
 0x150   : > { %v1258_v48 = vpop.f32.mrf.mxu2  ;;  %v4572_v20 = vsel %vm456_vm0, %v446_v3, 0.0  ;;  %v4576_v30 = vsel %vm467_vm1, %v448_v31, 0.0  ;;  %v1106_v31 = vsel %vm1028_vm5, %v1104_v44, %v1105_v54 }
 0x151   : > { %v1322_v15 = vadd.f32 %v1258_v48, %v976_v13  ;;  %v1445_v25 = vpop.f32.mrf.mxu3  ;;  %5029 = vst [vmem:[#allocation6_spill] sm:$0xff] %v4576_v30  ;;  %v1533_v36 = vrot.slane %v4572_v20, 1 }
 0x152   : > { %v978_v18 = vpop.f32.mrf.mxu1 }
 0x153   : > { %v1509_v56 = vadd.f32 %v1445_v25, %v1322_v15  ;;  %v979_v41 = vadd.f32 %v978_v18, %v4269_v42  ;;  %v4568_v25 = vmax.f32 %v393_v2, 0.0  ;;  %v1107_v42 = vrot.slane %v5031_v26, 2 }
 0x154   : > { %v1645_v11 = vpop.f32.mrf.mxu0 }
 0x155   : > { %2833 = vmatmul.msk.bf16.gmra.mxu1 %vm4086_vm4, %v4520_v29  ;;  %1300 = vmatmul.bf16.gmra.mxu2 %v4550_v34  ;;  %v4561_v48 = vadd.f32 %v1642_v35, %v1509_v56  ;;  %v1534_v5 = vrot.slane %v4568_v25, 1  ;;  %v1536_v56 = vrot.slane %v4576_v30, 1  ;;  %v4594_v30 = vpack.c.bf16 %v4568_v25, %v446_v3 }
 0x156   : > { %2977 = vmatmul.msk.bf16.gmra.mxu3 %vm4086_vm4, %v4555_v0 }
 0x157   : > { %5027 = vst [vmem:[#allocation5_spill] sm:$0xff] %v4561_v48  ;;  %1684 = vmatmul.bf16.gmra.mxu0 %v4070_v16  ;;  %v1535_v4 = vsel %vm608_vm2, %v1533_v36, %v1534_v5  ;;  %v1537_v50 = vsel %vm608_vm2, %v1534_v5, %v1536_v56 }
 0x158   : > { %v1261_v15 = vpop.f32.mrf.mxu2 }
 0x159   : > { %v1323_v35 = vadd.f32 %v1261_v15, %v979_v41  ;;  %v1448_v33 = vpop.f32.mrf.mxu3  ;;  %v1108_v41 = vsel %vm1028_vm5, %v1105_v54, %v1107_v42 }
 0x15a   : > { %v980_v13 = vpop.f32.mrf.mxu1  ;;  %v4591_v26 = vpack.c.bf16 %v1108_v41, %v1106_v31 }
 0x15b   : > { %v1510_v18 = vadd.f32 %v1448_v33, %v1323_v35  ;;  %v981_v15 = vadd.f32 %v980_v13, %v4296_v27 }
 0x15c   : > { %v1647_v38 = vpop.f32.mrf.mxu0 }
 0x15d   : > { %v4584_v2 = vadd.f32 %v1645_v11, %v1510_v18  ;;  %v4596_v11 = vpack.c.bf16 %v1537_v50, %v1535_v4 }
 0x160   : > { %v1263_v35 = vpop.f32.mrf.mxu2 }
 0x161   : > { %v1324_v33 = vadd.f32 %v1263_v35, %v981_v15  ;;  %v1450_v21 = vpop.f32.mrf.mxu3 }
 0x162   : > { %v983_v48 = vpop.f32.mrf.mxu1 }
 0x163   : > { %v1511_v44 = vadd.f32 %v1450_v21, %v1324_v33  ;;  %v984_v3 = vadd.f32 %v983_v48, %v4317_v63 }
 0x164   : > { %v1650_v18 = vpop.f32.mrf.mxu0 }
 0x165   : > { %2836 = vmatmul.msk.bf16.gmra.mxu1 %vm4086_vm4, %v4555_v0  ;;  %1305 = vmatmul.bf16.gmra.mxu2 %v4591_v26  ;;  %v4602_v27 = vadd.f32 %v1647_v38, %v1511_v44 }
 0x166   : > { %2980 = vmatmul.msk.bf16.gmra.mxu3 %vm4086_vm4, %v4594_v30 }
 0x167   : > { %1689 = vmatmul.bf16.gmra.mxu0 %v4596_v11 }
 0x168   : > { %v1266_v13 = vpop.f32.mrf.mxu2 }
 0x169   : > { %v1325_v54 = vadd.f32 %v1266_v13, %v984_v3  ;;  %v1453_v42 = vpop.f32.mrf.mxu3 }
 0x16a   : > { %v985_v36 = vpop.f32.mrf.mxu1 }
 0x16b   : > { %v1512_v5 = vadd.f32 %v1453_v42, %v1325_v54  ;;  %v986_v41 = vadd.f32 %v985_v36, %v4338_v6 }
 0x16c   : > { %v1652_v56 = vpop.f32.mrf.mxu0 }
 0x16d   : > { %v4609_v31 = vadd.f32 %v1650_v18, %v1512_v5 }
 0x170   : > { %v1268_v38 = vpop.f32.mrf.mxu2 }
 0x171   : > { %v1326_v15 = vadd.f32 %v1268_v38, %v986_v41  ;;  %v1455_v4 = vpop.f32.mrf.mxu3 }
 0x172   : > { %v988_v50 = vpop.f32.mrf.mxu1 }
 0x173   : > { %v1513_v35 = vadd.f32 %v1455_v4, %v1326_v15  ;;  %v989_v6 = vadd.f32 %v988_v50, %v4208_v43 }
 0x174   : > { %v1655_v33 = vpop.f32.mrf.mxu0 }
 0x175   : > { %1808 = vmatmul.bf16.vlgmr.msra.gmra.mxu1 %v4112_v10  ;;  %3127 = vmatmul.msk.bf16.vlgmr.msra.gmra.mxu2 %vm4086_vm4, %v4117_v60  ;;  %v4616_v63 = vadd.f32 %v1652_v56, %v1513_v35 }
 0x176   : > { %2192 = vmatmul.bf16.vlgmr.msra.gmra.mxu3 %v3965_v14 }
 0x177   : > { %2386 = vmatmul.bf16.vlgmr.msra.gmra.mxu0 %v4131_v32 }
 0x178   : > { %v1271_v48 = vpop.f32.mrf.mxu2 }
 0x179   : > { %v1327_v21 = vadd.f32 %v1271_v48, %v989_v6  ;;  %v1458_v44 = vpop.f32.mrf.mxu3 }
 0x17a   : > { %v990_v18 = vpop.f32.mrf.mxu1 }
 0x17b   : > { %v1514_v3 = vadd.f32 %v1458_v44, %v1327_v21  ;;  %v991_v10 = vadd.f32 %v990_v18, %v4227_v1 }
 0x17c   : > { %v1657_v13 = vpop.f32.mrf.mxu0 }
 0x17d   : > { %v4621_v54 = vadd.f32 %v1655_v33, %v1514_v3 }
 0x180   : > { %v1273_v42 = vpop.f32.mrf.mxu2 }
 0x181   : > { %v1328_v60 = vadd.f32 %v1273_v42, %v991_v10  ;;  %v1460_v36 = vpop.f32.mrf.mxu3 }
 0x182   : > { %v993_v5 = vpop.f32.mrf.mxu1 }
 0x183   : > { %v1515_v56 = vadd.f32 %v1460_v36, %v1328_v60  ;;  %v994_v1 = vadd.f32 %v993_v5, %v4250_v22 }
 0x184   : > { %v1660_v14 = vpop.f32.mrf.mxu0 }
 0x185   : > { %1813 = vmatmul.bf16.gmra.mxu1 %v4131_v32  ;;  %3130 = vmatmul.msk.bf16.gmra.mxu2 %vm4086_vm4, %v4136_v57  ;;  %v4628_v43 = vadd.f32 %v1657_v13, %v1515_v56 }
 0x186   : > { %2197 = vmatmul.bf16.gmra.mxu3 %v4072_v62 }
 0x187   : > { %2391 = vmatmul.bf16.gmra.mxu0 %v4163_v9 }
 0x188   : > { %v1276_v41 = vpop.f32.mrf.mxu2 }
 0x189   : > { %v1329_v38 = vadd.f32 %v1276_v41, %v994_v1  ;;  %v1463_v15 = vpop.f32.mrf.mxu3 }
 0x18a   : > { %v995_v4 = vpop.f32.mrf.mxu1 }
 0x18b   : > { %v1516_v50 = vadd.f32 %v1463_v15, %v1329_v38  ;;  %v996_v32 = vadd.f32 %v995_v4, %v4263_v40 }
 0x18c   : > { %v1662_v35 = vpop.f32.mrf.mxu0 }
 0x18d   : > { %v4633_v33 = vadd.f32 %v1660_v14, %v1516_v50 }
 0x190   : > { %v1278_v6 = vpop.f32.mrf.mxu2 }
 0x191   : > { %v1330_v57 = vadd.f32 %v1278_v6, %v996_v32  ;;  %v1465_v48 = vpop.f32.mrf.mxu3 }
 0x192   : > { %v998_v21 = vpop.f32.mrf.mxu1 }
 0x193   : > { %v1517_v44 = vadd.f32 %v1465_v48, %v1330_v57  ;;  %v999_v40 = vadd.f32 %v998_v21, %v4292_v55 }
 0x194   : > { %v1665_v62 = vpop.f32.mrf.mxu0 }
 0x195   : > { %1818 = vmatmul.bf16.gmra.mxu1 %v4163_v9  ;;  %3133 = vmatmul.msk.bf16.gmra.mxu2 %vm4086_vm4, %v4168_v39  ;;  %v4640_v22 = vadd.f32 %v1662_v35, %v1517_v44  ;;  %v5032_v44 = vld [vmem:[#allocation27_spill] sm:$0xff] }
 0x196   : > { %2202 = vmatmul.bf16.gmra.mxu3 %v3607_v53 }
 0x197   : > { %2396 = vmatmul.bf16.gmra.mxu0 %v4183_v19 }
 0x198   : > { %v1281_v18 = vpop.f32.mrf.mxu2 }
 0x199   : > { %v1331_v3 = vadd.f32 %v1281_v18, %v999_v40  ;;  %v1468_v13 = vpop.f32.mrf.mxu3  ;;  %v5034_v40 = vld [vmem:[#allocation40_spill] sm:$0xff] }
 0x19a   : > { %v1000_v10 = vpop.f32.mrf.mxu1 }
 0x19b   : > { %v1518_v42 = vadd.f32 %v1468_v13, %v1331_v3  ;;  %v1001_v9 = vadd.f32 %v1000_v10, %v4311_v23 }
 0x19c   : > { %v1667_v60 = vpop.f32.mrf.mxu0 }
 0x19d   : > { %v4645_v36 = vadd.f32 %v1665_v62, %v1518_v42  ;;  %v5033_v62 = vld [vmem:[#allocation44_spill] sm:$0xff] }
 0x1a0   : > { %v1283_v5 = vpop.f32.mrf.mxu2 }
 0x1a1   : > { %v1332_v39 = vadd.f32 %v1283_v5, %v1001_v9  ;;  %v1470_v56 = vpop.f32.mrf.mxu3 }
 0x1a2   : > { %v1003_v14 = vpop.f32.mrf.mxu1 }
 0x1a3   : > { %v1519_v1 = vadd.f32 %v1470_v56, %v1332_v39  ;;  %v1004_v23 = vadd.f32 %v1003_v14, %v4334_v49 }
 0x1a4   : > { %v1670_v53 = vpop.f32.mrf.mxu0 }
 0x1a5   : > { %1823 = vmatmul.bf16.gmra.mxu1 %v4183_v19  ;;  %3136 = vmatmul.msk.bf16.gmra.mxu2 %vm4086_vm4, %v4190_v12  ;;  %v4652_v55 = vadd.f32 %v1667_v60, %v1519_v1 }
 0x1a6   : > { %2207 = vmatmul.bf16.gmra.mxu3 %v3726_v52 }
 0x1a7   : > { %2401 = vmatmul.bf16.gmra.mxu0 %v4231_v51 }
 0x1a8   : > { %v1286_v41 = vpop.f32.mrf.mxu2 }
 0x1a9   : > { %v1333_v38 = vadd.f32 %v1286_v41, %v1004_v23  ;;  %v1473_v15 = vpop.f32.mrf.mxu3  ;;  %v5036_v23 = vld [vmem:[#allocation45_spill] sm:$0xff] }
 0x1aa   : > { %v1005_v4 = vpop.f32.mrf.mxu1 }
 0x1ab   : > { %v1520_v50 = vadd.f32 %v1473_v15, %v1333_v38  ;;  %v1006_v19 = vadd.f32 %v1005_v4, %v4347_v37  ;;  %v5037_v38 = vld [vmem:[#allocation38_spill] sm:$0xff]  ;;  %v5038_v15 = vld [vmem:[#allocation48_spill] sm:$0xff] }
 0x1ac   : > { %v1672_v35 = vpop.f32.mrf.mxu0  ;;  %v5039_v4 = vld [vmem:[#allocation42_spill] sm:$0xff] }
 0x1ad   : > { %v4657_v32 = vadd.f32 %v1670_v53, %v1520_v50 }
 0x1b0   : > { %v1288_v6 = vpop.f32.mrf.mxu2 }
 0x1b1   : > { %v1334_v12 = vadd.f32 %v1288_v6, %v1006_v19  ;;  %v1475_v57 = vpop.f32.mrf.mxu3 }
 0x1b2   : > { %v1008_v48 = vpop.f32.mrf.mxu1 }
 0x1b3   : > { %v1521_v21 = vadd.f32 %v1475_v57, %v1334_v12  ;;  %v1009_v37 = vadd.f32 %v1008_v48, %v5034_v40 }
 0x1b4   : > { %v1675_v52 = vpop.f32.mrf.mxu0 }
 0x1b5   : > { %1828 = vmatmul.bf16.gmra.mxu1 %v4231_v51  ;;  %3139 = vmatmul.msk.bf16.gmra.mxu2 %vm4086_vm4, %v4238_v7  ;;  %v4664_v49 = vadd.f32 %v1672_v35, %v1521_v21  ;;  %v5035_v51 = vld [vmem:[#allocation41_spill] sm:$0xff] }
 0x1b6   : > { %2212 = vmatmul.bf16.gmra.mxu3 %v5032_v44 }
 0x1b7   : > { %2406 = vmatmul.bf16.gmra.mxu0 %v5033_v62 }
 0x1b8   : > { %v1291_v18 = vpop.f32.mrf.mxu2 }
 0x1b9   : > { %v1335_v3 = vadd.f32 %v1291_v18, %v1009_v37  ;;  %v1478_v13 = vpop.f32.mrf.mxu3 }
 0x1ba   : > { %v1010_v10 = vpop.f32.mrf.mxu1 }
 0x1bb   : > { %v1522_v42 = vadd.f32 %v1478_v13, %v1335_v3  ;;  %v1011_v5 = vadd.f32 %v1010_v10, %v5035_v51  ;;  %v5041_v10 = vld [vmem:[#allocation49_spill] sm:$0xff]  ;;  %v5043_v51 = vld [vmem:[#allocation52_spill] sm:$0xff] }
 0x1bc   : > { %v1677_v60 = vpop.f32.mrf.mxu0 }
 0x1bd   : > { %v4669_v9 = vadd.f32 %v1675_v52, %v1522_v42  ;;  %v5040_v52 = vld [vmem:[#allocation43_spill] sm:$0xff] }
 0x1c0   : > { %v1293_v39 = vpop.f32.mrf.mxu2 }
 0x1c1   : > { %v1336_v7 = vadd.f32 %v1293_v39, %v1011_v5  ;;  %v1480_v56 = vpop.f32.mrf.mxu3  ;;  %v5044_v5 = vld [vmem:[#allocation46_spill] sm:$0xff] }
 0x1c2   : > { %v1013_v14 = vpop.f32.mrf.mxu1 }
 0x1c3   : > { %v1523_v1 = vadd.f32 %v1480_v56, %v1336_v7  ;;  %v1014_v50 = vadd.f32 %v1013_v14, %v5039_v4 }
 0x1c4   : > { %v1680_v53 = vpop.f32.mrf.mxu0 }
 0x1c5   : > { %1833 = vmatmul.bf16.gmra.mxu1 %v5033_v62  ;;  %3142 = vmatmul.msk.bf16.gmra.mxu2 %vm4086_vm4, %v5036_v23  ;;  %v4676_v41 = vadd.f32 %v1677_v60, %v1523_v1  ;;  %v5042_v60 = vld [vmem:[#allocation9_spill] sm:$0xff] }
 0x1c6   : > { %2217 = vmatmul.bf16.gmra.mxu3 %v5037_v38 }
 0x1c7   : > { %2411 = vmatmul.bf16.gmra.mxu0 %v5038_v15 }
 0x1c8   : > { %v1296_v35 = vpop.f32.mrf.mxu2 }
 0x1c9   : > { %v1337_v19 = vadd.f32 %v1296_v35, %v1014_v50  ;;  %v1483_v6 = vpop.f32.mrf.mxu3 }
 0x1ca   : > { %v1015_v12 = vpop.f32.mrf.mxu1 }
 0x1cb   : > { %v1524_v57 = vadd.f32 %v1483_v6, %v1337_v19  ;;  %v1016_v44 = vadd.f32 %v1015_v12, %v5040_v52  ;;  %v5046_v52 = vld [vmem:[#allocation17_spill] sm:$0xff] }
 0x1cc   : > { %v1682_v48 = vpop.f32.mrf.mxu0 }
 0x1cd   : > { %v4681_v21 = vadd.f32 %v1680_v53, %v1524_v57 }
 0x1d0   : > { %v1298_v62 = vpop.f32.mrf.mxu2 }
 0x1d1   : > { %v1338_v40 = vadd.f32 %v1298_v62, %v1016_v44  ;;  %v1485_v37 = vpop.f32.mrf.mxu3  ;;  %v5047_v44 = vld [vmem:[#allocation50_spill] sm:$0xff] }
 0x1d2   : > { %v1018_v18 = vpop.f32.mrf.mxu1 }
 0x1d3   : > { %v1525_v3 = vadd.f32 %v1485_v37, %v1338_v40  ;;  %v1019_v39 = vadd.f32 %v1018_v18, %v5044_v5 }
 0x1d4   : > { %v1685_v13 = vpop.f32.mrf.mxu0 }
 0x1d5   : > { %1838 = vmatmul.bf16.gmra.mxu1 %v5038_v15  ;;  %3145 = vmatmul.msk.bf16.gmra.mxu2 %vm4086_vm4, %v5041_v10  ;;  %v4688_v42 = vadd.f32 %v1682_v48, %v1525_v3  ;;  %v5045_v15 = vld [vmem:[#allocation47_spill] sm:$0xff] }
 0x1d6   : > { %2222 = vmatmul.bf16.gmra.mxu3 %v5042_v60 }
 0x1d7   : > { %2416 = vmatmul.bf16.gmra.mxu0 %v5043_v51 }
 0x1d8   : > { %v1301_v7 = vpop.f32.mrf.mxu2 }
 0x1d9   : > { %v1339_v56 = vadd.f32 %v1301_v7, %v1019_v39  ;;  %v1488_v14 = vpop.f32.mrf.mxu3 }
 0x1da   : > { %v1020_v1 = vpop.f32.mrf.mxu1 }
 0x1db   : > { %v1526_v53 = vadd.f32 %v1488_v14, %v1339_v56  ;;  %v1021_v4 = vadd.f32 %v1020_v1, %v5045_v15  ;;  %v5050_v15 = vld [vmem:[#allocation8_spill] sm:$0xff] }
 0x1dc   : > { %v1687_v23 = vpop.f32.mrf.mxu0 }
 0x1dd   : > { %v4693_v38 = vadd.f32 %v1685_v13, %v1526_v53 }
 0x1e0   : > { %v1303_v50 = vpop.f32.mrf.mxu2 }
 0x1e1   : > { %v1340_v35 = vadd.f32 %v1303_v50, %v1021_v4  ;;  %v1490_v19 = vpop.f32.mrf.mxu3 }
 0x1e2   : > { %v1023_v6 = vpop.f32.mrf.mxu1 }
 0x1e3   : > { %v1527_v12 = vadd.f32 %v1490_v19, %v1340_v35  ;;  %v1024_v62 = vadd.f32 %v1023_v6, %v5047_v44 }
 0x1e4   : > { %v1690_v57 = vpop.f32.mrf.mxu0 }
 0x1e5   : > { %1843 = vmatmul.bf16.gmra.mxu1 %v5043_v51  ;;  %3148 = vmatmul.msk.bf16.gmra.mxu2 %vm4086_vm4, %v4356_v8  ;;  %v4700_v48 = vadd.f32 %v1687_v23, %v1527_v12  ;;  %v5048_v51 = vld [vmem:[#allocation51_spill] sm:$0xff]  ;;  %v5049_v23 = vld [vmem:[#allocation28_spill] sm:$0xff] }
 0x1e6   : > { %2227 = vmatmul.bf16.gmra.mxu3 %v5046_v52  ;;  %v5051_v52 = vld [vmem:[#allocation11_spill] sm:$0xff] }
 0x1e7   : > { %2421 = vmatmul.bf16.gmra.mxu0 %v4387_v28 }
 0x1e8   : > { %v1306_v40 = vpop.f32.mrf.mxu2 }
 0x1e9   : > { %v1341_v37 = vadd.f32 %v1306_v40, %v1024_v62  ;;  %v1493_v18 = vpop.f32.mrf.mxu3 }
 0x1ea   : > { %v1025_v3 = vpop.f32.mrf.mxu1 }
 0x1eb   : > { %v1528_v13 = vadd.f32 %v1493_v18, %v1341_v37  ;;  %v1026_v5 = vadd.f32 %v1025_v3, %v5048_v51 }
 0x1ec   : > { %v1692_v10 = vpop.f32.mrf.mxu0 }
 0x1ed   : > { %v4705_v60 = vadd.f32 %v1690_v57, %v1528_v13 }
 0x1f0   : > { %v1308_v39 = vpop.f32.mrf.mxu2 }
 0x1f1   : > { %v1342_v8 = vadd.f32 %v1308_v39, %v1026_v5  ;;  %v1495_v7 = vpop.f32.mrf.mxu3  ;;  %v5052_v39 = vld [vmem:[#allocation13_spill] sm:$0xff] }
 0x1f2   : > { %v1809_v56 = vpop.f32.mrf.mxu1 }
 0x1f3   : > { %v1529_v14 = vadd.f32 %v1495_v7, %v1342_v8  ;;  %v1889_v4 = vadd.f32 %v1809_v56, %v5050_v15 }
 0x1f4   : > { %v2387_v1 = vpop.f32.mrf.mxu0 }
 0x1f5   : > { %1848 = vmatmul.bf16.gmra.mxu1 %v4387_v28  ;;  %3151 = vmatmul.msk.bf16.gmra.mxu2 %vm4086_vm4, %v4392_v59  ;;  %v4712_v53 = vadd.f32 %v1692_v10, %v1529_v14 }
 0x1f6   : > { %2232 = vmatmul.bf16.gmra.mxu3 %v5049_v23 }
 0x1f7   : > { %2426 = vmatmul.bf16.gmra.mxu0 %v4413_v61 }
 0x1f8   : > { %v1996_v50 = vpop.f32.mrf.mxu2 }
 0x1f9   : > { %v2076_v35 = vadd.f32 %v1996_v50, %v1889_v4  ;;  %v2193_v19 = vpop.f32.mrf.mxu3  ;;  %v5053_v50 = vld [vmem:[#allocation18_spill] sm:$0xff] }
 0x1fa   : > { %v1811_v6 = vpop.f32.mrf.mxu1 }
 0x1fb   : > { %v2273_v12 = vadd.f32 %v2193_v19, %v2076_v35  ;;  %v1890_v44 = vadd.f32 %v1811_v6, %v5051_v52 }
 0x1fc   : > { %v2389_v57 = vpop.f32.mrf.mxu0 }
 0x1fd   : > { %v2467_v28 = vadd.f32 %v2387_v1, %v2273_v12 }
 0x1ff   : > { %2499 = vst [vmem:[%s3435_s25] sm:$0xff] %v2467_v28  ;;  %v2568_v10 = vmul.f32 %v2467_v28, %v2467_v28 }
 0x200   : > { %v1998_v59 = vpop.f32.mrf.mxu2 }
 0x201   : > { %v2077_v62 = vadd.f32 %v1998_v59, %v1890_v44  ;;  %v2195_v40 = vpop.f32.mrf.mxu3 }
 0x202   : > { %v1814_v37 = vpop.f32.mrf.mxu1 }
 0x203   : > { %v2274_v18 = vadd.f32 %v2195_v40, %v2077_v62  ;;  %v1891_v8 = vadd.f32 %v1814_v37, %v5052_v39  ;;  %v5054_v62 = vld [vmem:[#allocation10_spill] sm:$0xff] }
 0x204   : > { %v2392_v3 = vpop.f32.mrf.mxu0 }
 0x205   : > { %v2468_v13 = vadd.f32 %v2389_v57, %v2274_v18  ;;  %1853 = vmatmul.bf16.gmra.mxu1 %v4413_v61  ;;  %3154 = vmatmul.msk.bf16.gmra.mxu2 %vm4086_vm4, %v4418_v45  ;;  %v5055_v18 = vld [vmem:[#allocation21_spill] sm:$0xff] }
 0x206   : > { %2237 = vmatmul.bf16.gmra.mxu3 %v4068_v47 }
 0x207   : > { %2431 = vmatmul.bf16.gmra.mxu0 %v4451_v58  ;;  %2500 = vst [vmem:[%s3435_s25 + $0x8] sm:$0xff] %v2468_v13  ;;  %v2531_v51 = vadd.f32 %v2468_v13, %v2467_v28  ;;  %v2569_v5 = vmul.f32 %v2468_v13, %v2468_v13 }
 0x208   : > { %v2001_v7 = vpop.f32.mrf.mxu2 }
 0x209   : > { %v2600_v56 = vadd.f32 %v2569_v5, %v2568_v10  ;;  %v2078_v14 = vadd.f32 %v2001_v7, %v1891_v8  ;;  %v2198_v1 = vpop.f32.mrf.mxu3 }
 0x20a   : > { %v1816_v61 = vpop.f32.mrf.mxu1 }
 0x20b   : > { %v2275_v23 = vadd.f32 %v2198_v1, %v2078_v14  ;;  %v1892_v35 = vadd.f32 %v1816_v61, %v5053_v50  ;;  %v5056_v14 = vld [vmem:[#allocation22_spill] sm:$0xff] }
 0x20c   : > { %v2394_v15 = vpop.f32.mrf.mxu0 }
 0x20d   : > { %v2469_v4 = vadd.f32 %v2392_v3, %v2275_v23 }
 0x20f   : > { %2501 = vst [vmem:[%s3435_s25 + $0x10] sm:$0xff] %v2469_v4  ;;  %v2532_v45 = vadd.f32 %v2531_v51, %v2469_v4  ;;  %v2570_v47 = vmul.f32 %v2469_v4, %v2469_v4 }
 0x210   : > { %v2003_v19 = vpop.f32.mrf.mxu2 }
 0x211   : > { %v2601_v6 = vadd.f32 %v2600_v56, %v2570_v47  ;;  %v2079_v12 = vadd.f32 %v2003_v19, %v1892_v35  ;;  %v2200_v57 = vpop.f32.mrf.mxu3  ;;  %v5057_v19 = vld [vmem:[#allocation29_spill] sm:$0xff] }
 0x212   : > { %v1819_v28 = vpop.f32.mrf.mxu1 }
 0x213   : > { %v2276_v52 = vadd.f32 %v2200_v57, %v2079_v12  ;;  %v1893_v3 = vadd.f32 %v1819_v28, %v5055_v18  ;;  %v5059_v12 = vld [vmem:[#allocation35_spill] sm:$0xff] }
 0x214   : > { %v2397_v44 = vpop.f32.mrf.mxu0 }
 0x215   : > { %v2470_v59 = vadd.f32 %v2394_v15, %v2276_v52  ;;  %1858 = vmatmul.bf16.gmra.mxu1 %v4451_v58  ;;  %3157 = vmatmul.msk.bf16.gmra.mxu2 %vm4086_vm4, %v4456_v24  ;;  %v5060_v52 = vld [vmem:[#allocation23_spill] sm:$0xff] }
 0x216   : > { %2242 = vmatmul.bf16.gmra.mxu3 %v5054_v62 }
 0x217   : > { %2436 = vmatmul.bf16.gmra.mxu0 %v4477_v46  ;;  %2502 = vst [vmem:[%s3435_s25 + $0x18] sm:$0xff] %v2470_v59  ;;  %v2533_v40 = vadd.f32 %v2532_v45, %v2470_v59  ;;  %v2571_v37 = vmul.f32 %v2470_v59, %v2470_v59 }
 0x218   : > { %v2006_v13 = vpop.f32.mrf.mxu2 }
 0x219   : > { %v2602_v10 = vadd.f32 %v2601_v6, %v2571_v37  ;;  %v2080_v51 = vadd.f32 %v2006_v13, %v1893_v3  ;;  %v2203_v5 = vpop.f32.mrf.mxu3  ;;  %v5058_v6 = vld [vmem:[#allocation19_spill] sm:$0xff] }
 0x21a   : > { %v1821_v39 = vpop.f32.mrf.mxu1 }
 0x21b   : > { %v2277_v58 = vadd.f32 %v2203_v5, %v2080_v51  ;;  %v1894_v1 = vadd.f32 %v1821_v39, %v5056_v14  ;;  %v5061_v5 = vld [vmem:[#allocation32_spill] sm:$0xff] }
 0x21c   : > { %v2399_v8 = vpop.f32.mrf.mxu0 }
 0x21d   : > { %v2471_v7 = vadd.f32 %v2397_v44, %v2277_v58 }
 0x21f   : > { %2503 = vst [vmem:[%s3435_s25 + $0x20] sm:$0xff] %v2471_v7  ;;  %v2534_v24 = vadd.f32 %v2533_v40, %v2471_v7  ;;  %v2572_v56 = vmul.f32 %v2471_v7, %v2471_v7 }
 0x220   : > { %v2008_v61 = vpop.f32.mrf.mxu2 }
 0x221   : > { %v2603_v23 = vadd.f32 %v2602_v10, %v2572_v56  ;;  %v2081_v15 = vadd.f32 %v2008_v61, %v1894_v1  ;;  %v2205_v4 = vpop.f32.mrf.mxu3 }
 0x222   : > { %v1824_v45 = vpop.f32.mrf.mxu1 }
 0x223   : > { %v2278_v47 = vadd.f32 %v2205_v4, %v2081_v15  ;;  %v1895_v44 = vadd.f32 %v1824_v45, %v5060_v52  ;;  %v5063_v45 = vld [vmem:[#allocation33_spill] sm:$0xff] }
 0x224   : > { %v2402_v50 = vpop.f32.mrf.mxu0 }
 0x225   : > { %v2472_v35 = vadd.f32 %v2399_v8, %v2278_v47  ;;  %1863 = vmatmul.bf16.gmra.mxu1 %v4477_v46  ;;  %3160 = vmatmul.msk.bf16.gmra.mxu2 %vm4086_vm4, %v5057_v19 }
 0x226   : > { %2247 = vmatmul.bf16.gmra.mxu3 %v5058_v6 }
 0x227   : > { %2441 = vmatmul.bf16.gmra.mxu0 %v5059_v12  ;;  %2504 = vst [vmem:[%s3435_s25 + $0x28] sm:$0xff] %v2472_v35  ;;  %v2535_v57 = vadd.f32 %v2534_v24, %v2472_v35  ;;  %v2573_v28 = vmul.f32 %v2472_v35, %v2472_v35 }
 0x228   : > { %v2011_v59 = vpop.f32.mrf.mxu2 }
 0x229   : > { %v2604_v62 = vadd.f32 %v2603_v23, %v2573_v28  ;;  %v2082_v40 = vadd.f32 %v2011_v59, %v1895_v44  ;;  %v2208_v37 = vpop.f32.mrf.mxu3  ;;  %v5062_v23 = vld [vmem:[#allocation30_spill] sm:$0xff]  ;;  %v5064_v59 = vld [vmem:[#allocation3_spill] sm:$0xff] }
 0x22a   : > { %v1826_v18 = vpop.f32.mrf.mxu1 }
 0x22b   : > { %v2279_v46 = vadd.f32 %v2208_v37, %v2082_v40  ;;  %v1896_v39 = vadd.f32 %v1826_v18, %v5061_v5 }
 0x22c   : > { %v2404_v3 = vpop.f32.mrf.mxu0 }
 0x22d   : > { %v2473_v13 = vadd.f32 %v2402_v50, %v2279_v46 }
 0x22f   : > { %2505 = vst [vmem:[%s3435_s25 + $0x30] sm:$0xff] %v2473_v13  ;;  %v2536_v10 = vadd.f32 %v2535_v57, %v2473_v13  ;;  %v2574_v51 = vmul.f32 %v2473_v13, %v2473_v13 }
 0x230   : > { %v2013_v58 = vpop.f32.mrf.mxu2 }
 0x231   : > { %v2605_v8 = vadd.f32 %v2604_v62, %v2574_v51  ;;  %v2083_v7 = vadd.f32 %v2013_v58, %v1896_v39  ;;  %v2210_v24 = vpop.f32.mrf.mxu3  ;;  %v5065_v58 = vld [vmem:[#allocation4_spill] sm:$0xff] }
 0x232   : > { %v1829_v56 = vpop.f32.mrf.mxu1 }
 0x233   : > { %v2280_v14 = vadd.f32 %v2210_v24, %v2083_v7  ;;  %v1897_v47 = vadd.f32 %v1829_v56, %v5063_v45 }
 0x234   : > { %v2407_v1 = vpop.f32.mrf.mxu0 }
 0x235   : > { %v2474_v61 = vadd.f32 %v2404_v3, %v2280_v14  ;;  %1868 = vmatmul.bf16.gmra.mxu1 %v5059_v12  ;;  %3163 = vmatmul.msk.bf16.gmra.mxu2 %vm4086_vm4, %v4520_v29 }
 0x236   : > { %2252 = vmatmul.bf16.gmra.mxu3 %v5062_v23 }
 0x237   : > { %2446 = vmatmul.bf16.gmra.mxu0 %v4550_v34  ;;  %2506 = vst [vmem:[%s3435_s25 + $0x38] sm:$0xff] %v2474_v61  ;;  %v2537_v15 = vadd.f32 %v2536_v10, %v2474_v61  ;;  %v2575_v4 = vmul.f32 %v2474_v61, %v2474_v61  ;;  %v1728_v61 = vrot.slane %v4568_v25, 2 }
 0x238   : > { %v2016_v50 = vpop.f32.mrf.mxu2 }
 0x239   : > { %v2606_v35 = vadd.f32 %v2605_v8, %v2575_v4  ;;  %v2084_v19 = vadd.f32 %v2016_v50, %v1897_v47  ;;  %v2213_v6 = vpop.f32.mrf.mxu3 }
 0x23a   : > { %v1831_v57 = vpop.f32.mrf.mxu1 }
 0x23b   : > { %v2281_v12 = vadd.f32 %v2213_v6, %v2084_v19  ;;  %v1898_v62 = vadd.f32 %v1831_v57, %v5064_v59 }
 0x23c   : > { %v2409_v28 = vpop.f32.mrf.mxu0 }
 0x23d   : > { %v2475_v52 = vadd.f32 %v2407_v1, %v2281_v12 }
 0x23f   : > { %2507 = vst [vmem:[%s3435_s25 + $0x40] sm:$0xff] %v2475_v52  ;;  %v2538_v29 = vadd.f32 %v2537_v15, %v2475_v52  ;;  %v2576_v44 = vmul.f32 %v2475_v52, %v2475_v52 }
 0x240   : > { %v2018_v40 = vpop.f32.mrf.mxu2 }
 0x241   : > { %v2607_v37 = vadd.f32 %v2606_v35, %v2576_v44  ;;  %v2085_v18 = vadd.f32 %v2018_v40, %v1898_v62  ;;  %v2215_v46 = vpop.f32.mrf.mxu3  ;;  %v5067_v35 = vld [vmem:[#allocation5_spill] sm:$0xff] }
 0x242   : > { %v1834_v3 = vpop.f32.mrf.mxu1 }
 0x243   : > { %v2282_v13 = vadd.f32 %v2215_v46, %v2085_v18  ;;  %v1899_v8 = vadd.f32 %v1834_v3, %v5065_v58 }
 0x244   : > { %v2412_v10 = vpop.f32.mrf.mxu0 }
 0x245   : > { %v2476_v51 = vadd.f32 %v2409_v28, %v2282_v13  ;;  %1873 = vmatmul.bf16.gmra.mxu1 %v4550_v34  ;;  %3166 = vmatmul.msk.bf16.gmra.mxu2 %vm4086_vm4, %v4555_v0  ;;  %v1727_v34 = vrot.slane %v4572_v20, 2 }
 0x246   : > { %2257 = vmatmul.bf16.gmra.mxu3 %v4070_v16  ;;  %v5066_v16 = vld [vmem:[#allocation6_spill] sm:$0xff] }
 0x247   : > { %2451 = vmatmul.bf16.gmra.mxu0 %v4591_v26  ;;  %2508 = vst [vmem:[%s3435_s25 + $0x48] sm:$0xff] %v2476_v51  ;;  %v2539_v5 = vadd.f32 %v2538_v29, %v2476_v51  ;;  %v2577_v39 = vmul.f32 %v2476_v51, %v2476_v51  ;;  %v1730_v15 = vrot.slane %v5066_v16, 2  ;;  %v1729_v45 = vsel %vm1028_vm5, %v1727_v34, %v1728_v61  ;;  %v5069_v34 = vld [vmem:[#allocation7_spill] sm:$0xff] }
 0x248   : > { %v2021_v7 = vpop.f32.mrf.mxu2 }
 0x249   : > { %v2608_v24 = vadd.f32 %v2607_v37, %v2577_v39  ;;  %v2086_v56 = vadd.f32 %v2021_v7, %v1899_v8  ;;  %v2218_v14 = vpop.f32.mrf.mxu3  ;;  %v1731_v6 = vsel %vm1028_vm5, %v1728_v61, %v1730_v15  ;;  %v5070_v61 = vld [vmem:[#allocation39_spill] sm:$0xff] }
 0x24a   : > { %v1836_v1 = vpop.f32.mrf.mxu1  ;;  %v1734_v52 = vpack.c.bf16 %v1731_v6, %v1729_v45 }
 0x24b   : > { %v2283_v0 = vadd.f32 %v2218_v14, %v2086_v56  ;;  %v1900_v19 = vadd.f32 %v1836_v1, %v5067_v35  ;;  %v5068_v1 = vmov 0.0|0.0  }
 0x24c   : > { %v2414_v23 = vpop.f32.mrf.mxu0 }
 0x24d   : > { %v2477_v4 = vadd.f32 %v2412_v10, %v2283_v0 }
 0x24f   : > { %2509 = vst [vmem:[%s3435_s25 + $0x50] sm:$0xff] %v2477_v4  ;;  %v2540_v47 = vadd.f32 %v2539_v5, %v2477_v4  ;;  %v2578_v50 = vmul.f32 %v2477_v4, %v2477_v4 }
 0x250   : > { %v2023_v57 = vpop.f32.mrf.mxu2 }
 0x251   : > { %v2609_v12 = vadd.f32 %v2608_v24, %v2578_v50  ;;  %v2087_v20 = vadd.f32 %v2023_v57, %v1900_v19  ;;  %v2220_v28 = vpop.f32.mrf.mxu3 }
 0x252   : > { %v1839_v25 = vpop.f32.mrf.mxu1 }
 0x253   : > { %v2284_v29 = vadd.f32 %v2220_v28, %v2087_v20  ;;  %v1901_v37 = vadd.f32 %v1839_v25, %v4584_v2 }
 0x254   : > { %v2417_v44 = vpop.f32.mrf.mxu0 }
 0x255   : > { %v2478_v59 = vadd.f32 %v2414_v23, %v2284_v29  ;;  %1878 = vmatmul.bf16.gmra.mxu1 %v4591_v26  ;;  %3169 = vmatmul.msk.bf16.gmra.mxu2 %vm4086_vm4, %v4594_v30 }
 0x256   : > { %2262 = vmatmul.bf16.gmra.mxu3 %v4596_v11 }
 0x257   : > { %2456 = vmatmul.bf16.gmra.mxu0 %v1734_v52  ;;  %2510 = vst [vmem:[%s3435_s25 + $0x58] sm:$0xff] %v2478_v59  ;;  %v2541_v62 = vadd.f32 %v2540_v47, %v2478_v59  ;;  %v2579_v40 = vmul.f32 %v2478_v59, %v2478_v59 }
 0x258   : > { %v2026_v18 = vpop.f32.mrf.mxu2 }
 0x259   : > { %v2610_v46 = vadd.f32 %v2609_v12, %v2579_v40  ;;  %v2088_v3 = vadd.f32 %v2026_v18, %v1901_v37  ;;  %v2223_v13 = vpop.f32.mrf.mxu3 }
 0x25a   : > { %v1841_v10 = vpop.f32.mrf.mxu1 }
 0x25b   : > { %v2285_v51 = vadd.f32 %v2223_v13, %v2088_v3  ;;  %v1902_v11 = vadd.f32 %v1841_v10, %v4602_v27 }
 0x25c   : > { %v2419_v26 = vpop.f32.mrf.mxu0 }
 0x25d   : > { %v2479_v5 = vadd.f32 %v2417_v44, %v2285_v51 }
 0x25f   : > { %2511 = vst [vmem:[%s3435_s25 + $0x60] sm:$0xff] %v2479_v5  ;;  %v2542_v17 = vadd.f32 %v2541_v62, %v2479_v5  ;;  %v2580_v30 = vmul.f32 %v2479_v5, %v2479_v5 }
 0x260   : > { %v2028_v39 = vpop.f32.mrf.mxu2 }
 0x261   : > { %v2611_v58 = vadd.f32 %v2610_v46, %v2580_v30  ;;  %v2089_v8 = vadd.f32 %v2028_v39, %v1902_v11  ;;  %v2225_v7 = vpop.f32.mrf.mxu3 }
 0x262   : > { %v1844_v24 = vpop.f32.mrf.mxu1 }
 0x263   : > { %v2286_v2 = vadd.f32 %v2225_v7, %v2089_v8  ;;  %v1903_v27 = vadd.f32 %v1844_v24, %v4609_v31 }
 0x264   : > { %v2422_v56 = vpop.f32.mrf.mxu0 }
 0x265   : > { %v2480_v14 = vadd.f32 %v2419_v26, %v2286_v2  ;;  %1883 = vmatmul.bf16.gmra.mxu1 %v1734_v52  ;;  %2070 = vmatmul.bf16.gmra.mxu2 %v5068_v1 }
 0x266   : > { %2267 = vmatmul.bf16.gmra.mxu3 %v5069_v34 }
 0x267   : > { %2461 = vmatmul.bf16.gmra.mxu0 %v5070_v61  ;;  %2512 = vst [vmem:[%s3435_s25 + $0x68] sm:$0xff] %v2480_v14  ;;  %v2543_v0 = vadd.f32 %v2542_v17, %v2480_v14  ;;  %v2581_v23 = vmul.f32 %v2480_v14, %v2480_v14 }
 0x268   : > { %v2031_v16 = vpop.f32.mrf.mxu2 }
 0x269   : > { %v2612_v15 = vadd.f32 %v2611_v58, %v2581_v23  ;;  %v2090_v4 = vadd.f32 %v2031_v16, %v1903_v27  ;;  %v2228_v45 = vpop.f32.mrf.mxu3 }
 0x26a   : > { %v1846_v47 = vpop.f32.mrf.mxu1 }
 0x26b   : > { %v2287_v50 = vadd.f32 %v2228_v45, %v2090_v4  ;;  %v1904_v12 = vadd.f32 %v1846_v47, %v4616_v63 }
 0x26c   : > { %v2424_v35 = vpop.f32.mrf.mxu0 }
 0x26d   : > { %v2481_v19 = vadd.f32 %v2422_v56, %v2287_v50 }
 0x26f   : > { %2513 = vst [vmem:[%s3435_s25 + $0x70] sm:$0xff] %v2481_v19  ;;  %v2544_v6 = vadd.f32 %v2543_v0, %v2481_v19  ;;  %v2582_v57 = vmul.f32 %v2481_v19, %v2481_v19 }
 0x270   : > { %v2033_v20 = vpop.f32.mrf.mxu2 }
 0x271   : > { %v2613_v28 = vadd.f32 %v2612_v15, %v2582_v57  ;;  %v2091_v25 = vadd.f32 %v2033_v20, %v1904_v12  ;;  %v2230_v52 = vpop.f32.mrf.mxu3 }
 0x272   : > { %v1849_v29 = vpop.f32.mrf.mxu1 }
 0x273   : > { %v2288_v31 = vadd.f32 %v2230_v52, %v2091_v25  ;;  %v1905_v37 = vadd.f32 %v1849_v29, %v4621_v54 }
 0x274   : > { %v2427_v44 = vpop.f32.mrf.mxu0 }
 0x275   : > { %v2482_v59 = vadd.f32 %v2424_v35, %v2288_v31 }
 0x277   : > { %2514 = vst [vmem:[%s3435_s25 + $0x78] sm:$0xff] %v2482_v59  ;;  %v2545_v62 = vadd.f32 %v2544_v6, %v2482_v59  ;;  %v2583_v40 = vmul.f32 %v2482_v59, %v2482_v59 }
 0x278   : > { %v2036_v18 = vpop.f32.mrf.mxu2 }
 0x279   : > { %v2614_v46 = vadd.f32 %v2613_v28, %v2583_v40  ;;  %v2092_v3 = vadd.f32 %v2036_v18, %v1905_v37  ;;  %v2233_v13 = vpop.f32.mrf.mxu3 }
 0x27a   : > { %v1851_v10 = vpop.f32.mrf.mxu1 }
 0x27b   : > { %v2289_v63 = vadd.f32 %v2233_v13, %v2092_v3  ;;  %v1906_v30 = vadd.f32 %v1851_v10, %v4628_v43 }
 0x27c   : > { %v2429_v51 = vpop.f32.mrf.mxu0 }
 0x27d   : > { %v2483_v26 = vadd.f32 %v2427_v44, %v2289_v63 }
 0x27f   : > { %2515 = vst [vmem:[%s3435_s25 + $0x80] sm:$0xff] %v2483_v26  ;;  %v2546_v5 = vadd.f32 %v2545_v62, %v2483_v26  ;;  %v2584_v17 = vmul.f32 %v2483_v26, %v2483_v26 }
 0x280   : > { %v2038_v11 = vpop.f32.mrf.mxu2 }
 0x281   : > { %v2615_v39 = vadd.f32 %v2614_v46, %v2584_v17  ;;  %v2093_v58 = vadd.f32 %v2038_v11, %v1906_v30  ;;  %v2235_v8 = vpop.f32.mrf.mxu3 }
 0x282   : > { %v1854_v7 = vpop.f32.mrf.mxu1 }
 0x283   : > { %v2290_v54 = vadd.f32 %v2235_v8, %v2093_v58  ;;  %v1907_v1 = vadd.f32 %v1854_v7, %v4633_v33 }
 0x284   : > { %v2432_v24 = vpop.f32.mrf.mxu0 }
 0x285   : > { %v2484_v2 = vadd.f32 %v2429_v51, %v2290_v54 }
 0x287   : > { %2516 = vst [vmem:[%s3435_s25 + $0x88] sm:$0xff] %v2484_v2  ;;  %v2547_v56 = vadd.f32 %v2546_v5, %v2484_v2  ;;  %v2585_v14 = vmul.f32 %v2484_v2, %v2484_v2 }
 0x288   : > { %v2041_v34 = vpop.f32.mrf.mxu2 }
 0x289   : > { %v2616_v61 = vadd.f32 %v2615_v39, %v2585_v14  ;;  %v2094_v0 = vadd.f32 %v2041_v34, %v1907_v1  ;;  %v2238_v23 = vpop.f32.mrf.mxu3 }
 0x28a   : > { %v1856_v27 = vpop.f32.mrf.mxu1 }
 0x28b   : > { %v2291_v43 = vadd.f32 %v2238_v23, %v2094_v0  ;;  %v1908_v47 = vadd.f32 %v1856_v27, %v4640_v22 }
 0x28c   : > { %v2434_v16 = vpop.f32.mrf.mxu0 }
 0x28d   : > { %v2485_v15 = vadd.f32 %v2432_v24, %v2291_v43 }
 0x28f   : > { %2517 = vst [vmem:[%s3435_s25 + $0x90] sm:$0xff] %v2485_v15  ;;  %v2548_v4 = vadd.f32 %v2547_v56, %v2485_v15  ;;  %v2586_v45 = vmul.f32 %v2485_v15, %v2485_v15 }
 0x290   : > { %v2043_v50 = vpop.f32.mrf.mxu2 }
 0x291   : > { %v2617_v35 = vadd.f32 %v2616_v61, %v2586_v45  ;;  %v2095_v19 = vadd.f32 %v2043_v50, %v1908_v47  ;;  %v2240_v6 = vpop.f32.mrf.mxu3 }
 0x292   : > { %v1859_v57 = vpop.f32.mrf.mxu1 }
 0x293   : > { %v2292_v33 = vadd.f32 %v2240_v6, %v2095_v19  ;;  %v1909_v52 = vadd.f32 %v1859_v57, %v4645_v36 }
 0x294   : > { %v2437_v12 = vpop.f32.mrf.mxu0 }
 0x295   : > { %v2486_v20 = vadd.f32 %v2434_v16, %v2292_v33 }
 0x297   : > { %2518 = vst [vmem:[%s3435_s25 + $0x98] sm:$0xff] %v2486_v20  ;;  %v2549_v28 = vadd.f32 %v2548_v4, %v2486_v20  ;;  %v2587_v25 = vmul.f32 %v2486_v20, %v2486_v20 }
 0x298   : > { %v2046_v29 = vpop.f32.mrf.mxu2 }
 0x299   : > { %v2618_v31 = vadd.f32 %v2617_v35, %v2587_v25  ;;  %v2096_v44 = vadd.f32 %v2046_v29, %v1909_v52  ;;  %v2243_v59 = vpop.f32.mrf.mxu3 }
 0x29a   : > { %v1861_v62 = vpop.f32.mrf.mxu1 }
 0x29b   : > { %v2293_v22 = vadd.f32 %v2243_v59, %v2096_v44  ;;  %v1910_v3 = vadd.f32 %v1861_v62, %v4652_v55 }
 0x29c   : > { %v2439_v40 = vpop.f32.mrf.mxu0 }
 0x29d   : > { %v2487_v37 = vadd.f32 %v2437_v12, %v2293_v22 }
 0x29f   : > { %2519 = vst [vmem:[%s3435_s25 + $0xa0] sm:$0xff] %v2487_v37  ;;  %v2550_v18 = vadd.f32 %v2549_v28, %v2487_v37  ;;  %v2588_v46 = vmul.f32 %v2487_v37, %v2487_v37 }
 0x2a0   : > { %v2048_v13 = vpop.f32.mrf.mxu2 }
 0x2a1   : > { %v2619_v10 = vadd.f32 %v2618_v31, %v2588_v46  ;;  %v2097_v63 = vadd.f32 %v2048_v13, %v1910_v3  ;;  %v2245_v51 = vpop.f32.mrf.mxu3 }
 0x2a2   : > { %v1864_v26 = vpop.f32.mrf.mxu1 }
 0x2a3   : > { %v2294_v36 = vadd.f32 %v2245_v51, %v2097_v63  ;;  %v1911_v39 = vadd.f32 %v1864_v26, %v4657_v32 }
 0x2a4   : > { %v2442_v5 = vpop.f32.mrf.mxu0 }
 0x2a5   : > { %v2488_v17 = vadd.f32 %v2439_v40, %v2294_v36 }
 0x2a7   : > { %2520 = vst [vmem:[%s3435_s25 + $0xa8] sm:$0xff] %v2488_v17  ;;  %v2551_v30 = vadd.f32 %v2550_v18, %v2488_v17  ;;  %v2589_v11 = vmul.f32 %v2488_v17, %v2488_v17 }
 0x2a8   : > { %v2051_v58 = vpop.f32.mrf.mxu2 }
 0x2a9   : > { %v2620_v8 = vadd.f32 %v2619_v10, %v2589_v11  ;;  %v2098_v7 = vadd.f32 %v2051_v58, %v1911_v39  ;;  %v2248_v54 = vpop.f32.mrf.mxu3 }
 0x2aa   : > { %v1866_v24 = vpop.f32.mrf.mxu1 }
 0x2ab   : > { %v2295_v55 = vadd.f32 %v2248_v54, %v2098_v7  ;;  %v1912_v34 = vadd.f32 %v1866_v24, %v4664_v49 }
 0x2ac   : > { %v2444_v2 = vpop.f32.mrf.mxu0 }
 0x2ad   : > { %v2489_v56 = vadd.f32 %v2442_v5, %v2295_v55 }
 0x2af   : > { %2521 = vst [vmem:[%s3435_s25 + $0xb0] sm:$0xff] %v2489_v56  ;;  %v2552_v14 = vadd.f32 %v2551_v30, %v2489_v56  ;;  %v2590_v1 = vmul.f32 %v2489_v56, %v2489_v56 }
 0x2b0   : > { %v2053_v61 = vpop.f32.mrf.mxu2 }
 0x2b1   : > { %v2621_v0 = vadd.f32 %v2620_v8, %v2590_v1  ;;  %v2099_v23 = vadd.f32 %v2053_v61, %v1912_v34  ;;  %v2250_v27 = vpop.f32.mrf.mxu3 }
 0x2b2   : > { %v1869_v43 = vpop.f32.mrf.mxu1 }
 0x2b3   : > { %v2296_v32 = vadd.f32 %v2250_v27, %v2099_v23  ;;  %v1913_v47 = vadd.f32 %v1869_v43, %v4669_v9 }
 0x2b4   : > { %v2447_v16 = vpop.f32.mrf.mxu0 }
 0x2b5   : > { %v2490_v15 = vadd.f32 %v2444_v2, %v2296_v32 }
 0x2b7   : > { %2522 = vst [vmem:[%s3435_s25 + $0xb8] sm:$0xff] %v2490_v15  ;;  %v2553_v4 = vadd.f32 %v2552_v14, %v2490_v15  ;;  %v2591_v45 = vmul.f32 %v2490_v15, %v2490_v15 }
 0x2b8   : > { %v2056_v50 = vpop.f32.mrf.mxu2 }
 0x2b9   : > { %v2622_v35 = vadd.f32 %v2621_v0, %v2591_v45  ;;  %v2100_v19 = vadd.f32 %v2056_v50, %v1913_v47  ;;  %v2253_v6 = vpop.f32.mrf.mxu3 }
 0x2ba   : > { %v1871_v57 = vpop.f32.mrf.mxu1 }
 0x2bb   : > { %v2297_v49 = vadd.f32 %v2253_v6, %v2100_v19  ;;  %v1914_v25 = vadd.f32 %v1871_v57, %v4676_v41 }
 0x2bc   : > { %v2449_v33 = vpop.f32.mrf.mxu0 }
 0x2bd   : > { %v2491_v12 = vadd.f32 %v2447_v16, %v2297_v49 }
 0x2bf   : > { %2523 = vst [vmem:[%s3435_s25 + $0xc0] sm:$0xff] %v2491_v12  ;;  %v2554_v20 = vadd.f32 %v2553_v4, %v2491_v12  ;;  %v2592_v28 = vmul.f32 %v2491_v12, %v2491_v12 }
 0x2c0   : > { %v2058_v52 = vpop.f32.mrf.mxu2 }
 0x2c1   : > { %v2623_v29 = vadd.f32 %v2622_v35, %v2592_v28  ;;  %v2101_v31 = vadd.f32 %v2058_v52, %v1914_v25  ;;  %v2255_v44 = vpop.f32.mrf.mxu3 }
 0x2c2   : > { %v1874_v59 = vpop.f32.mrf.mxu1 }
 0x2c3   : > { %v2298_v9 = vadd.f32 %v2255_v44, %v2101_v31  ;;  %v1915_v18 = vadd.f32 %v1874_v59, %v4681_v21 }
 0x2c4   : > { %v2452_v62 = vpop.f32.mrf.mxu0 }
 0x2c5   : > { %v2492_v22 = vadd.f32 %v2449_v33, %v2298_v9 }
 0x2c7   : > { %2524 = vst [vmem:[%s3435_s25 + $0xc8] sm:$0xff] %v2492_v22  ;;  %v2555_v40 = vadd.f32 %v2554_v20, %v2492_v22  ;;  %v2593_v37 = vmul.f32 %v2492_v22, %v2492_v22 }
 0x2c8   : > { %v2061_v46 = vpop.f32.mrf.mxu2 }
 0x2c9   : > { %v2624_v3 = vadd.f32 %v2623_v29, %v2593_v37  ;;  %v2102_v13 = vadd.f32 %v2061_v46, %v1915_v18  ;;  %v2258_v10 = vpop.f32.mrf.mxu3 }
 0x2ca   : > { %v1876_v63 = vpop.f32.mrf.mxu1 }
 0x2cb   : > { %v2299_v41 = vadd.f32 %v2258_v10, %v2102_v13  ;;  %v1916_v17 = vadd.f32 %v1876_v63, %v4688_v42 }
 0x2cc   : > { %v2454_v51 = vpop.f32.mrf.mxu0 }
 0x2cd   : > { %v2493_v26 = vadd.f32 %v2452_v62, %v2299_v41 }
 0x2cf   : > { %2525 = vst [vmem:[%s3435_s25 + $0xd0] sm:$0xff] %v2493_v26  ;;  %v2556_v36 = vadd.f32 %v2555_v40, %v2493_v26  ;;  %v2594_v5 = vmul.f32 %v2493_v26, %v2493_v26 }
 0x2d0   : > { %v2063_v30 = vpop.f32.mrf.mxu2 }
 0x2d1   : > { %v2625_v11 = vadd.f32 %v2624_v3, %v2594_v5  ;;  %v2103_v39 = vadd.f32 %v2063_v30, %v1916_v17  ;;  %v2260_v58 = vpop.f32.mrf.mxu3 }
 0x2d2   : > { %v1879_v21 = vpop.f32.mrf.mxu1 }
 0x2d3   : > { %v2300_v8 = vadd.f32 %v2260_v58, %v2103_v39  ;;  %v1917_v2 = vadd.f32 %v1879_v21, %v4693_v38 }
 0x2d4   : > { %v2457_v54 = vpop.f32.mrf.mxu0 }
 0x2d5   : > { %v2494_v7 = vadd.f32 %v2454_v51, %v2300_v8 }
 0x2d7   : > { %2526 = vst [vmem:[%s3435_s25 + $0xd8] sm:$0xff] %v2494_v7  ;;  %v2557_v24 = vadd.f32 %v2556_v36, %v2494_v7  ;;  %v2595_v55 = vmul.f32 %v2494_v7, %v2494_v7 }
 0x2d8   : > { %v2066_v56 = vpop.f32.mrf.mxu2 }
 0x2d9   : > { %v2626_v14 = vadd.f32 %v2625_v11, %v2595_v55  ;;  %v2104_v1 = vadd.f32 %v2066_v56, %v1917_v2  ;;  %v2263_v34 = vpop.f32.mrf.mxu3  ;;  %v2637_v11 = vld [vmem:[%s4837_s5] sm:$0x3] }
 0x2da   : > { %v1881_v42 = vpop.f32.mrf.mxu1 }
 0x2db   : > { %v2301_v61 = vadd.f32 %v2263_v34, %v2104_v1  ;;  %v1918_v43 = vadd.f32 %v1881_v42, %v4700_v48 }
 0x2dc   : > { %v2459_v32 = vpop.f32.mrf.mxu0 }
 0x2dd   : > { %v2495_v0 = vadd.f32 %v2457_v54, %v2301_v61 }
 0x2df   : > { %2527 = vst [vmem:[%s3435_s25 + $0xe0] sm:$0xff] %v2495_v0  ;;  %v2558_v23 = vadd.f32 %v2557_v24, %v2495_v0  ;;  %v2596_v27 = vmul.f32 %v2495_v0, %v2495_v0 }
 0x2e0   : > { %v2068_v16 = vpop.f32.mrf.mxu2 }
 0x2e1   : > { %v2627_v15 = vadd.f32 %v2626_v14, %v2596_v27  ;;  %v2105_v4 = vadd.f32 %v2068_v16, %v1918_v43  ;;  %v2265_v45 = vpop.f32.mrf.mxu3 }
 0x2e2   : > { %v1884_v38 = vpop.f32.mrf.mxu1 }
 0x2e3   : > { %v2302_v47 = vadd.f32 %v2265_v45, %v2105_v4  ;;  %v1919_v6 = vadd.f32 %v1884_v38, %v4705_v60 }
 0x2e4   : > { %v2462_v48 = vpop.f32.mrf.mxu0 }
 0x2e5   : > { %v2496_v50 = vadd.f32 %v2459_v32, %v2302_v47 }
 0x2e7   : > { %2528 = vst [vmem:[%s3435_s25 + $0xe8] sm:$0xff] %v2496_v50  ;;  %v2559_v35 = vadd.f32 %v2558_v23, %v2496_v50  ;;  %v2597_v19 = vmul.f32 %v2496_v50, %v2496_v50 }
 0x2e8   : > { %v2071_v57 = vpop.f32.mrf.mxu2 }
 0x2e9   : > { %v2628_v49 = vadd.f32 %v2627_v15, %v2597_v19  ;;  %v2106_v33 = vadd.f32 %v2071_v57, %v1919_v6  ;;  %v2268_v12 = vpop.f32.mrf.mxu3 }
 0x2ea   : > { %v1886_v28 = vpop.f32.mrf.mxu1 }
 0x2eb   : > { %v2303_v20 = vadd.f32 %v2268_v12, %v2106_v33  ;;  %v1920_v31 = vadd.f32 %v1886_v28, %v4712_v53 }
 0x2ec   : > { %v2464_v60 = vpop.f32.mrf.mxu0 }
 0x2ed   : > { %v2497_v25 = vadd.f32 %v2462_v48, %v2303_v20 }
 0x2ef   : > { %2529 = vst [vmem:[%s3435_s25 + $0xf0] sm:$0xff] %v2497_v25  ;;  %v2560_v52 = vadd.f32 %v2559_v35, %v2497_v25  ;;  %v2598_v29 = vmul.f32 %v2497_v25, %v2497_v25 }
 0x2f0   : > { %v2073_v44 = vpop.f32.mrf.mxu2 }
 0x2f1   : > { %v2629_v59 = vadd.f32 %v2628_v49, %v2598_v29  ;;  %v2107_v9 = vadd.f32 %v2073_v44, %v1920_v31  ;;  %v2270_v62 = vpop.f32.mrf.mxu3 }
 0x2f3   : > { %v2304_v22 = vadd.f32 %v2270_v62, %v2107_v9 }
 0x2f5   : > { %v2498_v40 = vadd.f32 %v2464_v60, %v2304_v22 }
 0x2f7   : > { %2530 = vst [vmem:[%s3435_s25 + $0xf8] sm:$0xff] %v2498_v40  ;;  %v2561_v37 = vadd.f32 %v2560_v52, %v2498_v40  ;;  %v2599_v18 = vmul.f32 %v2498_v40, %v2498_v40 }
 0x2f9   : > { %v2562_v46 = vrot.slane %v2561_v37, 4  ;;  %v2630_v3 = vadd.f32 %v2629_v59, %v2599_v18 }
 0x2fb   : > { %v2563_v13 = vadd.f32 %v2562_v46, %v2561_v37  ;;  %v2631_v10 = vrot.slane %v2630_v3, 4 }
 0x2fd   : > { %v2564_v63 = vrot.slane %v2563_v13, 2  ;;  %v2632_v41 = vadd.f32 %v2631_v10, %v2630_v3 }
 0x2ff   : > { %v2565_v51 = vadd.f32 %v2564_v63, %v2563_v13  ;;  %v2633_v26 = vrot.slane %v2632_v41, 2 }
 0x301   : > { %v2566_v36 = vrot.slane %v2565_v51, 1  ;;  %v2634_v53 = vadd.f32 %v2633_v26, %v2632_v41 }
 0x303   : > { %v2635_v5 = vrot.slane %v2634_v53, 1  ;;  %v2567_v17 = vadd.f32 %v2566_v36, %v2565_v51 }
 0x305   : > { %v2636_v30 = vadd.f32 %v2635_v5, %v2634_v53 }
 0x307   : > { %v2639_v39 = vsel %vm2638_vm6, %v2567_v17, %v2636_v30 }
 0x308   : > { %v2640_v58 = vadd.f32 %v2639_v39, %v2637_v11 }
 0x30a   : > { %2641 = vst [vmem:[%s4837_s5] sm:$0x3] %v2640_v58 }
 0x30b PF: > { %s16_s18 = sadd.s32 1, %s3388_s18  }
 0x30c   : > { %p13_p5 = scmp.ge.s32.totalorder %s16_s18, 4  }
 0x30e   :  { %15 = sbr.rel (!%p13_p5) target bundleno = 1 (0x1), region = 86 }

</bundles_post_ra>
